<compile_context>
chip_gen: v7x
topology: tpu7x:2x2x1
jax: 0.10.0
libtpu: 0.0.40
codegen_flags: <defaults>
</compile_context>

<pallas_src>
import numpy as np
import jax
import jax.numpy as jnp
from jax import lax
from jax.experimental import pallas as pl
from jax.experimental.pallas import tpu as pltpu


IMG_H = IMG_W = 16          # conv trunk is specialised to 1x16x16 images


# ----------------------------------------------------------------------------
# Fused kernel: conv trunk + flatten + hidden linear + 5-layer MLP head
# ----------------------------------------------------------------------------
def _sampler_kernel(
    s_ref, img_ref,
    cw1_ref, cb1_ref, ca1_ref,
    cw2_ref, cb2_ref, ca2_ref,
    cw3_ref, cb3_ref, ca3_ref,
    pw1_ref, sh1_ref, pw2_ref, sh2_ref, pw3_ref, sh3_ref,
    srow_ref, clw0_ref, clw1_ref, clb_ref,
    w1s_ref, w1h_ref, b1_ref, a1_ref,
    w2_ref, b2_ref, a2_ref,
    w3_ref, b3_ref, a3_ref,
    w4_ref, b4_ref, a4_ref,
    w5_ref, b5_ref,
    o_ref,
    pad_s,
):
    f32 = jnp.float32
    bf16 = jnp.bfloat16
    nb = s_ref.shape[0]                       # samples handled per grid step

    def prelu(x, a_ref):
        a = a_ref[0]                          # scalar from SMEM
        return jnp.where(x > 0.0, x, a * x)

    def conv3x3(x, h, cw_ref, cb_ref):
        """3x3 pad=1 conv on a (nb*h, w*cin) map.  Horizontal taps + width
        zero-padding are baked into the three (w*cin, w*cout) band matrices
        stacked along rows of cw_ref; the vertical +-1 shift is a slice read
        from the staging scratch, where-masked at sample boundaries."""
        rows, k = x.shape
        pad_s[pl.ds(8, rows), pl.ds(0, k)] = x
        rid = lax.broadcasted_iota(jnp.int32, (rows, 1), 0)
        up = jnp.where(rid % h != 0, pad_s[pl.ds(7, rows), pl.ds(0, k)], 0.0)
        dn = jnp.where(rid % h != h - 1, pad_s[pl.ds(9, rows), pl.ds(0, k)], 0.0)
        acc = jnp.dot(up, cw_ref[pl.ds(0, k), :], preferred_element_type=f32)
        acc = acc + jnp.dot(x, cw_ref[pl.ds(k, k), :], preferred_element_type=f32)
        acc = acc + jnp.dot(dn, cw_ref[pl.ds(2 * k, k), :],
                            preferred_element_type=f32)
        return acc + cb_ref[...]

    def pool2x2(x, pw_ref, sh_ref, combine):
        """2x2 stride-2 pooling via constant 0/1 selection matmuls.
        Lane order is (w, c); row order is (sample, h)."""
        rows, lanes = x.shape
        half = lanes // 2
        y = jnp.dot(x, pw_ref[...], preferred_element_type=f32)   # even|odd w
        a = combine(y[:, :half], y[:, half:])                     # (rows, lanes/2)
        z = jnp.dot(sh_ref[...], a, preferred_element_type=f32)   # even|odd rows
        return combine(z[: rows // 2, :], z[rows // 2:, :])       # (rows/2, lanes/2)

    vmax = jnp.maximum
    vavg = lambda u, v: (u + v) * 0.5

    # ---- conv trunk (rows = (sample, h), lanes = (w, c)) ---------------------
    x0 = img_ref[...]                                             # (nb*16, 16)
    f1 = conv3x3(x0, 16, cw1_ref, cb1_ref)                        # (nb*16, 128)
    p1 = prelu(pool2x2(f1, pw1_ref, sh1_ref, vmax), ca1_ref)      # (nb*8, 64)
    f2 = conv3x3(p1, 8, cw2_ref, cb2_ref)                         # (nb*8, 128)
    p2 = prelu(pool2x2(f2, pw2_ref, sh2_ref, vmax), ca2_ref)      # (nb*4, 64)
    f3 = prelu(conv3x3(p2, 4, cw3_ref, cb3_ref), ca3_ref)         # (nb*4, 128)
    p3 = pool2x2(f3, pw3_ref, sh3_ref, vavg)                      # (nb*2, 64)

    # ---- flatten (h, w, c) + Linear(128 -> hidden) ---------------------------
    z = jnp.dot(srow_ref[...], p3, preferred_element_type=f32)    # (2nb, 64)
    hidden = (jnp.dot(z[:nb, :], clw0_ref[...], preferred_element_type=f32)
              + jnp.dot(z[nb:, :], clw1_ref[...], preferred_element_type=f32)
              + clb_ref[...])                                     # (nb, hf)

    # ---- MLP head (Dropout == identity in eval mode) -------------------------
    x = jnp.dot(hidden.astype(bf16), w1h_ref[...],
                preferred_element_type=f32) + b1_ref[...]
    sv = s_ref[...]
    sd = sv.shape[1]
    if sd <= 8:                    # tiny-K state branch as VPU FMAs, not MXU
        for j in range(sd):
            x = x + sv[:, j:j + 1] * w1s_ref[pl.ds(j, 1), :]
    else:
        x = x + jnp.dot(sv, w1s_ref[...], preferred_element_type=f32)
    x = prelu(x, a1_ref)
    x = prelu(jnp.dot(x.astype(bf16), w2_ref[...],
                      preferred_element_type=f32) + b2_ref[...], a2_ref)
    x = prelu(jnp.dot(x.astype(bf16), w3_ref[...],
                      preferred_element_type=f32) + b3_ref[...], a3_ref)
    x = prelu(jnp.dot(x.astype(bf16), w4_ref[...],
                      preferred_element_type=f32) + b4_ref[...], a4_ref)
    o_ref[...] = jnp.dot(x.astype(bf16), w5_ref[...],
                         preferred_element_type=f32) + b5_ref[...]


# ----------------------------------------------------------------------------
# Host-side constant construction (kernel-ready layouts)
# ----------------------------------------------------------------------------
def _conv_band(k, W):
    """k: (3, 3, cin, cout). Returns (3*W*cin, W*cout): the three per-kernel-row
    banded matrices (horizontal taps + width padding baked in), stacked."""
    _, _, cin, cout = k.shape
    out = np.zeros((3, W * cin, W * cout), np.float32)
    for di in range(3):
        for wo in range(W):
            for dj in range(3):
                wi = wo + dj - 1
                if 0 <= wi < W:
                    out[di, wi * cin:(wi + 1) * cin,
                        wo * cout:(wo + 1) * cout] = k[di, dj]
    return out.reshape(3 * W * cin, W * cout)


def _pool_mats(H, W, C, nb):
    """Constant 0/1 selection matrices for 2x2 stride-2 pooling of a
    (nb*H, W*C) map: pw = [even-w | odd-w] (W*C, W*C), sh = [even-h ; odd-h]."""
    L = W * C
    pw = np.zeros((L, L), np.float32)
    for j in range(W // 2):
        for c in range(C):
            pw[(2 * j) * C + c, j * C + c] = 1.0
            pw[(2 * j + 1) * C + c, L // 2 + j * C + c] = 1.0
    R = nb * H
    sh = np.zeros((R, R), np.float32)
    for m in range(nb):
        for i in range(H // 2):
            sh[m * (H // 2) + i, m * H + 2 * i] = 1.0
            sh[R // 2 + m * (H // 2) + i, m * H + 2 * i + 1] = 1.0
    return pw, sh


def make_kernel_constants(params, nb=8):
    """Build all kernel-layout constant operands from canonical params."""
    assert nb >= 8 and nb % 8 == 0
    f32 = np.float32
    c = {"nb": int(nb)}
    c["state_dim"] = int(params["w1s"].shape[0])
    c["action_dim"] = int(params["action_dim"])
    c["act_pad"] = ((c["action_dim"] + 127) // 128) * 128

    # conv band matrices + per-lane bias rows (lane order (w, c))
    for li, (kn, bn, W) in enumerate((("k1", "bc1", 16), ("k2", "bc2", 8),
                                      ("k3", "bc3", 4)), start=1):
        k = np.asarray(params[kn], f32)
        b = np.asarray(params[bn], f32)
        c[f"cw{li}"] = jnp.asarray(_conv_band(k, W))
        c[f"cb{li}"] = jnp.asarray(np.tile(b, W)[None, :])

    # pooling selection matrices
    for li, (H, W, C) in enumerate(((16, 16, 8), (8, 8, 16), (4, 4, 32)),
                                   start=1):
        pw, sh = _pool_mats(H, W, C, nb)
        c[f"pw{li}"] = jnp.asarray(pw)
        c[f"sh{li}"] = jnp.asarray(sh)

    # flatten row-selection + (h, w, c)-ordered conv->hidden weights
    srow = np.zeros((2 * nb, 2 * nb), f32)
    for m in range(nb):
        srow[m, 2 * m] = 1.0
        srow[nb + m, 2 * m + 1] = 1.0
    c["srow"] = jnp.asarray(srow)
    clw = np.asarray(params["clw"], f32)                 # (2, 2, 32, hf)
    hf = clw.shape[-1]
    c["clw0"] = jnp.asarray(clw[0].reshape(64, hf))
    c["clw1"] = jnp.asarray(clw[1].reshape(64, hf))
    c["clb"] = jnp.asarray(np.asarray(params["clb"], f32)[None, :])

    # MLP head (weights fed as bf16, biases f32)
    c["w1s"] = jnp.asarray(np.asarray(params["w1s"], f32))
    c["w1h"] = jnp.asarray(np.asarray(params["w1h"], f32)).astype(jnp.bfloat16)
    c["b1"] = jnp.asarray(np.asarray(params["b1"], f32)[None, :])
    for i in (2, 3, 4):
        c[f"w{i}"] = jnp.asarray(np.asarray(params[f"w{i}"], f32)
                                 ).astype(jnp.bfloat16)
        c[f"b{i}"] = jnp.asarray(np.asarray(params[f"b{i}"], f32)[None, :])
    ad, ap = c["action_dim"], c["act_pad"]
    w5 = np.zeros((64, ap), f32); w5[:, :ad] = np.asarray(params["w5"], f32)
    b5 = np.zeros((1, ap), f32); b5[0, :ad] = np.asarray(params["b5"], f32)
    c["w5"] = jnp.asarray(w5).astype(jnp.bfloat16)
    c["b5"] = jnp.asarray(b5)

    # PReLU scalars (SMEM)
    for nm in ("ca1", "ca2", "ca3", "a1", "a2", "a3", "a4"):
        c[nm] = jnp.asarray(np.asarray(params[nm], f32))
    return c


# ----------------------------------------------------------------------------
# Wrapper
# ----------------------------------------------------------------------------
def _const_spec(arr):
    nd = arr.ndim
    return pl.BlockSpec(arr.shape, lambda i: (0,) * nd)


def _smem_scalar_spec():
    return pl.BlockSpec((1,), lambda i: (0,),
                        memory_space=pltpu.MemorySpace.SMEM)


_CONST_NAMES = ["cw1", "cb1", "ca1", "cw2", "cb2", "ca2", "cw3", "cb3", "ca3",
                "pw1", "sh1", "pw2", "sh2", "pw3", "sh3",
                "srow", "clw0", "clw1", "clb",
                "w1s", "w1h", "b1", "a1",
                "w2", "b2", "a2", "w3", "b3", "a3", "w4", "b4", "a4",
                "w5", "b5"]
_SMEM_NAMES = {"ca1", "ca2", "ca3", "a1", "a2", "a3", "a4"}


def sampler_image_forward(consts, s, image):
    """Fused forward pass of SamplerImage.  Returns (logits, None)."""
    nb = consts["nb"]
    sd = consts["state_dim"]
    act_dim, act_pad = consts["action_dim"], consts["act_pad"]
    n = s.shape[0]
    s2 = s.reshape(n, -1).astype(jnp.float32)
    assert s2.shape[1] == sd
    assert image.shape[1:] == (1, IMG_H, IMG_W), image.shape

    n_pad = ((n + nb - 1) // nb) * nb
    if n_pad != n:
        s2 = jnp.pad(s2, ((0, n_pad - n), (0, 0)))
        image = jnp.pad(image, ((0, n_pad - n), (0, 0), (0, 0), (0, 0)))
    img2 = image.astype(jnp.float32).reshape(n_pad * IMG_H, IMG_W)

    const_args = [consts[k] for k in _CONST_NAMES]
    const_specs = [_smem_scalar_spec() if k in _SMEM_NAMES
                   else _const_spec(consts[k]) for k in _CONST_NAMES]

    in_specs = [pl.BlockSpec((nb, sd), lambda i: (i, 0)),
                pl.BlockSpec((nb * IMG_H, IMG_W), lambda i: (i, 0))] + const_specs

    out = pl.pallas_call(
        _sampler_kernel,
        out_shape=jax.ShapeDtypeStruct((n_pad, act_pad), jnp.float32),
        grid=(n_pad // nb,),
        in_specs=in_specs,
        out_specs=pl.BlockSpec((nb, act_pad), lambda i: (i, 0)),
        scratch_shapes=[pltpu.VMEM((nb * IMG_H + 16, 128), jnp.float32)],
        compiler_params=pltpu.CompilerParams(
            dimension_semantics=("parallel",),
            vmem_limit_bytes=32 * 1024 * 1024),
    )(s2, img2, *const_args)

    logits = out[:n, :act_dim]
    return logits, None


# ----------------------------------------------------------------------------
# Parameters (deterministic synthetic init, canonical layouts)
# ----------------------------------------------------------------------------
def init_params(key, state_dim, hidden_feature_size, action_dim):
    keys = jax.random.split(key, 19)
    f32 = jnp.float32

    def nrm(k, shape):
        return 0.1 * jax.random.normal(k, shape, f32)

    def nrm_bf(k, shape):     # bf16-representable values, stored in f32
        return nrm(k, shape).astype(jnp.bfloat16).astype(f32)

    p = {}
    p["k1"] = nrm(keys[0], (3, 3, 1, 8));    p["bc1"] = nrm(keys[1], (8,))
    p["k2"] = nrm(keys[2], (3, 3, 8, 16));   p["bc2"] = nrm(keys[3], (16,))
    p["k3"] = nrm(keys[4], (3, 3, 16, 32));  p["bc3"] = nrm(keys[5], (32,))
    p["clw"] = nrm(keys[6], (2, 2, 32, hidden_feature_size))   # (h, w, c, out)
    p["clb"] = nrm(keys[7], (hidden_feature_size,))
    p["w1s"] = nrm(keys[8], (state_dim, 512))
    p["w1h"] = nrm_bf(keys[9], (hidden_feature_size, 512))
    p["b1"] = nrm(keys[10], (512,))
    p["w2"] = nrm_bf(keys[11], (512, 256)); p["b2"] = nrm(keys[12], (256,))
    p["w3"] = nrm_bf(keys[13], (256, 128)); p["b3"] = nrm(keys[14], (128,))
    p["w4"] = nrm_bf(keys[15], (128, 64));  p["b4"] = nrm(keys[16], (64,))
    p["w5"] = nrm_bf(keys[17], (64, action_dim))
    p["b5"] = nrm(keys[18], (action_dim,))
    for name in ("ca1", "ca2", "ca3", "a1", "a2", "a3", "a4"):
        p[name] = jnp.full((1,), 0.25, f32)     # PReLU default init
    p["action_dim"] = action_dim
    return p


# ----------------------------------------------------------------------------
# Pure-jnp reference (canonical layouts) for correctness verification
# ----------------------------------------------------------------------------
def reference_forward(params, s, image):
    n = s.shape[0]
    f32 = jnp.float32
    s2 = s.reshape(n, -1).astype(f32)

    def conv3x3(x, k, b):                       # x (n,h,w,cin), k (3,3,cin,cout)
        n_, h, w, _ = x.shape
        xp = jnp.pad(x, ((0, 0), (1, 1), (1, 1), (0, 0)))
        acc = jnp.zeros((n_, h, w, k.shape[-1]), f32) + b
        for di in range(3):
            for dj in range(3):
                acc = acc + jnp.einsum("nhwc,cd->nhwd",
                                       xp[:, di:di + h, dj:dj + w, :], k[di, dj])
        return acc

    def pool2x2(x, op):
        n_, h, w, c_ = x.shape
        xr = x.reshape(n_, h // 2, 2, w // 2, 2, c_)
        return xr.max(axis=(2, 4)) if op == "max" else xr.mean(axis=(2, 4))

    def prelu(x, a):
        return jnp.where(x > 0.0, x, a * x)

    x = image.astype(f32).reshape(n, 1, IMG_H, IMG_W).transpose(0, 2, 3, 1)
    x = conv3x3(x, params["k1"], params["bc1"])
    x = prelu(pool2x2(x, "max"), params["ca1"][0])
    x = conv3x3(x, params["k2"], params["bc2"])
    x = prelu(pool2x2(x, "max"), params["ca2"][0])
    x = prelu(conv3x3(x, params["k3"], params["bc3"]), params["ca3"][0])
    x = pool2x2(x, "avg")                       # (n, 2, 2, 32)
    flat = x.reshape(n, 2 * 2 * 32)             # (h, w, c) flatten order
    hidden = flat @ params["clw"].reshape(128, -1) + params["clb"]

    z = prelu(s2 @ params["w1s"] + hidden @ params["w1h"] + params["b1"],
              params["a1"][0])
    z = prelu(z @ params["w2"] + params["b2"], params["a2"][0])
    z = prelu(z @ params["w3"] + params["b3"], params["a3"][0])
    z = prelu(z @ params["w4"] + params["b4"], params["a4"][0])
    return z @ params["w5"] + params["b5"]


# ----------------------------------------------------------------------------
# Main
# ----------------------------------------------------------------------------
if __name__ == "__main__":
    batch = 10                        # exercises padding (->16) and 2 grid steps
    state_shape = (4,)
    action_shape = (3,)
    image_shape = (1, IMG_H, IMG_W)
    hidden_feature_size = 32

    root = jax.random.PRNGKey(0)
    kp, ks, ki = jax.random.split(root, 3)

    params = init_params(kp, int(np.prod(state_shape)), hidden_feature_size,
                         int(np.prod(action_shape)))
    consts = make_kernel_constants(params, nb=8)

    s = jax.random.normal(ks, (batch,) + state_shape, jnp.float32)
    image = jax.random.uniform(ki, (batch,) + image_shape, jnp.float32)

    logits, _ = sampler_image_forward(consts, s, image)
    logits = jax.block_until_ready(logits)

    assert logits.shape == (batch, int(np.prod(action_shape)))
    assert logits.dtype == jnp.float32
    assert bool(jnp.all(jnp.isfinite(logits)))

    ref = reference_forward(params, s, image)
    max_err = float(jnp.max(jnp.abs(logits - ref)))
    assert bool(jnp.allclose(logits, ref, rtol=3e-2, atol=1e-2)), (
        f"kernel/reference mismatch, max abs diff = {max_err}")

    print("KERNEL_OK")
</pallas_src>

<mosaic_0001>
module attributes {stable_mosaic.version = 11 : i64} {
  func.func @_sampler_kernel(%arg0: i32, %arg1: memref<8x4xf32, #tpu.memory_space<vmem>>, %arg2: memref<128x16xf32, #tpu.memory_space<vmem>>, %arg3: memref<48x128xf32, #tpu.memory_space<vmem>>, %arg4: memref<1x128xf32, #tpu.memory_space<vmem>>, %arg5: memref<1xf32, #tpu.memory_space<smem>>, %arg6: memref<192x128xf32, #tpu.memory_space<vmem>>, %arg7: memref<1x128xf32, #tpu.memory_space<vmem>>, %arg8: memref<1xf32, #tpu.memory_space<smem>>, %arg9: memref<192x128xf32, #tpu.memory_space<vmem>>, %arg10: memref<1x128xf32, #tpu.memory_space<vmem>>, %arg11: memref<1xf32, #tpu.memory_space<smem>>, %arg12: memref<128x128xf32, #tpu.memory_space<vmem>>, %arg13: memref<128x128xf32, #tpu.memory_space<vmem>>, %arg14: memref<128x128xf32, #tpu.memory_space<vmem>>, %arg15: memref<64x64xf32, #tpu.memory_space<vmem>>, %arg16: memref<128x128xf32, #tpu.memory_space<vmem>>, %arg17: memref<32x32xf32, #tpu.memory_space<vmem>>, %arg18: memref<16x16xf32, #tpu.memory_space<vmem>>, %arg19: memref<64x32xf32, #tpu.memory_space<vmem>>, %arg20: memref<64x32xf32, #tpu.memory_space<vmem>>, %arg21: memref<1x32xf32, #tpu.memory_space<vmem>>, %arg22: memref<4x512xf32, #tpu.memory_space<vmem>>, %arg23: memref<32x512xbf16, #tpu.memory_space<vmem>>, %arg24: memref<1x512xf32, #tpu.memory_space<vmem>>, %arg25: memref<1xf32, #tpu.memory_space<smem>>, %arg26: memref<512x256xbf16, #tpu.memory_space<vmem>>, %arg27: memref<1x256xf32, #tpu.memory_space<vmem>>, %arg28: memref<1xf32, #tpu.memory_space<smem>>, %arg29: memref<256x128xbf16, #tpu.memory_space<vmem>>, %arg30: memref<1x128xf32, #tpu.memory_space<vmem>>, %arg31: memref<1xf32, #tpu.memory_space<smem>>, %arg32: memref<128x64xbf16, #tpu.memory_space<vmem>>, %arg33: memref<1x64xf32, #tpu.memory_space<vmem>>, %arg34: memref<1xf32, #tpu.memory_space<smem>>, %arg35: memref<64x128xbf16, #tpu.memory_space<vmem>>, %arg36: memref<1x128xf32, #tpu.memory_space<vmem>>, %arg37: memref<8x128xf32, #tpu.memory_space<vmem>>, %arg38: memref<144x128xf32, #tpu.memory_space<vmem>>) attributes {dimension_semantics = [#tpu.dimension_semantics<parallel>], iteration_bounds = array<i64: 2>, scalar_prefetch = 0 : i64, scratch_operands = 1 : i64, tpu.core_type = #tpu.core_type<tc>, window_params = [{transform_indices = @transform_0, window_bounds = array<i64: 8, 4>}, {transform_indices = @transform_1, window_bounds = array<i64: 128, 16>}, {pipeline_mode = #tpu.pipeline_mode<synchronous>, transform_indices = @transform_2, window_bounds = array<i64: 48, 128>}, {pipeline_mode = #tpu.pipeline_mode<synchronous>, transform_indices = @transform_3, window_bounds = array<i64: 1, 128>}, {transform_indices = @transform_4, window_bounds = array<i64: 1>}, {pipeline_mode = #tpu.pipeline_mode<synchronous>, transform_indices = @transform_5, window_bounds = array<i64: 192, 128>}, {pipeline_mode = #tpu.pipeline_mode<synchronous>, transform_indices = @transform_6, window_bounds = array<i64: 1, 128>}, {transform_indices = @transform_7, window_bounds = array<i64: 1>}, {pipeline_mode = #tpu.pipeline_mode<synchronous>, transform_indices = @transform_8, window_bounds = array<i64: 192, 128>}, {pipeline_mode = #tpu.pipeline_mode<synchronous>, transform_indices = @transform_9, window_bounds = array<i64: 1, 128>}, {transform_indices = @transform_10, window_bounds = array<i64: 1>}, {pipeline_mode = #tpu.pipeline_mode<synchronous>, transform_indices = @transform_11, window_bounds = array<i64: 128, 128>}, {pipeline_mode = #tpu.pipeline_mode<synchronous>, transform_indices = @transform_12, window_bounds = array<i64: 128, 128>}, {pipeline_mode = #tpu.pipeline_mode<synchronous>, transform_indices = @transform_13, window_bounds = array<i64: 128, 128>}, {pipeline_mode = #tpu.pipeline_mode<synchronous>, transform_indices = @transform_14, window_bounds = array<i64: 64, 64>}, {pipeline_mode = #tpu.pipeline_mode<synchronous>, transform_indices = @transform_15, window_bounds = array<i64: 128, 128>}, {pipeline_mode = #tpu.pipeline_mode<synchronous>, transform_indices = @transform_16, window_bounds = array<i64: 32, 32>}, {pipeline_mode = #tpu.pipeline_mode<synchronous>, transform_indices = @transform_17, window_bounds = array<i64: 16, 16>}, {pipeline_mode = #tpu.pipeline_mode<synchronous>, transform_indices = @transform_18, window_bounds = array<i64: 64, 32>}, {pipeline_mode = #tpu.pipeline_mode<synchronous>, transform_indices = @transform_19, window_bounds = array<i64: 64, 32>}, {pipeline_mode = #tpu.pipeline_mode<synchronous>, transform_indices = @transform_20, window_bounds = array<i64: 1, 32>}, {pipeline_mode = #tpu.pipeline_mode<synchronous>, transform_indices = @transform_21, window_bounds = array<i64: 4, 512>}, {pipeline_mode = #tpu.pipeline_mode<synchronous>, transform_indices = @transform_22, window_bounds = array<i64: 32, 512>}, {pipeline_mode = #tpu.pipeline_mode<synchronous>, transform_indices = @transform_23, window_bounds = array<i64: 1, 512>}, {transform_indices = @transform_24, window_bounds = array<i64: 1>}, {pipeline_mode = #tpu.pipeline_mode<synchronous>, transform_indices = @transform_25, window_bounds = array<i64: 512, 256>}, {pipeline_mode = #tpu.pipeline_mode<synchronous>, transform_indices = @transform_26, window_bounds = array<i64: 1, 256>}, {transform_indices = @transform_27, window_bounds = array<i64: 1>}, {pipeline_mode = #tpu.pipeline_mode<synchronous>, transform_indices = @transform_28, window_bounds = array<i64: 256, 128>}, {pipeline_mode = #tpu.pipeline_mode<synchronous>, transform_indices = @transform_29, window_bounds = array<i64: 1, 128>}, {transform_indices = @transform_30, window_bounds = array<i64: 1>}, {pipeline_mode = #tpu.pipeline_mode<synchronous>, transform_indices = @transform_31, window_bounds = array<i64: 128, 64>}, {pipeline_mode = #tpu.pipeline_mode<synchronous>, transform_indices = @transform_32, window_bounds = array<i64: 1, 64>}, {transform_indices = @transform_33, window_bounds = array<i64: 1>}, {pipeline_mode = #tpu.pipeline_mode<synchronous>, transform_indices = @transform_34, window_bounds = array<i64: 64, 128>}, {pipeline_mode = #tpu.pipeline_mode<synchronous>, transform_indices = @transform_35, window_bounds = array<i64: 1, 128>}, {transform_indices = @transform_36, window_bounds = array<i64: 8, 128>}]} {
    %c0 = arith.constant 0 : index
    %c0_0 = arith.constant 0 : index
    %0 = vector.load %arg2[%c0, %c0_0] : memref<128x16xf32, #tpu.memory_space<vmem>>, vector<128x16xf32>
    %c8 = arith.constant 8 : index
    %c0_1 = arith.constant 0 : index
    %1 = vector.load %arg38[%c8, %c0_1] : memref<144x128xf32, #tpu.memory_space<vmem>>, vector<128x16xf32>
    tpu.vector_store %arg38[%c8, %c0_1], %0 {strides = array<i32>} : memref<144x128xf32, #tpu.memory_space<vmem>>, vector<128x16xf32>,
    %2 = tpu.iota {dimensions = array<i32: 0>} : vector<128x1xi32>
    %c16_i32 = arith.constant 16 : i32
    %c0_i32 = arith.constant 0 : i32
    %3 = arith.cmpi eq, %c16_i32, %c0_i32 : i32
    %c1_i32 = arith.constant 1 : i32
    %4 = arith.select %3, %c1_i32, %c16_i32 : i32
    %5 = vector.broadcast %4 : i32 to vector<128x1xi32>
    %6 = arith.remsi %2, %5 : vector<128x1xi32>
    %c0_i32_2 = arith.constant 0 : i32
    %7 = vector.broadcast %c0_i32_2 : i32 to vector<128x1xi32>
    %8 = arith.cmpi ne, %6, %7 : vector<128x1xi32>
    %c0_i32_3 = arith.constant 0 : i32
    %9 = vector.broadcast %c0_i32_3 : i32 to vector<128x1xi32>
    %10 = arith.cmpi slt, %6, %9 : vector<128x1xi32>
    %c0_i32_4 = arith.constant 0 : i32
    %11 = arith.cmpi slt, %4, %c0_i32_4 : i32
    %12 = vector.broadcast %11 : i1 to vector<128x1xi1>
    %13 = vector.broadcast %12 : vector<128x1xi1> to vector<128x1xi1>
    %14 = arith.xori %10, %13 : vector<128x1xi1>
    %15 = arith.andi %14, %8 : vector<128x1xi1>
    %16 = vector.broadcast %4 : i32 to vector<128x1xi32>
    %17 = arith.addi %6, %16 : vector<128x1xi32>
    %18 = arith.select %15, %17, %6 : vector<128x1xi1>, vector<128x1xi32>
    %c0_i32_5 = arith.constant 0 : i32
    %19 = vector.broadcast %c0_i32_5 : i32 to vector<128x1xi32>
    %20 = arith.cmpi ne, %18, %19 : vector<128x1xi32>
    %c7 = arith.constant 7 : index
    %c0_6 = arith.constant 0 : index
    %21 = vector.load %arg38[%c7, %c0_6] : memref<144x128xf32, #tpu.memory_space<vmem>>, vector<128x16xf32>
    %cst = arith.constant 0.000000e+00 : f32
    %22 = vector.shape_cast %20 : vector<128x1xi1> to vector<128x1xi1>
    %23 = vector.broadcast %22 : vector<128x1xi1> to vector<128x16xi1>
    %24 = vector.broadcast %cst : f32 to vector<128x16xf32>
    %25 = arith.select %23, %21, %24 : vector<128x16xi1>, vector<128x16xf32>
    %c16_i32_7 = arith.constant 16 : i32
    %c0_i32_8 = arith.constant 0 : i32
    %26 = arith.cmpi eq, %c16_i32_7, %c0_i32_8 : i32
    %c1_i32_9 = arith.constant 1 : i32
    %27 = arith.select %26, %c1_i32_9, %c16_i32_7 : i32
    %28 = vector.broadcast %27 : i32 to vector<128x1xi32>
    %29 = arith.remsi %2, %28 : vector<128x1xi32>
    %c0_i32_10 = arith.constant 0 : i32
    %30 = vector.broadcast %c0_i32_10 : i32 to vector<128x1xi32>
    %31 = arith.cmpi ne, %29, %30 : vector<128x1xi32>
    %c0_i32_11 = arith.constant 0 : i32
    %32 = vector.broadcast %c0_i32_11 : i32 to vector<128x1xi32>
    %33 = arith.cmpi slt, %29, %32 : vector<128x1xi32>
    %c0_i32_12 = arith.constant 0 : i32
    %34 = arith.cmpi slt, %27, %c0_i32_12 : i32
    %35 = vector.broadcast %34 : i1 to vector<128x1xi1>
    %36 = vector.broadcast %35 : vector<128x1xi1> to vector<128x1xi1>
    %37 = arith.xori %33, %36 : vector<128x1xi1>
    %38 = arith.andi %37, %31 : vector<128x1xi1>
    %39 = vector.broadcast %27 : i32 to vector<128x1xi32>
    %40 = arith.addi %29, %39 : vector<128x1xi32>
    %41 = arith.select %38, %40, %29 : vector<128x1xi1>, vector<128x1xi32>
    %c15_i32 = arith.constant 15 : i32
    %42 = vector.broadcast %c15_i32 : i32 to vector<128x1xi32>
    %43 = arith.cmpi ne, %41, %42 : vector<128x1xi32>
    %c9 = arith.constant 9 : index
    %c0_13 = arith.constant 0 : index
    %44 = vector.load %arg38[%c9, %c0_13] : memref<144x128xf32, #tpu.memory_space<vmem>>, vector<128x16xf32>
    %cst_14 = arith.constant 0.000000e+00 : f32
    %45 = vector.shape_cast %43 : vector<128x1xi1> to vector<128x1xi1>
    %46 = vector.broadcast %45 : vector<128x1xi1> to vector<128x16xi1>
    %47 = vector.broadcast %cst_14 : f32 to vector<128x16xf32>
    %48 = arith.select %46, %44, %47 : vector<128x16xi1>, vector<128x16xf32>
    %c0_15 = arith.constant 0 : index
    %c0_16 = arith.constant 0 : index
    %49 = vector.load %arg3[%c0_15, %c0_16] : memref<48x128xf32, #tpu.memory_space<vmem>>, vector<16x128xf32>
    %cst_17 = arith.constant dense<0.000000e+00> : vector<128x128xf32>
    %50 = tpu.matmul %25, %49, %cst_17 {dimension_numbers = #tpu.dot_dimension_numbers<[1], [0], [0], [1], [0, 0, 1, 1], [], []>} : vector<128x16xf32>, vector<16x128xf32>, vector<128x128xf32> -> vector<128x128xf32>
    %c16 = arith.constant 16 : index
    %c0_18 = arith.constant 0 : index
    %51 = vector.load %arg3[%c16, %c0_18] : memref<48x128xf32, #tpu.memory_space<vmem>>, vector<16x128xf32>
    %cst_19 = arith.constant dense<0.000000e+00> : vector<128x128xf32>
    %52 = tpu.matmul %0, %51, %cst_19 {dimension_numbers = #tpu.dot_dimension_numbers<[1], [0], [0], [1], [0, 0, 1, 1], [], []>} : vector<128x16xf32>, vector<16x128xf32>, vector<128x128xf32> -> vector<128x128xf32>
    %53 = arith.addf %50, %52 : vector<128x128xf32>
    %c32 = arith.constant 32 : index
    %c0_20 = arith.constant 0 : index
    %54 = vector.load %arg3[%c32, %c0_20] : memref<48x128xf32, #tpu.memory_space<vmem>>, vector<16x128xf32>
    %cst_21 = arith.constant dense<0.000000e+00> : vector<128x128xf32>
    %55 = tpu.matmul %48, %54, %cst_21 {dimension_numbers = #tpu.dot_dimension_numbers<[1], [0], [0], [1], [0, 0, 1, 1], [], []>} : vector<128x16xf32>, vector<16x128xf32>, vector<128x128xf32> -> vector<128x128xf32>
    %56 = arith.addf %53, %55 : vector<128x128xf32>
    %c0_22 = arith.constant 0 : index
    %c0_23 = arith.constant 0 : index
    %57 = vector.load %arg4[%c0_22, %c0_23] : memref<1x128xf32, #tpu.memory_space<vmem>>, vector<1x128xf32>
    %58 = vector.broadcast %57 : vector<1x128xf32> to vector<128x128xf32>
    %59 = arith.addf %56, %58 : vector<128x128xf32>
    %c0_24 = arith.constant 0 : index
    %c0_25 = arith.constant 0 : index
    %60 = vector.load %arg12[%c0_24, %c0_25] : memref<128x128xf32, #tpu.memory_space<vmem>>, vector<128x128xf32>
    %cst_26 = arith.constant dense<0.000000e+00> : vector<128x128xf32>
    %61 = tpu.matmul %59, %60, %cst_26 {dimension_numbers = #tpu.dot_dimension_numbers<[1], [0], [0], [1], [0, 0, 1, 1], [], []>} : vector<128x128xf32>, vector<128x128xf32>, vector<128x128xf32> -> vector<128x128xf32>
    %62 = vector.extract_strided_slice %61 {offsets = [0, 0], sizes = [128, 64], strides = [1, 1]} : vector<128x128xf32> to vector<128x64xf32>
    %63 = vector.extract_strided_slice %61 {offsets = [0, 64], sizes = [128, 64], strides = [1, 1]} : vector<128x128xf32> to vector<128x64xf32>
    %64 = arith.maximumf %62, %63 : vector<128x64xf32>
    %c0_27 = arith.constant 0 : index
    %c0_28 = arith.constant 0 : index
    %65 = vector.load %arg13[%c0_27, %c0_28] : memref<128x128xf32, #tpu.memory_space<vmem>>, vector<128x128xf32>
    %cst_29 = arith.constant dense<0.000000e+00> : vector<128x64xf32>
    %66 = tpu.matmul %65, %64, %cst_29 {dimension_numbers = #tpu.dot_dimension_numbers<[1], [0], [0], [1], [0, 0, 1, 1], [], []>} : vector<128x128xf32>, vector<128x64xf32>, vector<128x64xf32> -> vector<128x64xf32>
    %67 = vector.extract_strided_slice %66 {offsets = [0, 0], sizes = [64, 64], strides = [1, 1]} : vector<128x64xf32> to vector<64x64xf32>
    %68 = vector.extract_strided_slice %66 {offsets = [64, 0], sizes = [64, 64], strides = [1, 1]} : vector<128x64xf32> to vector<64x64xf32>
    %69 = arith.maximumf %67, %68 : vector<64x64xf32>
    %c0_30 = arith.constant 0 : index
    %70 = memref.load %arg5[%c0_30] : memref<1xf32, #tpu.memory_space<smem>>
    %cst_31 = arith.constant 0.000000e+00 : f32
    %71 = vector.broadcast %cst_31 : f32 to vector<64x64xf32>
    %72 = arith.cmpf ogt, %69, %71 : vector<64x64xf32>
    %73 = vector.broadcast %70 : f32 to vector<64x64xf32>
    %74 = arith.mulf %73, %69 : vector<64x64xf32>
    %75 = arith.select %72, %69, %74 : vector<64x64xi1>, vector<64x64xf32>
    %c8_32 = arith.constant 8 : index
    %c0_33 = arith.constant 0 : index
    %76 = vector.load %arg38[%c8_32, %c0_33] : memref<144x128xf32, #tpu.memory_space<vmem>>, vector<64x64xf32>
    tpu.vector_store %arg38[%c8_32, %c0_33], %75 {strides = array<i32>} : memref<144x128xf32, #tpu.memory_space<vmem>>, vector<64x64xf32>,
    %77 = tpu.iota {dimensions = array<i32: 0>} : vector<64x1xi32>
    %c8_i32 = arith.constant 8 : i32
    %c0_i32_34 = arith.constant 0 : i32
    %78 = arith.cmpi eq, %c8_i32, %c0_i32_34 : i32
    %c1_i32_35 = arith.constant 1 : i32
    %79 = arith.select %78, %c1_i32_35, %c8_i32 : i32
    %80 = vector.broadcast %79 : i32 to vector<64x1xi32>
    %81 = arith.remsi %77, %80 : vector<64x1xi32>
    %c0_i32_36 = arith.constant 0 : i32
    %82 = vector.broadcast %c0_i32_36 : i32 to vector<64x1xi32>
    %83 = arith.cmpi ne, %81, %82 : vector<64x1xi32>
    %c0_i32_37 = arith.constant 0 : i32
    %84 = vector.broadcast %c0_i32_37 : i32 to vector<64x1xi32>
    %85 = arith.cmpi slt, %81, %84 : vector<64x1xi32>
    %c0_i32_38 = arith.constant 0 : i32
    %86 = arith.cmpi slt, %79, %c0_i32_38 : i32
    %87 = vector.broadcast %86 : i1 to vector<64x1xi1>
    %88 = vector.broadcast %87 : vector<64x1xi1> to vector<64x1xi1>
    %89 = arith.xori %85, %88 : vector<64x1xi1>
    %90 = arith.andi %89, %83 : vector<64x1xi1>
    %91 = vector.broadcast %79 : i32 to vector<64x1xi32>
    %92 = arith.addi %81, %91 : vector<64x1xi32>
    %93 = arith.select %90, %92, %81 : vector<64x1xi1>, vector<64x1xi32>
    %c0_i32_39 = arith.constant 0 : i32
    %94 = vector.broadcast %c0_i32_39 : i32 to vector<64x1xi32>
    %95 = arith.cmpi ne, %93, %94 : vector<64x1xi32>
    %c7_40 = arith.constant 7 : index
    %c0_41 = arith.constant 0 : index
    %96 = vector.load %arg38[%c7_40, %c0_41] : memref<144x128xf32, #tpu.memory_space<vmem>>, vector<64x64xf32>
    %cst_42 = arith.constant 0.000000e+00 : f32
    %97 = vector.shape_cast %95 : vector<64x1xi1> to vector<64x1xi1>
    %98 = vector.broadcast %97 : vector<64x1xi1> to vector<64x64xi1>
    %99 = vector.broadcast %cst_42 : f32 to vector<64x64xf32>
    %100 = arith.select %98, %96, %99 : vector<64x64xi1>, vector<64x64xf32>
    %c8_i32_43 = arith.constant 8 : i32
    %c0_i32_44 = arith.constant 0 : i32
    %101 = arith.cmpi eq, %c8_i32_43, %c0_i32_44 : i32
    %c1_i32_45 = arith.constant 1 : i32
    %102 = arith.select %101, %c1_i32_45, %c8_i32_43 : i32
    %103 = vector.broadcast %102 : i32 to vector<64x1xi32>
    %104 = arith.remsi %77, %103 : vector<64x1xi32>
    %c0_i32_46 = arith.constant 0 : i32
    %105 = vector.broadcast %c0_i32_46 : i32 to vector<64x1xi32>
    %106 = arith.cmpi ne, %104, %105 : vector<64x1xi32>
    %c0_i32_47 = arith.constant 0 : i32
    %107 = vector.broadcast %c0_i32_47 : i32 to vector<64x1xi32>
    %108 = arith.cmpi slt, %104, %107 : vector<64x1xi32>
    %c0_i32_48 = arith.constant 0 : i32
    %109 = arith.cmpi slt, %102, %c0_i32_48 : i32
    %110 = vector.broadcast %109 : i1 to vector<64x1xi1>
    %111 = vector.broadcast %110 : vector<64x1xi1> to vector<64x1xi1>
    %112 = arith.xori %108, %111 : vector<64x1xi1>
    %113 = arith.andi %112, %106 : vector<64x1xi1>
    %114 = vector.broadcast %102 : i32 to vector<64x1xi32>
    %115 = arith.addi %104, %114 : vector<64x1xi32>
    %116 = arith.select %113, %115, %104 : vector<64x1xi1>, vector<64x1xi32>
    %c7_i32 = arith.constant 7 : i32
    %117 = vector.broadcast %c7_i32 : i32 to vector<64x1xi32>
    %118 = arith.cmpi ne, %116, %117 : vector<64x1xi32>
    %c9_49 = arith.constant 9 : index
    %c0_50 = arith.constant 0 : index
    %119 = vector.load %arg38[%c9_49, %c0_50] : memref<144x128xf32, #tpu.memory_space<vmem>>, vector<64x64xf32>
    %cst_51 = arith.constant 0.000000e+00 : f32
    %120 = vector.shape_cast %118 : vector<64x1xi1> to vector<64x1xi1>
    %121 = vector.broadcast %120 : vector<64x1xi1> to vector<64x64xi1>
    %122 = vector.broadcast %cst_51 : f32 to vector<64x64xf32>
    %123 = arith.select %121, %119, %122 : vector<64x64xi1>, vector<64x64xf32>
    %c0_52 = arith.constant 0 : index
    %c0_53 = arith.constant 0 : index
    %124 = vector.load %arg6[%c0_52, %c0_53] : memref<192x128xf32, #tpu.memory_space<vmem>>, vector<64x128xf32>
    %cst_54 = arith.constant dense<0.000000e+00> : vector<64x128xf32>
    %125 = tpu.matmul %100, %124, %cst_54 {dimension_numbers = #tpu.dot_dimension_numbers<[1], [0], [0], [1], [0, 0, 1, 1], [], []>} : vector<64x64xf32>, vector<64x128xf32>, vector<64x128xf32> -> vector<64x128xf32>
    %c64 = arith.constant 64 : index
    %c0_55 = arith.constant 0 : index
    %126 = vector.load %arg6[%c64, %c0_55] : memref<192x128xf32, #tpu.memory_space<vmem>>, vector<64x128xf32>
    %cst_56 = arith.constant dense<0.000000e+00> : vector<64x128xf32>
    %127 = tpu.matmul %75, %126, %cst_56 {dimension_numbers = #tpu.dot_dimension_numbers<[1], [0], [0], [1], [0, 0, 1, 1], [], []>} : vector<64x64xf32>, vector<64x128xf32>, vector<64x128xf32> -> vector<64x128xf32>
    %128 = arith.addf %125, %127 : vector<64x128xf32>
    %c128 = arith.constant 128 : index
    %c0_57 = arith.constant 0 : index
    %129 = vector.load %arg6[%c128, %c0_57] : memref<192x128xf32, #tpu.memory_space<vmem>>, vector<64x128xf32>
    %cst_58 = arith.constant dense<0.000000e+00> : vector<64x128xf32>
    %130 = tpu.matmul %123, %129, %cst_58 {dimension_numbers = #tpu.dot_dimension_numbers<[1], [0], [0], [1], [0, 0, 1, 1], [], []>} : vector<64x64xf32>, vector<64x128xf32>, vector<64x128xf32> -> vector<64x128xf32>
    %131 = arith.addf %128, %130 : vector<64x128xf32>
    %c0_59 = arith.constant 0 : index
    %c0_60 = arith.constant 0 : index
    %132 = vector.load %arg7[%c0_59, %c0_60] : memref<1x128xf32, #tpu.memory_space<vmem>>, vector<1x128xf32>
    %133 = vector.broadcast %132 : vector<1x128xf32> to vector<64x128xf32>
    %134 = arith.addf %131, %133 : vector<64x128xf32>
    %c0_61 = arith.constant 0 : index
    %c0_62 = arith.constant 0 : index
    %135 = vector.load %arg14[%c0_61, %c0_62] : memref<128x128xf32, #tpu.memory_space<vmem>>, vector<128x128xf32>
    %cst_63 = arith.constant dense<0.000000e+00> : vector<64x128xf32>
    %136 = tpu.matmul %134, %135, %cst_63 {dimension_numbers = #tpu.dot_dimension_numbers<[1], [0], [0], [1], [0, 0, 1, 1], [], []>} : vector<64x128xf32>, vector<128x128xf32>, vector<64x128xf32> -> vector<64x128xf32>
    %137 = vector.extract_strided_slice %136 {offsets = [0, 0], sizes = [64, 64], strides = [1, 1]} : vector<64x128xf32> to vector<64x64xf32>
    %138 = vector.extract_strided_slice %136 {offsets = [0, 64], sizes = [64, 64], strides = [1, 1]} : vector<64x128xf32> to vector<64x64xf32>
    %139 = arith.maximumf %137, %138 : vector<64x64xf32>
    %c0_64 = arith.constant 0 : index
    %c0_65 = arith.constant 0 : index
    %140 = vector.load %arg15[%c0_64, %c0_65] : memref<64x64xf32, #tpu.memory_space<vmem>>, vector<64x64xf32>
    %cst_66 = arith.constant dense<0.000000e+00> : vector<64x64xf32>
    %141 = tpu.matmul %140, %139, %cst_66 {dimension_numbers = #tpu.dot_dimension_numbers<[1], [0], [0], [1], [0, 0, 1, 1], [], []>} : vector<64x64xf32>, vector<64x64xf32>, vector<64x64xf32> -> vector<64x64xf32>
    %142 = vector.extract_strided_slice %141 {offsets = [0, 0], sizes = [32, 64], strides = [1, 1]} : vector<64x64xf32> to vector<32x64xf32>
    %143 = vector.extract_strided_slice %141 {offsets = [32, 0], sizes = [32, 64], strides = [1, 1]} : vector<64x64xf32> to vector<32x64xf32>
    %144 = arith.maximumf %142, %143 : vector<32x64xf32>
    %c0_67 = arith.constant 0 : index
    %145 = memref.load %arg8[%c0_67] : memref<1xf32, #tpu.memory_space<smem>>
    %cst_68 = arith.constant 0.000000e+00 : f32
    %146 = vector.broadcast %cst_68 : f32 to vector<32x64xf32>
    %147 = arith.cmpf ogt, %144, %146 : vector<32x64xf32>
    %148 = vector.broadcast %145 : f32 to vector<32x64xf32>
    %149 = arith.mulf %148, %144 : vector<32x64xf32>
    %150 = arith.select %147, %144, %149 : vector<32x64xi1>, vector<32x64xf32>
    %c8_69 = arith.constant 8 : index
    %c0_70 = arith.constant 0 : index
    %151 = vector.load %arg38[%c8_69, %c0_70] : memref<144x128xf32, #tpu.memory_space<vmem>>, vector<32x64xf32>
    tpu.vector_store %arg38[%c8_69, %c0_70], %150 {strides = array<i32>} : memref<144x128xf32, #tpu.memory_space<vmem>>, vector<32x64xf32>,
    %152 = tpu.iota {dimensions = array<i32: 0>} : vector<32x1xi32>
    %c4_i32 = arith.constant 4 : i32
    %c0_i32_71 = arith.constant 0 : i32
    %153 = arith.cmpi eq, %c4_i32, %c0_i32_71 : i32
    %c1_i32_72 = arith.constant 1 : i32
    %154 = arith.select %153, %c1_i32_72, %c4_i32 : i32
    %155 = vector.broadcast %154 : i32 to vector<32x1xi32>
    %156 = arith.remsi %152, %155 : vector<32x1xi32>
    %c0_i32_73 = arith.constant 0 : i32
    %157 = vector.broadcast %c0_i32_73 : i32 to vector<32x1xi32>
    %158 = arith.cmpi ne, %156, %157 : vector<32x1xi32>
    %c0_i32_74 = arith.constant 0 : i32
    %159 = vector.broadcast %c0_i32_74 : i32 to vector<32x1xi32>
    %160 = arith.cmpi slt, %156, %159 : vector<32x1xi32>
    %c0_i32_75 = arith.constant 0 : i32
    %161 = arith.cmpi slt, %154, %c0_i32_75 : i32
    %162 = vector.broadcast %161 : i1 to vector<32x1xi1>
    %163 = vector.broadcast %162 : vector<32x1xi1> to vector<32x1xi1>
    %164 = arith.xori %160, %163 : vector<32x1xi1>
    %165 = arith.andi %164, %158 : vector<32x1xi1>
    %166 = vector.broadcast %154 : i32 to vector<32x1xi32>
    %167 = arith.addi %156, %166 : vector<32x1xi32>
    %168 = arith.select %165, %167, %156 : vector<32x1xi1>, vector<32x1xi32>
    %c0_i32_76 = arith.constant 0 : i32
    %169 = vector.broadcast %c0_i32_76 : i32 to vector<32x1xi32>
    %170 = arith.cmpi ne, %168, %169 : vector<32x1xi32>
    %c7_77 = arith.constant 7 : index
    %c0_78 = arith.constant 0 : index
    %171 = vector.load %arg38[%c7_77, %c0_78] : memref<144x128xf32, #tpu.memory_space<vmem>>, vector<32x64xf32>
    %cst_79 = arith.constant 0.000000e+00 : f32
    %172 = vector.shape_cast %170 : vector<32x1xi1> to vector<32x1xi1>
    %173 = vector.broadcast %172 : vector<32x1xi1> to vector<32x64xi1>
    %174 = vector.broadcast %cst_79 : f32 to vector<32x64xf32>
    %175 = arith.select %173, %171, %174 : vector<32x64xi1>, vector<32x64xf32>
    %c4_i32_80 = arith.constant 4 : i32
    %c0_i32_81 = arith.constant 0 : i32
    %176 = arith.cmpi eq, %c4_i32_80, %c0_i32_81 : i32
    %c1_i32_82 = arith.constant 1 : i32
    %177 = arith.select %176, %c1_i32_82, %c4_i32_80 : i32
    %178 = vector.broadcast %177 : i32 to vector<32x1xi32>
    %179 = arith.remsi %152, %178 : vector<32x1xi32>
    %c0_i32_83 = arith.constant 0 : i32
    %180 = vector.broadcast %c0_i32_83 : i32 to vector<32x1xi32>
    %181 = arith.cmpi ne, %179, %180 : vector<32x1xi32>
    %c0_i32_84 = arith.constant 0 : i32
    %182 = vector.broadcast %c0_i32_84 : i32 to vector<32x1xi32>
    %183 = arith.cmpi slt, %179, %182 : vector<32x1xi32>
    %c0_i32_85 = arith.constant 0 : i32
    %184 = arith.cmpi slt, %177, %c0_i32_85 : i32
    %185 = vector.broadcast %184 : i1 to vector<32x1xi1>
    %186 = vector.broadcast %185 : vector<32x1xi1> to vector<32x1xi1>
    %187 = arith.xori %183, %186 : vector<32x1xi1>
    %188 = arith.andi %187, %181 : vector<32x1xi1>
    %189 = vector.broadcast %177 : i32 to vector<32x1xi32>
    %190 = arith.addi %179, %189 : vector<32x1xi32>
    %191 = arith.select %188, %190, %179 : vector<32x1xi1>, vector<32x1xi32>
    %c3_i32 = arith.constant 3 : i32
    %192 = vector.broadcast %c3_i32 : i32 to vector<32x1xi32>
    %193 = arith.cmpi ne, %191, %192 : vector<32x1xi32>
    %c9_86 = arith.constant 9 : index
    %c0_87 = arith.constant 0 : index
    %194 = vector.load %arg38[%c9_86, %c0_87] : memref<144x128xf32, #tpu.memory_space<vmem>>, vector<32x64xf32>
    %cst_88 = arith.constant 0.000000e+00 : f32
    %195 = vector.shape_cast %193 : vector<32x1xi1> to vector<32x1xi1>
    %196 = vector.broadcast %195 : vector<32x1xi1> to vector<32x64xi1>
    %197 = vector.broadcast %cst_88 : f32 to vector<32x64xf32>
    %198 = arith.select %196, %194, %197 : vector<32x64xi1>, vector<32x64xf32>
    %c0_89 = arith.constant 0 : index
    %c0_90 = arith.constant 0 : index
    %199 = vector.load %arg9[%c0_89, %c0_90] : memref<192x128xf32, #tpu.memory_space<vmem>>, vector<64x128xf32>
    %cst_91 = arith.constant dense<0.000000e+00> : vector<32x128xf32>
    %200 = tpu.matmul %175, %199, %cst_91 {dimension_numbers = #tpu.dot_dimension_numbers<[1], [0], [0], [1], [0, 0, 1, 1], [], []>} : vector<32x64xf32>, vector<64x128xf32>, vector<32x128xf32> -> vector<32x128xf32>
    %c64_92 = arith.constant 64 : index
    %c0_93 = arith.constant 0 : index
    %201 = vector.load %arg9[%c64_92, %c0_93] : memref<192x128xf32, #tpu.memory_space<vmem>>, vector<64x128xf32>
    %cst_94 = arith.constant dense<0.000000e+00> : vector<32x128xf32>
    %202 = tpu.matmul %150, %201, %cst_94 {dimension_numbers = #tpu.dot_dimension_numbers<[1], [0], [0], [1], [0, 0, 1, 1], [], []>} : vector<32x64xf32>, vector<64x128xf32>, vector<32x128xf32> -> vector<32x128xf32>
    %203 = arith.addf %200, %202 : vector<32x128xf32>
    %c128_95 = arith.constant 128 : index
    %c0_96 = arith.constant 0 : index
    %204 = vector.load %arg9[%c128_95, %c0_96] : memref<192x128xf32, #tpu.memory_space<vmem>>, vector<64x128xf32>
    %cst_97 = arith.constant dense<0.000000e+00> : vector<32x128xf32>
    %205 = tpu.matmul %198, %204, %cst_97 {dimension_numbers = #tpu.dot_dimension_numbers<[1], [0], [0], [1], [0, 0, 1, 1], [], []>} : vector<32x64xf32>, vector<64x128xf32>, vector<32x128xf32> -> vector<32x128xf32>
    %206 = arith.addf %203, %205 : vector<32x128xf32>
    %c0_98 = arith.constant 0 : index
    %c0_99 = arith.constant 0 : index
    %207 = vector.load %arg10[%c0_98, %c0_99] : memref<1x128xf32, #tpu.memory_space<vmem>>, vector<1x128xf32>
    %208 = vector.broadcast %207 : vector<1x128xf32> to vector<32x128xf32>
    %209 = arith.addf %206, %208 : vector<32x128xf32>
    %c0_100 = arith.constant 0 : index
    %210 = memref.load %arg11[%c0_100] : memref<1xf32, #tpu.memory_space<smem>>
    %cst_101 = arith.constant 0.000000e+00 : f32
    %211 = vector.broadcast %cst_101 : f32 to vector<32x128xf32>
    %212 = arith.cmpf ogt, %209, %211 : vector<32x128xf32>
    %213 = vector.broadcast %210 : f32 to vector<32x128xf32>
    %214 = arith.mulf %213, %209 : vector<32x128xf32>
    %215 = arith.select %212, %209, %214 : vector<32x128xi1>, vector<32x128xf32>
    %c0_102 = arith.constant 0 : index
    %c0_103 = arith.constant 0 : index
    %216 = vector.load %arg16[%c0_102, %c0_103] : memref<128x128xf32, #tpu.memory_space<vmem>>, vector<128x128xf32>
    %cst_104 = arith.constant dense<0.000000e+00> : vector<32x128xf32>
    %217 = tpu.matmul %215, %216, %cst_104 {dimension_numbers = #tpu.dot_dimension_numbers<[1], [0], [0], [1], [0, 0, 1, 1], [], []>} : vector<32x128xf32>, vector<128x128xf32>, vector<32x128xf32> -> vector<32x128xf32>
    %218 = vector.extract_strided_slice %217 {offsets = [0, 0], sizes = [32, 64], strides = [1, 1]} : vector<32x128xf32> to vector<32x64xf32>
    %219 = vector.extract_strided_slice %217 {offsets = [0, 64], sizes = [32, 64], strides = [1, 1]} : vector<32x128xf32> to vector<32x64xf32>
    %220 = arith.addf %218, %219 : vector<32x64xf32>
    %cst_105 = arith.constant 5.000000e-01 : f32
    %221 = vector.broadcast %cst_105 : f32 to vector<32x64xf32>
    %222 = arith.mulf %220, %221 : vector<32x64xf32>
    %c0_106 = arith.constant 0 : index
    %c0_107 = arith.constant 0 : index
    %223 = vector.load %arg17[%c0_106, %c0_107] : memref<32x32xf32, #tpu.memory_space<vmem>>, vector<32x32xf32>
    %cst_108 = arith.constant dense<0.000000e+00> : vector<32x64xf32>
    %224 = tpu.matmul %223, %222, %cst_108 {dimension_numbers = #tpu.dot_dimension_numbers<[1], [0], [0], [1], [0, 0, 1, 1], [], []>} : vector<32x32xf32>, vector<32x64xf32>, vector<32x64xf32> -> vector<32x64xf32>
    %225 = vector.extract_strided_slice %224 {offsets = [0, 0], sizes = [16, 64], strides = [1, 1]} : vector<32x64xf32> to vector<16x64xf32>
    %226 = vector.extract_strided_slice %224 {offsets = [16, 0], sizes = [16, 64], strides = [1, 1]} : vector<32x64xf32> to vector<16x64xf32>
    %227 = arith.addf %225, %226 : vector<16x64xf32>
    %cst_109 = arith.constant 5.000000e-01 : f32
    %228 = vector.broadcast %cst_109 : f32 to vector<16x64xf32>
    %229 = arith.mulf %227, %228 : vector<16x64xf32>
    %c0_110 = arith.constant 0 : index
    %c0_111 = arith.constant 0 : index
    %230 = vector.load %arg18[%c0_110, %c0_111] : memref<16x16xf32, #tpu.memory_space<vmem>>, vector<16x16xf32>
    %cst_112 = arith.constant dense<0.000000e+00> : vector<16x64xf32>
    %231 = tpu.matmul %230, %229, %cst_112 {dimension_numbers = #tpu.dot_dimension_numbers<[1], [0], [0], [1], [0, 0, 1, 1], [], []>} : vector<16x16xf32>, vector<16x64xf32>, vector<16x64xf32> -> vector<16x64xf32>
    %232 = vector.extract_strided_slice %231 {offsets = [0, 0], sizes = [8, 64], strides = [1, 1]} : vector<16x64xf32> to vector<8x64xf32>
    %c0_113 = arith.constant 0 : index
    %c0_114 = arith.constant 0 : index
    %233 = vector.load %arg19[%c0_113, %c0_114] : memref<64x32xf32, #tpu.memory_space<vmem>>, vector<64x32xf32>
    %cst_115 = arith.constant dense<0.000000e+00> : vector<8x32xf32>
    %234 = tpu.matmul %232, %233, %cst_115 {dimension_numbers = #tpu.dot_dimension_numbers<[1], [0], [0], [1], [0, 0, 1, 1], [], []>} : vector<8x64xf32>, vector<64x32xf32>, vector<8x32xf32> -> vector<8x32xf32>
    %235 = vector.extract_strided_slice %231 {offsets = [8, 0], sizes = [8, 64], strides = [1, 1]} : vector<16x64xf32> to vector<8x64xf32>
    %c0_116 = arith.constant 0 : index
    %c0_117 = arith.constant 0 : index
    %236 = vector.load %arg20[%c0_116, %c0_117] : memref<64x32xf32, #tpu.memory_space<vmem>>, vector<64x32xf32>
    %cst_118 = arith.constant dense<0.000000e+00> : vector<8x32xf32>
    %237 = tpu.matmul %235, %236, %cst_118 {dimension_numbers = #tpu.dot_dimension_numbers<[1], [0], [0], [1], [0, 0, 1, 1], [], []>} : vector<8x64xf32>, vector<64x32xf32>, vector<8x32xf32> -> vector<8x32xf32>
    %238 = arith.addf %234, %237 : vector<8x32xf32>
    %c0_119 = arith.constant 0 : index
    %c0_120 = arith.constant 0 : index
    %239 = vector.load %arg21[%c0_119, %c0_120] : memref<1x32xf32, #tpu.memory_space<vmem>>, vector<1x32xf32>
    %240 = vector.broadcast %239 : vector<1x32xf32> to vector<8x32xf32>
    %241 = arith.addf %238, %240 : vector<8x32xf32>
    %242 = arith.truncf %241 : vector<8x32xf32> to vector<8x32xbf16>
    %c0_121 = arith.constant 0 : index
    %c0_122 = arith.constant 0 : index
    %243 = vector.load %arg23[%c0_121, %c0_122] : memref<32x512xbf16, #tpu.memory_space<vmem>>, vector<32x512xbf16>
    %cst_123 = arith.constant dense<0.000000e+00> : vector<8x512xf32>
    %244 = tpu.matmul %242, %243, %cst_123 {dimension_numbers = #tpu.dot_dimension_numbers<[1], [0], [0], [1], [0, 0, 1, 1], [], []>} : vector<8x32xbf16>, vector<32x512xbf16>, vector<8x512xf32> -> vector<8x512xf32>
    %c0_124 = arith.constant 0 : index
    %c0_125 = arith.constant 0 : index
    %245 = vector.load %arg24[%c0_124, %c0_125] : memref<1x512xf32, #tpu.memory_space<vmem>>, vector<1x512xf32>
    %246 = vector.broadcast %245 : vector<1x512xf32> to vector<8x512xf32>
    %247 = arith.addf %244, %246 : vector<8x512xf32>
    %c0_126 = arith.constant 0 : index
    %c0_127 = arith.constant 0 : index
    %248 = vector.load %arg1[%c0_126, %c0_127] : memref<8x4xf32, #tpu.memory_space<vmem>>, vector<8x4xf32>
    %249 = vector.extract_strided_slice %248 {offsets = [0, 0], sizes = [8, 1], strides = [1, 1]} : vector<8x4xf32> to vector<8x1xf32>
    %c0_128 = arith.constant 0 : index
    %c0_129 = arith.constant 0 : index
    %250 = vector.load %arg22[%c0_128, %c0_129] : memref<4x512xf32, #tpu.memory_space<vmem>>, vector<1x512xf32>
    %251 = vector.broadcast %249 : vector<8x1xf32> to vector<8x512xf32>
    %252 = vector.broadcast %250 : vector<1x512xf32> to vector<8x512xf32>
    %253 = arith.mulf %251, %252 : vector<8x512xf32>
    %254 = arith.addf %247, %253 : vector<8x512xf32>
    %255 = vector.extract_strided_slice %248 {offsets = [0, 1], sizes = [8, 1], strides = [1, 1]} : vector<8x4xf32> to vector<8x1xf32>
    %c1 = arith.constant 1 : index
    %c0_130 = arith.constant 0 : index
    %256 = vector.load %arg22[%c1, %c0_130] : memref<4x512xf32, #tpu.memory_space<vmem>>, vector<1x512xf32>
    %257 = vector.broadcast %255 : vector<8x1xf32> to vector<8x512xf32>
    %258 = vector.broadcast %256 : vector<1x512xf32> to vector<8x512xf32>
    %259 = arith.mulf %257, %258 : vector<8x512xf32>
    %260 = arith.addf %254, %259 : vector<8x512xf32>
    %261 = vector.extract_strided_slice %248 {offsets = [0, 2], sizes = [8, 1], strides = [1, 1]} : vector<8x4xf32> to vector<8x1xf32>
    %c2 = arith.constant 2 : index
    %c0_131 = arith.constant 0 : index
    %262 = vector.load %arg22[%c2, %c0_131] : memref<4x512xf32, #tpu.memory_space<vmem>>, vector<1x512xf32>
    %263 = vector.broadcast %261 : vector<8x1xf32> to vector<8x512xf32>
    %264 = vector.broadcast %262 : vector<1x512xf32> to vector<8x512xf32>
    %265 = arith.mulf %263, %264 : vector<8x512xf32>
    %266 = arith.addf %260, %265 : vector<8x512xf32>
    %267 = vector.extract_strided_slice %248 {offsets = [0, 3], sizes = [8, 1], strides = [1, 1]} : vector<8x4xf32> to vector<8x1xf32>
    %c3 = arith.constant 3 : index
    %c0_132 = arith.constant 0 : index
    %268 = vector.load %arg22[%c3, %c0_132] : memref<4x512xf32, #tpu.memory_space<vmem>>, vector<1x512xf32>
    %269 = vector.broadcast %267 : vector<8x1xf32> to vector<8x512xf32>
    %270 = vector.broadcast %268 : vector<1x512xf32> to vector<8x512xf32>
    %271 = arith.mulf %269, %270 : vector<8x512xf32>
    %272 = arith.addf %266, %271 : vector<8x512xf32>
    %c0_133 = arith.constant 0 : index
    %273 = memref.load %arg25[%c0_133] : memref<1xf32, #tpu.memory_space<smem>>
    %cst_134 = arith.constant 0.000000e+00 : f32
    %274 = vector.broadcast %cst_134 : f32 to vector<8x512xf32>
    %275 = arith.cmpf ogt, %272, %274 : vector<8x512xf32>
    %276 = vector.broadcast %273 : f32 to vector<8x512xf32>
    %277 = arith.mulf %276, %272 : vector<8x512xf32>
    %278 = arith.select %275, %272, %277 : vector<8x512xi1>, vector<8x512xf32>
    %279 = arith.truncf %278 : vector<8x512xf32> to vector<8x512xbf16>
    %c0_135 = arith.constant 0 : index
    %c0_136 = arith.constant 0 : index
    %280 = vector.load %arg26[%c0_135, %c0_136] : memref<512x256xbf16, #tpu.memory_space<vmem>>, vector<512x256xbf16>
    %cst_137 = arith.constant dense<0.000000e+00> : vector<8x256xf32>
    %281 = tpu.matmul %279, %280, %cst_137 {dimension_numbers = #tpu.dot_dimension_numbers<[1], [0], [0], [1], [0, 0, 1, 1], [], []>} : vector<8x512xbf16>, vector<512x256xbf16>, vector<8x256xf32> -> vector<8x256xf32>
    %c0_138 = arith.constant 0 : index
    %c0_139 = arith.constant 0 : index
    %282 = vector.load %arg27[%c0_138, %c0_139] : memref<1x256xf32, #tpu.memory_space<vmem>>, vector<1x256xf32>
    %283 = vector.broadcast %282 : vector<1x256xf32> to vector<8x256xf32>
    %284 = arith.addf %281, %283 : vector<8x256xf32>
    %c0_140 = arith.constant 0 : index
    %285 = memref.load %arg28[%c0_140] : memref<1xf32, #tpu.memory_space<smem>>
    %cst_141 = arith.constant 0.000000e+00 : f32
    %286 = vector.broadcast %cst_141 : f32 to vector<8x256xf32>
    %287 = arith.cmpf ogt, %284, %286 : vector<8x256xf32>
    %288 = vector.broadcast %285 : f32 to vector<8x256xf32>
    %289 = arith.mulf %288, %284 : vector<8x256xf32>
    %290 = arith.select %287, %284, %289 : vector<8x256xi1>, vector<8x256xf32>
    %291 = arith.truncf %290 : vector<8x256xf32> to vector<8x256xbf16>
    %c0_142 = arith.constant 0 : index
    %c0_143 = arith.constant 0 : index
    %292 = vector.load %arg29[%c0_142, %c0_143] : memref<256x128xbf16, #tpu.memory_space<vmem>>, vector<256x128xbf16>
    %cst_144 = arith.constant dense<0.000000e+00> : vector<8x128xf32>
    %293 = tpu.matmul %291, %292, %cst_144 {dimension_numbers = #tpu.dot_dimension_numbers<[1], [0], [0], [1], [0, 0, 1, 1], [], []>} : vector<8x256xbf16>, vector<256x128xbf16>, vector<8x128xf32> -> vector<8x128xf32>
    %c0_145 = arith.constant 0 : index
    %c0_146 = arith.constant 0 : index
    %294 = vector.load %arg30[%c0_145, %c0_146] : memref<1x128xf32, #tpu.memory_space<vmem>>, vector<1x128xf32>
    %295 = vector.broadcast %294 : vector<1x128xf32> to vector<8x128xf32>
    %296 = arith.addf %293, %295 : vector<8x128xf32>
    %c0_147 = arith.constant 0 : index
    %297 = memref.load %arg31[%c0_147] : memref<1xf32, #tpu.memory_space<smem>>
    %cst_148 = arith.constant 0.000000e+00 : f32
    %298 = vector.broadcast %cst_148 : f32 to vector<8x128xf32>
    %299 = arith.cmpf ogt, %296, %298 : vector<8x128xf32>
    %300 = vector.broadcast %297 : f32 to vector<8x128xf32>
    %301 = arith.mulf %300, %296 : vector<8x128xf32>
    %302 = arith.select %299, %296, %301 : vector<8x128xi1>, vector<8x128xf32>
    %303 = arith.truncf %302 : vector<8x128xf32> to vector<8x128xbf16>
    %c0_149 = arith.constant 0 : index
    %c0_150 = arith.constant 0 : index
    %304 = vector.load %arg32[%c0_149, %c0_150] : memref<128x64xbf16, #tpu.memory_space<vmem>>, vector<128x64xbf16>
    %cst_151 = arith.constant dense<0.000000e+00> : vector<8x64xf32>
    %305 = tpu.matmul %303, %304, %cst_151 {dimension_numbers = #tpu.dot_dimension_numbers<[1], [0], [0], [1], [0, 0, 1, 1], [], []>} : vector<8x128xbf16>, vector<128x64xbf16>, vector<8x64xf32> -> vector<8x64xf32>
    %c0_152 = arith.constant 0 : index
    %c0_153 = arith.constant 0 : index
    %306 = vector.load %arg33[%c0_152, %c0_153] : memref<1x64xf32, #tpu.memory_space<vmem>>, vector<1x64xf32>
    %307 = vector.broadcast %306 : vector<1x64xf32> to vector<8x64xf32>
    %308 = arith.addf %305, %307 : vector<8x64xf32>
    %c0_154 = arith.constant 0 : index
    %309 = memref.load %arg34[%c0_154] : memref<1xf32, #tpu.memory_space<smem>>
    %cst_155 = arith.constant 0.000000e+00 : f32
    %310 = vector.broadcast %cst_155 : f32 to vector<8x64xf32>
    %311 = arith.cmpf ogt, %308, %310 : vector<8x64xf32>
    %312 = vector.broadcast %309 : f32 to vector<8x64xf32>
    %313 = arith.mulf %312, %308 : vector<8x64xf32>
    %314 = arith.select %311, %308, %313 : vector<8x64xi1>, vector<8x64xf32>
    %315 = arith.truncf %314 : vector<8x64xf32> to vector<8x64xbf16>
    %c0_156 = arith.constant 0 : index
    %c0_157 = arith.constant 0 : index
    %316 = vector.load %arg35[%c0_156, %c0_157] : memref<64x128xbf16, #tpu.memory_space<vmem>>, vector<64x128xbf16>
    %cst_158 = arith.constant dense<0.000000e+00> : vector<8x128xf32>
    %317 = tpu.matmul %315, %316, %cst_158 {dimension_numbers = #tpu.dot_dimension_numbers<[1], [0], [0], [1], [0, 0, 1, 1], [], []>} : vector<8x64xbf16>, vector<64x128xbf16>, vector<8x128xf32> -> vector<8x128xf32>
    %c0_159 = arith.constant 0 : index
    %c0_160 = arith.constant 0 : index
    %318 = vector.load %arg36[%c0_159, %c0_160] : memref<1x128xf32, #tpu.memory_space<vmem>>, vector<1x128xf32>
    %319 = vector.broadcast %318 : vector<1x128xf32> to vector<8x128xf32>
    %320 = arith.addf %317, %319 : vector<8x128xf32>
    %c0_161 = arith.constant 0 : index
    %c0_162 = arith.constant 0 : index
    %321 = vector.load %arg37[%c0_161, %c0_162] : memref<8x128xf32, #tpu.memory_space<vmem>>, vector<8x128xf32>
    tpu.vector_store %arg37[%c0_161, %c0_162], %320 {strides = array<i32>} : memref<8x128xf32, #tpu.memory_space<vmem>>, vector<8x128xf32>,
    return
  }
  func.func @transform_0(%arg0: i32) -> (i32, i32) {
    %c0_i32 = arith.constant 0 : i32
    %c0_i32_0 = arith.constant 0 : i32
    return %arg0, %c0_i32 : i32, i32
  }
  func.func @transform_1(%arg0: i32) -> (i32, i32) {
    %c0_i32 = arith.constant 0 : i32
    %c0_i32_0 = arith.constant 0 : i32
    return %arg0, %c0_i32 : i32, i32
  }
  func.func @transform_2(%arg0: i32) -> (i32, i32) {
    %c0_i32 = arith.constant 0 : i32
    %c0_i32_0 = arith.constant 0 : i32
    %c0_i32_1 = arith.constant 0 : i32
    return %c0_i32, %c0_i32_0 : i32, i32
  }
  func.func @transform_3(%arg0: i32) -> (i32, i32) {
    %c0_i32 = arith.constant 0 : i32
    %c0_i32_0 = arith.constant 0 : i32
    %c0_i32_1 = arith.constant 0 : i32
    return %c0_i32, %c0_i32_0 : i32, i32
  }
  func.func @transform_4(%arg0: i32) -> i32 {
    %c0_i32 = arith.constant 0 : i32
    %c0_i32_0 = arith.constant 0 : i32
    return %c0_i32 : i32
  }
  func.func @transform_5(%arg0: i32) -> (i32, i32) {
    %c0_i32 = arith.constant 0 : i32
    %c0_i32_0 = arith.constant 0 : i32
    %c0_i32_1 = arith.constant 0 : i32
    return %c0_i32, %c0_i32_0 : i32, i32
  }
  func.func @transform_6(%arg0: i32) -> (i32, i32) {
    %c0_i32 = arith.constant 0 : i32
    %c0_i32_0 = arith.constant 0 : i32
    %c0_i32_1 = arith.constant 0 : i32
    return %c0_i32, %c0_i32_0 : i32, i32
  }
  func.func @transform_7(%arg0: i32) -> i32 {
    %c0_i32 = arith.constant 0 : i32
    %c0_i32_0 = arith.constant 0 : i32
    return %c0_i32 : i32
  }
  func.func @transform_8(%arg0: i32) -> (i32, i32) {
    %c0_i32 = arith.constant 0 : i32
    %c0_i32_0 = arith.constant 0 : i32
    %c0_i32_1 = arith.constant 0 : i32
    return %c0_i32, %c0_i32_0 : i32, i32
  }
  func.func @transform_9(%arg0: i32) -> (i32, i32) {
    %c0_i32 = arith.constant 0 : i32
    %c0_i32_0 = arith.constant 0 : i32
    %c0_i32_1 = arith.constant 0 : i32
    return %c0_i32, %c0_i32_0 : i32, i32
  }
  func.func @transform_10(%arg0: i32) -> i32 {
    %c0_i32 = arith.constant 0 : i32
    %c0_i32_0 = arith.constant 0 : i32
    return %c0_i32 : i32
  }
  func.func @transform_11(%arg0: i32) -> (i32, i32) {
    %c0_i32 = arith.constant 0 : i32
    %c0_i32_0 = arith.constant 0 : i32
    %c0_i32_1 = arith.constant 0 : i32
    return %c0_i32, %c0_i32_0 : i32, i32
  }
  func.func @transform_12(%arg0: i32) -> (i32, i32) {
    %c0_i32 = arith.constant 0 : i32
    %c0_i32_0 = arith.constant 0 : i32
    %c0_i32_1 = arith.constant 0 : i32
    return %c0_i32, %c0_i32_0 : i32, i32
  }
  func.func @transform_13(%arg0: i32) -> (i32, i32) {
    %c0_i32 = arith.constant 0 : i32
    %c0_i32_0 = arith.constant 0 : i32
    %c0_i32_1 = arith.constant 0 : i32
    return %c0_i32, %c0_i32_0 : i32, i32
  }
  func.func @transform_14(%arg0: i32) -> (i32, i32) {
    %c0_i32 = arith.constant 0 : i32
    %c0_i32_0 = arith.constant 0 : i32
    %c0_i32_1 = arith.constant 0 : i32
    return %c0_i32, %c0_i32_0 : i32, i32
  }
  func.func @transform_15(%arg0: i32) -> (i32, i32) {
    %c0_i32 = arith.constant 0 : i32
    %c0_i32_0 = arith.constant 0 : i32
    %c0_i32_1 = arith.constant 0 : i32
    return %c0_i32, %c0_i32_0 : i32, i32
  }
  func.func @transform_16(%arg0: i32) -> (i32, i32) {
    %c0_i32 = arith.constant 0 : i32
    %c0_i32_0 = arith.constant 0 : i32
    %c0_i32_1 = arith.constant 0 : i32
    return %c0_i32, %c0_i32_0 : i32, i32
  }
  func.func @transform_17(%arg0: i32) -> (i32, i32) {
    %c0_i32 = arith.constant 0 : i32
    %c0_i32_0 = arith.constant 0 : i32
    %c0_i32_1 = arith.constant 0 : i32
    return %c0_i32, %c0_i32_0 : i32, i32
  }
  func.func @transform_18(%arg0: i32) -> (i32, i32) {
    %c0_i32 = arith.constant 0 : i32
    %c0_i32_0 = arith.constant 0 : i32
    %c0_i32_1 = arith.constant 0 : i32
    return %c0_i32, %c0_i32_0 : i32, i32
  }
  func.func @transform_19(%arg0: i32) -> (i32, i32) {
    %c0_i32 = arith.constant 0 : i32
    %c0_i32_0 = arith.constant 0 : i32
    %c0_i32_1 = arith.constant 0 : i32
    return %c0_i32, %c0_i32_0 : i32, i32
  }
  func.func @transform_20(%arg0: i32) -> (i32, i32) {
    %c0_i32 = arith.constant 0 : i32
    %c0_i32_0 = arith.constant 0 : i32
    %c0_i32_1 = arith.constant 0 : i32
    return %c0_i32, %c0_i32_0 : i32, i32
  }
  func.func @transform_21(%arg0: i32) -> (i32, i32) {
    %c0_i32 = arith.constant 0 : i32
    %c0_i32_0 = arith.constant 0 : i32
    %c0_i32_1 = arith.constant 0 : i32
    return %c0_i32, %c0_i32_0 : i32, i32
  }
  func.func @transform_22(%arg0: i32) -> (i32, i32) {
    %c0_i32 = arith.constant 0 : i32
    %c0_i32_0 = arith.constant 0 : i32
    %c0_i32_1 = arith.constant 0 : i32
    return %c0_i32, %c0_i32_0 : i32, i32
  }
  func.func @transform_23(%arg0: i32) -> (i32, i32) {
    %c0_i32 = arith.constant 0 : i32
    %c0_i32_0 = arith.constant 0 : i32
    %c0_i32_1 = arith.constant 0 : i32
    return %c0_i32, %c0_i32_0 : i32, i32
  }
  func.func @transform_24(%arg0: i32) -> i32 {
    %c0_i32 = arith.constant 0 : i32
    %c0_i32_0 = arith.constant 0 : i32
    return %c0_i32 : i32
  }
  func.func @transform_25(%arg0: i32) -> (i32, i32) {
    %c0_i32 = arith.constant 0 : i32
    %c0_i32_0 = arith.constant 0 : i32
    %c0_i32_1 = arith.constant 0 : i32
    return %c0_i32, %c0_i32_0 : i32, i32
  }
  func.func @transform_26(%arg0: i32) -> (i32, i32) {
    %c0_i32 = arith.constant 0 : i32
    %c0_i32_0 = arith.constant 0 : i32
    %c0_i32_1 = arith.constant 0 : i32
    return %c0_i32, %c0_i32_0 : i32, i32
  }
  func.func @transform_27(%arg0: i32) -> i32 {
    %c0_i32 = arith.constant 0 : i32
    %c0_i32_0 = arith.constant 0 : i32
    return %c0_i32 : i32
  }
  func.func @transform_28(%arg0: i32) -> (i32, i32) {
    %c0_i32 = arith.constant 0 : i32
    %c0_i32_0 = arith.constant 0 : i32
    %c0_i32_1 = arith.constant 0 : i32
    return %c0_i32, %c0_i32_0 : i32, i32
  }
  func.func @transform_29(%arg0: i32) -> (i32, i32) {
    %c0_i32 = arith.constant 0 : i32
    %c0_i32_0 = arith.constant 0 : i32
    %c0_i32_1 = arith.constant 0 : i32
    return %c0_i32, %c0_i32_0 : i32, i32
  }
  func.func @transform_30(%arg0: i32) -> i32 {
    %c0_i32 = arith.constant 0 : i32
    %c0_i32_0 = arith.constant 0 : i32
    return %c0_i32 : i32
  }
  func.func @transform_31(%arg0: i32) -> (i32, i32) {
    %c0_i32 = arith.constant 0 : i32
    %c0_i32_0 = arith.constant 0 : i32
    %c0_i32_1 = arith.constant 0 : i32
    return %c0_i32, %c0_i32_0 : i32, i32
  }
  func.func @transform_32(%arg0: i32) -> (i32, i32) {
    %c0_i32 = arith.constant 0 : i32
    %c0_i32_0 = arith.constant 0 : i32
    %c0_i32_1 = arith.constant 0 : i32
    return %c0_i32, %c0_i32_0 : i32, i32
  }
  func.func @transform_33(%arg0: i32) -> i32 {
    %c0_i32 = arith.constant 0 : i32
    %c0_i32_0 = arith.constant 0 : i32
    return %c0_i32 : i32
  }
  func.func @transform_34(%arg0: i32) -> (i32, i32) {
    %c0_i32 = arith.constant 0 : i32
    %c0_i32_0 = arith.constant 0 : i32
    %c0_i32_1 = arith.constant 0 : i32
    return %c0_i32, %c0_i32_0 : i32, i32
  }
  func.func @transform_35(%arg0: i32) -> (i32, i32) {
    %c0_i32 = arith.constant 0 : i32
    %c0_i32_0 = arith.constant 0 : i32
    %c0_i32_1 = arith.constant 0 : i32
    return %c0_i32, %c0_i32_0 : i32, i32
  }
  func.func @transform_36(%arg0: i32) -> (i32, i32) {
    %c0_i32 = arith.constant 0 : i32
    %c0_i32_0 = arith.constant 0 : i32
    return %arg0, %c0_i32 : i32, i32
  }
}

</mosaic_0001>

<bundles_post_ra>
// kernel: tpu_custom_call.1
= control target key start
LH: loop header
LB: loop body
LE: loop exit
PB: predicated region body
PF: predicated region fallthrough
CT: control target
= control target key end

     0   :  { %s8790_s6 = smov 1   ;;  %s8791_s10 = smov 2   ;;  %s9997_s0 = inlined_call_operand.smem [shape: u32[37], index: -1, kind: input, shape index: {}] }
   0x1   :  { %s8868_s5 = sld [smem:[%s9997_s0]]   ;;  %s8792_s14 = smov 3  }
   0x2   :  { %s8873_s9 = sld [smem:[%s9997_s0 + %s8790_s6]]   ;;  %s8793_s18 = smov 4  }
   0x3   :  { %s8878_s13 = sld [smem:[%s9997_s0 + %s8791_s10]]   ;;  %s8794_s22 = smov 5  }
   0x4   :  { %s8883_s17 = sld [smem:[%s9997_s0 + %s8792_s14]]   ;;  %s8795_s26 = smov 6  }
   0x5   :  { %s8888_s21 = sld [smem:[%s9997_s0 + %s8793_s18]]   ;;  %s8796_s30 = smov 7  }
   0x6   :  { %s8893_s25 = sld [smem:[%s9997_s0 + %s8794_s22]]   ;;  %s8797_s4 = smov 8  }
   0x7   :  { %10035 = sst [smem:[#allocation52_spill]] %s8868_s5  ;;  %s8798_s10 = smov 9  }
   0x8   :  { %10036 = sst [smem:[#allocation53_spill]] %s8873_s9  ;;  %s8799_s15 = smov 10  }
   0x9   :  { %10037 = sst [smem:[#allocation54_spill]] %s8878_s13  ;;  %s8800_s20 = smov 11  }
   0xa   :  { %10038 = sst [smem:[#allocation55_spill]] %s8883_s17  ;;  %s8802_s1 = smov 13  }
   0xb   :  { %s8898_s29 = sld [smem:[%s9997_s0 + %s8795_s26]]   ;;  %s8801_s26 = smov 12  }
   0xc   :  { %s8903_s3 = sld [smem:[%s9997_s0 + %s8796_s30]]   ;;  %s8803_s7 = smov 14  }
   0xd   :  { %s8908_s8 = sld [smem:[%s9997_s0 + %s8797_s4]]   ;;  %s8805_s22 = smov 16  }
   0xe   :  { %s8913_s14 = sld [smem:[%s9997_s0 + %s8798_s10]]   ;;  %s8806_s28 = smov 17  }
   0xf   :  { %s8918_s19 = sld [smem:[%s9997_s0 + %s8799_s15]]   ;;  %s8804_s15 = smov 15  }
  0x10   :  { %s8923_s24 = sld [smem:[%s9997_s0 + %s8800_s20]]   ;;  %s8815_s10 = smov 26  }
  0x11   :  { %10039 = sst [smem:[#allocation56_spill]] %s8898_s29  ;;  %s8816_s16 = smov 27  }
  0x12   :  { %s8928_s30 = sld [smem:[%s9997_s0 + %s8801_s26]]   ;;  %s8821_s23 = smov 32  }
  0x13   :  { %10040 = sst [smem:[#allocation57_spill]] %s8908_s8 }
  0x14   :  { %10041 = sst [smem:[#allocation58_spill]] %s8913_s14  ;;  %s8825_s14 = smov 36  }
  0x15   :  { %s8933_s6 = sld [smem:[%s9997_s0 + %s8802_s1]]   ;;  %s8814_s1 = smov 25  }
  0x16   :  { %10042 = sst [smem:[#allocation59_spill]] %s8923_s24 }
  0x17   :  { %s8938_s12 = sld [smem:[%s9997_s0 + %s8803_s7]]   ;;  %s8807_s7 = smov 18  }
  0x18   :  { %s8943_s20 = sld [smem:[%s9997_s0 + %s8804_s15]]   ;;  %s8808_s15 = smov 19  }
  0x19   :  { %s8948_s27 = sld [smem:[%s9997_s0 + %s8805_s22]]   ;;  %s8809_s22 = smov 20  }
  0x1a   :  { %s8953_s4 = sld [smem:[%s9997_s0 + %s8806_s28]]   ;;  %s8810_s28 = smov 21  }
  0x1b   :  { %10043 = sst [smem:[#allocation60_spill]] %s8933_s6  ;;  %s8817_s6 = smov 28  }
  0x1c   :  { %s8958_s5 = sld [smem:[%s9997_s0 + %s8807_s7]]   ;;  %s8811_s7 = smov 22  }
  0x1d   :  { %10044 = sst [smem:[#allocation61_spill]] %s8938_s12 }
  0x1e   :  { %10045 = sst [smem:[#allocation62_spill]] %s8943_s20 }
  0x1f   :  { %s8963_s24 = sld [smem:[%s9997_s0 + %s8808_s15]]   ;;  %s8812_s15 = smov 23  }
  0x20   :  { %10046 = sst [smem:[#allocation63_spill]] %s8953_s4 }
  0x21   :  { %s8968_s13 = sld [smem:[%s9997_s0 + %s8809_s22]]   ;;  %s8813_s22 = smov 24  }
  0x22   :  { %10047 = sst [smem:[#allocation64_spill]] %s8958_s5 }
  0x23   :  { %s8973_s9 = sld [smem:[%s9997_s0 + %s8810_s28]]   ;;  %s8818_s28 = smov 29  }
  0x24   :  { %s8978_s5 = sld [smem:[%s9997_s0 + %s8811_s7]]   ;;  %s8823_s7 = smov 34  }
  0x25   :  { %10048 = sst [smem:[#allocation65_spill]] %s8963_s24 }
  0x26   :  { %s8983_s24 = sld [smem:[%s9997_s0 + %s8812_s15]]   ;;  %s8820_s15 = smov 31  }
  0x27   :  { %10049 = sst [smem:[#allocation66_spill]] %s8968_s13 }
  0x28   :  { %s6173_s4 = sld [smem:[%s9997_s0 + %s8813_s22]]  }
  0x29   :  { %10050 = sst [smem:[#allocation67_spill]] %s8973_s9 }
  0x2a   :  { %10051 = sst [smem:[#allocation68_spill]] %s8978_s5 }
  0x2b   :  { %s8991_s9 = sld [smem:[%s9997_s0 + %s8814_s1]]  }
  0x2c   :  { %10052 = sst [smem:[#allocation69_spill]] %s8983_s24 }
  0x2d   :  { %s8996_s20 = sld [smem:[%s9997_s0 + %s8815_s10]]   ;;  %s8819_s10 = smov 30  }
  0x2e   :  { %s6176_s24 = sld [smem:[%s9997_s0 + %s8816_s16]]  }
  0x2f   :  { %s9004_s26 = sld [smem:[%s9997_s0 + %s8817_s6]]  }
  0x30   :  { %s6179_s16 = sld [smem:[%s9997_s0 + %s8819_s10]]  }
  0x31   :  { %10053 = sst [smem:[#allocation70_spill]] %s8991_s9 }
  0x32   :  { %s9009_s9 = sld [smem:[%s9997_s0 + %s8818_s28]]   ;;  %s8822_s28 = smov 33  }
  0x33   :  { %10054 = sst [smem:[#allocation71_spill]] %s8996_s20  ;;  %s8824_s20 = smov 35  }
  0x34   :  { %s9017_s6 = sld [smem:[%s9997_s0 + %s8820_s15]]  }
  0x35   :  { %s9022_s1 = sld [smem:[%s9997_s0 + %s8821_s23]]  }
  0x36   :  { %s6182_s29 = sld [smem:[%s9997_s0 + %s8822_s28]]  }
  0x37   :  { %s9030_s17 = sld [smem:[%s9997_s0 + %s8823_s7]]  }
  0x38   :  { %10055 = sst [smem:[#allocation72_spill]] %s9009_s9 }
  0x39   :  { %78 = sst [smem:[#allocation3]] %s8888_s21 }
  0x3a   :  { %10056 = sst [smem:[#allocation73_spill]] %s9017_s6 }
  0x3b   :  { %10057 = sst [smem:[#allocation74_spill]] %s9022_s1 }
  0x3c   :  { %s9035_s6 = sld [smem:[%s9997_s0 + %s8824_s20]]  }
  0x3d   :  { %s9040_s1 = sld [smem:[%s9997_s0 + %s8825_s14]]  }
  0x3e   :  { %79 = sst [smem:[#allocation4]] %s8903_s3 }
  0x3f   :  { %80 = sst [smem:[#allocation5]] %s8918_s19 }
  0x40   :  { %81 = sst [smem:[#allocation6]] %s6173_s4 }
  0x41   :  { %82 = sst [smem:[#allocation7]] %s6176_s24 }
  0x42   :  { %10058 = sst [smem:[#allocation75_spill]] %s9035_s6 }
  0x43   :  { %83 = sst [smem:[#allocation8]] %s6179_s16 }
  0x44   :  { %84 = sst [smem:[#allocation9]] %s6182_s29 }
  0x45   :  { %85 = vsyncpa [#allocation11], 0 }
  0x46   :  { %86 = vsyncpa [#allocation14], 0 }
  0x47   :  { %87 = vsyncpa [#allocation17], 0 }
  0x48   :  { %88 = vsyncpa [#allocation20], 0 }
  0x49   :  { %89 = vsyncpa [#allocation23], 0 }
  0x4a   :  { %90 = vsyncpa [#allocation26], 0 }
  0x4b   :  { %91 = vsyncpa [#allocation29], 0 }
  0x4c   :  { %92 = vsyncpa [#allocation32], 0 }
  0x4d   :  { %93 = vsyncpa [#allocation35], 0 }
  0x4e   :  { %94 = vsyncpa [#allocation38], 0 }
  0x4f   :  { %95 = vsyncpa [#allocation12], 0 }
  0x50   :  { %97 = vsyncpa [#allocation12 + $0x1], 0  ;;  %s9045_s0 = smov 0   ;;  %s9047_s9 = smov 0  }
  0x51   :  { %s9049_s21 = smov 0   ;;  %s9051_s3 = smov 0  }
  0x52 LB: > { %s10059_s6 = sld [smem:[#allocation75_spill]]  ;;  %s10060_s13 = sld [smem:[#allocation66_spill]]  ;;  %s8776_s0 = sphi %s9045_s0, %s10130_s0   ;;  %s8788_s3 = sphi %s9051_s3, %s10133_s3   ;;  %s8784_s21 = sphi %s9049_s21, %s10132_s21   ;;  %s8780_s9 = sphi %s9047_s9, %s10131_s9  }
  0x53   : > { %s10061_s12 = sld [smem:[#allocation61_spill]]  ;;  %s10062_s5 = sld [smem:[#allocation68_spill]] }
  0x54   : > { %s10063_s8 = sld [smem:[#allocation57_spill]]  ;;  %s9066_s29 = sadd.s32 4294967295, %s8788_s3  }
  0x55   : > { %s6187_s19 = sadd.s32 4294967294, %s8788_s3   ;;  %s9070_s24 = sadd.s32 1, %s8788_s3  }
  0x56   : > { %s876_s4 = sadd.s32 1, %s8784_s21  ;;  %s873_s16 = ssub.s32 %s8788_s3, %s9070_s24 }
  0x57   : > { %p886_p0 = scmp.ne.s32.totalorder %s8784_s21, %s8780_s9  ;;  %p874_p1 = scmp.eq.s32.totalorder %s873_s16, 0 }
  0x58   : > { %p887_p2 = scmp.eq.s32.totalorder %s9066_s29, 1  ;;  %p892_p3 = scmp.ne.s32.totalorder %s8780_s9, %s8776_s0 }
  0x59   : > { %p893_p4 = scmp.eq.s32.totalorder %s6187_s19, 1  ;;  %p6188_p7 = scmp.ge.s32.totalorder %s8788_s3, 1 }
  0x5a   : > { %s9081_s28 = scalar_select %p874_p1, %s8784_s21, %s876_s4  }
  0x5b   : > { %p9083_p5 = por %p887_p2, %p886_p0  ;;  %p9087_p6 = por %p893_p4, %p892_p3 }
  0x5c   : > { %p900_p8 = scmp.lt.s32.totalorder %s8788_s3, 3  ;;  %p10014_p9 = scmp.eq.s32.totalorder %s9066_s29, 0 }
  0x5d   : > { %s10064_s2 = scalar_select %p9083_p5, 1, 0 }
  0x5e   : > { %s10065_s7 = scalar_select %p9087_p6, 1, 0 }
  0x5f   : > { %p9094_p10 = pnand %p6188_p7, %p900_p8  ;;  %s8826_s10 = smov [#allocation13]  }
  0x60   : > { %s929_s20 = sshll.u32 %s8826_s10, 4  ;;  %s8827_s18 = smov [#allocation16]   ;;  %s9100_s20 = int_to_ptr.vmem [resolvable:$true] %s929_s20 }
  0x61   : > { %s10066_s11 = scalar_select %p9094_p10, 1, 0 }
  0x62   : > { %p7752_p11 = pneg %p9094_p10  ;;  %s956_s14 = sshll.u32 %s8827_s18, 4  ;;  %s9108_s14 = int_to_ptr.vmem [resolvable:$true] %s956_s14 }
  0x63   : > { %s8828_s23 = smov [#allocation19]   ;;  %s8154_s19 = scalar_lea.hbm %s8893_s25, 3072 }
  0x64   : > { %p9104_p12 = pnand %p10014_p9, %p7752_p11  ;;  %s9110_s22 = sshll.u32 %s8828_s23, 4  ;;  %s987_s22 = int_to_ptr.vmem [resolvable:$true] %s9110_s22 }
  0x65   : > { %p8155_p13 = scmp.ne.s32.totalorder %s8893_s25, %s8154_s19  ;;  %p8161_p3 = scmp.lt.u32.totalorder %s8154_s19, %s8893_s25 }
  0x66   : > { %p9116_p0 = pneg %p9104_p12 }
  0x68   : > { %p8157_p1 = pnand %p9116_p0, %p8155_p13 }
  0x6a   : > { %p8158_p2 = pneg %p8157_p1 }
  0x6c   : > { %p8163_p4 = pnand %p8161_p3, %p8158_p2 }
  0x6e   : > { %8166 = shalt.err (!%p8163_p4)
}
  0x6f   : > { %s8167_s16 = scalar_lea.vmem %s9100_s20, 3072  ;;  %p8175_p9 = scmp.lt.s32.totalorder %s9100_s20, %s9100_s20 }
  0x70   : > { %p8168_p7 = scmp.ne.s32.totalorder %s9100_s20, %s8167_s16  ;;  %p8176_p6 = scmp.lt.s32.totalorder %s8167_s16, %s8167_s16 }
  0x72   : > { %p8170_p8 = pnand %p8168_p7, %p9116_p0  ;;  %p8177_p5 = por %p8176_p6, %p8175_p9 }
  0x74   : > { %p8171_p11 = pneg %p8170_p8 }
  0x76   : > { %p8178_p10 = pnand %p8177_p5, %p8171_p11 }
  0x78   : > { %8181 = shalt.err (!%p8178_p10)
}
  0x79   : > { %s10018_s10 = smov 128   ;;  %s10020_s18 = smov 8  }
  0x7a   : > { %7758 = dma.hbm_to_vmem [thread:$0]  (!%p9104_p12), %s8893_s25, 3072, %s9100_s20, [#allocation14], %s10018_s10, %s10018_s10, %s10020_s18  }
  0x7b   : > { %s8182_s23 = scalar_lea.hbm %s10063_s8, 3072 }
  0x7c   : > { %p8183_p13 = scmp.ne.s32.totalorder %s10063_s8, %s8182_s23  ;;  %p8189_p9 = scmp.lt.u32.totalorder %s8182_s23, %s10063_s8 }
  0x7e   : > { %p8185_p6 = pnand %p8183_p13, %p9116_p0 }
  0x80   : > { %p8186_p5 = pneg %p8185_p6 }
  0x82   : > { %p8191_p10 = pnand %p8189_p9, %p8186_p5 }
  0x84   : > { %8194 = shalt.err (!%p8191_p10)
}
  0x85   : > { %s8195_s19 = scalar_lea.vmem %s9108_s14, 3072  ;;  %p8203_p4 = scmp.lt.s32.totalorder %s9108_s14, %s9108_s14 }
  0x86   : > { %p8196_p1 = scmp.ne.s32.totalorder %s9108_s14, %s8195_s19  ;;  %p8204_p7 = scmp.lt.s32.totalorder %s8195_s19, %s8195_s19 }
  0x88   : > { %p8198_p2 = pnand %p8196_p1, %p9116_p0  ;;  %p8205_p8 = por %p8204_p7, %p8203_p4 }
  0x8a   : > { %p8199_p3 = pneg %p8198_p2 }
  0x8c   : > { %p8206_p11 = pnand %p8205_p8, %p8199_p3 }
  0x8e   : > { %8209 = shalt.err (!%p8206_p11)
}
  0x8f   : > { %7764 = dma.hbm_to_vmem [thread:$0]  (!%p9104_p12), %s10063_s8, 3072, %s9108_s14, [#allocation17], %s10018_s10, %s10018_s10, %s10020_s18  }
  0x90   : > { %s8210_s20 = scalar_lea.hbm %s8928_s30, 2048 }
  0x91   : > { %p8211_p13 = scmp.ne.s32.totalorder %s8928_s30, %s8210_s20  ;;  %p8217_p9 = scmp.lt.u32.totalorder %s8210_s20, %s8928_s30 }
  0x93   : > { %p8213_p6 = pnand %p8211_p13, %p9116_p0 }
  0x95   : > { %p8214_p5 = pneg %p8213_p6 }
  0x97   : > { %p8219_p10 = pnand %p8217_p9, %p8214_p5 }
  0x99   : > { %8222 = shalt.err (!%p8219_p10)
}
  0x9a   : > { %s8223_s16 = scalar_lea.vmem %s987_s22, 2048  ;;  %p8231_p4 = scmp.lt.s32.totalorder %s987_s22, %s987_s22 }
  0x9b   : > { %p8224_p1 = scmp.ne.s32.totalorder %s987_s22, %s8223_s16  ;;  %p8232_p7 = scmp.lt.s32.totalorder %s8223_s16, %s8223_s16 }
  0x9d   : > { %p8226_p2 = pnand %p8224_p1, %p9116_p0  ;;  %p8233_p8 = por %p8232_p7, %p8231_p4 }
  0x9f   : > { %p8227_p3 = pneg %p8226_p2 }
  0xa1   : > { %p8234_p11 = pnand %p8233_p8, %p8227_p3 }
  0xa3   : > { %8237 = shalt.err (!%p8234_p11)
}
  0xa4   : > { %7770 = dma.hbm_to_vmem [thread:$0]  (!%p9104_p12), %s8928_s30, 2048, %s987_s22, [#allocation20], %s10018_s10, %s10018_s10, %s10020_s18  }
  0xa5   : > { %s8831_s14 = smov [#allocation22]   ;;  %s8832_s19 = smov [#allocation25]  }
  0xa6   : > { %s1012_s23 = sshll.u32 %s8831_s14, 4  ;;  %s1038_s20 = sshll.u32 %s8832_s19, 4  ;;  %s1013_s23 = int_to_ptr.vmem [resolvable:$true] %s1012_s23  ;;  %s1039_s20 = int_to_ptr.vmem [resolvable:$true] %s1038_s20 }
  0xa7   : > { %s8238_s16 = scalar_lea.hbm %s10061_s12, 1024 }
  0xa8   : > { %p8239_p13 = scmp.ne.s32.totalorder %s10061_s12, %s8238_s16  ;;  %p8245_p9 = scmp.lt.u32.totalorder %s8238_s16, %s10061_s12 }
  0xaa   : > { %p8241_p6 = pnand %p8239_p13, %p9116_p0 }
  0xac   : > { %p8242_p5 = pneg %p8241_p6 }
  0xae   : > { %p8247_p10 = pnand %p8245_p9, %p8242_p5 }
  0xb0   : > { %8250 = shalt.err (!%p8247_p10)
}
  0xb1   : > { %s8251_s8 = scalar_lea.vmem %s1013_s23, 1024  ;;  %p8259_p4 = scmp.lt.s32.totalorder %s1013_s23, %s1013_s23 }
  0xb2   : > { %p8252_p1 = scmp.ne.s32.totalorder %s1013_s23, %s8251_s8  ;;  %p8260_p7 = scmp.lt.s32.totalorder %s8251_s8, %s8251_s8 }
  0xb4   : > { %p8254_p2 = pnand %p8252_p1, %p9116_p0  ;;  %p8261_p8 = por %p8260_p7, %p8259_p4 }
  0xb6   : > { %p8255_p3 = pneg %p8254_p2 }
  0xb8   : > { %p8262_p11 = pnand %p8261_p8, %p8255_p3 }
  0xba   : > { %8265 = shalt.err (!%p8262_p11)
}
  0xbb   : > { %7776 = dma.hbm_to_vmem [thread:$0]  (!%p9104_p12), %s10061_s12, 1024, %s1013_s23, [#allocation23], %s10018_s10, %s10018_s10, %s10020_s18  }
  0xbc   : > { %s8266_s22 = scalar_lea.hbm %s8948_s27, 512 }
  0xbd   : > { %p8267_p13 = scmp.ne.s32.totalorder %s8948_s27, %s8266_s22  ;;  %p8273_p9 = scmp.lt.u32.totalorder %s8266_s22, %s8948_s27 }
  0xbf   : > { %p8269_p6 = pnand %p8267_p13, %p9116_p0 }
  0xc1   : > { %p8270_p5 = pneg %p8269_p6 }
  0xc3   : > { %p8275_p10 = pnand %p8273_p9, %p8270_p5 }
  0xc5   : > { %8278 = shalt.err (!%p8275_p10)
}
  0xc6   : > { %s8279_s8 = scalar_lea.vmem %s1039_s20, 512  ;;  %p8287_p4 = scmp.lt.s32.totalorder %s1039_s20, %s1039_s20 }
  0xc7   : > { %p8280_p1 = scmp.ne.s32.totalorder %s1039_s20, %s8279_s8  ;;  %p8288_p7 = scmp.lt.s32.totalorder %s8279_s8, %s8279_s8 }
  0xc9   : > { %p8282_p2 = pnand %p8280_p1, %p9116_p0  ;;  %p8289_p8 = por %p8288_p7, %p8287_p4 }
  0xcb   : > { %p8283_p3 = pneg %p8282_p2 }
  0xcd   : > { %p8290_p11 = pnand %p8289_p8, %p8283_p3 }
  0xcf   : > { %8293 = shalt.err (!%p8290_p11)
}
  0xd0   : > { %7782 = dma.hbm_to_vmem [thread:$0]  (!%p9104_p12), %s8948_s27, 512, %s1039_s20, [#allocation26], %s10018_s10, %s10018_s10, %s10020_s18  }
  0xd1   : > { %s8833_s14 = smov [#allocation28]   ;;  %s8834_s19 = smov [#allocation31]  }
  0xd2   : > { %s1071_s23 = sshll.u32 %s8833_s14, 4  ;;  %s1092_s16 = sshll.u32 %s8834_s19, 4  ;;  %s1072_s23 = int_to_ptr.vmem [resolvable:$true] %s1071_s23  ;;  %s1093_s16 = int_to_ptr.vmem [resolvable:$true] %s1092_s16 }
  0xd3   : > { %s8294_s22 = scalar_lea.hbm %s10060_s13, 16 }
  0xd4   : > { %p8295_p13 = scmp.ne.s32.totalorder %s10060_s13, %s8294_s22  ;;  %p8301_p9 = scmp.lt.u32.totalorder %s8294_s22, %s10060_s13 }
  0xd6   : > { %p8297_p6 = pnand %p8295_p13, %p9116_p0 }
  0xd8   : > { %p8298_p5 = pneg %p8297_p6 }
  0xda   : > { %p8303_p10 = pnand %p8301_p9, %p8298_p5 }
  0xdc   : > { %8306 = shalt.err (!%p8303_p10)
}
  0xdd   : > { %s8307_s8 = scalar_lea.vmem %s1072_s23, 16  ;;  %s8314_s20 = scalar_lea.vmem %s1072_s23, 32 }
  0xde   : > { %p8308_p1 = scmp.ne.s32.totalorder %s1072_s23, %s8307_s8  ;;  %p8315_p4 = scmp.lt.s32.totalorder %s1072_s23, %s1072_s23 }
  0xdf   : > { %p8316_p7 = scmp.lt.s32.totalorder %s8314_s20, %s8307_s8 }
  0xe0   : > { %p8310_p2 = pnand %p8308_p1, %p9116_p0 }
  0xe1   : > { %p8317_p8 = por %p8316_p7, %p8315_p4 }
  0xe2   : > { %p8311_p3 = pneg %p8310_p2 }
  0xe4   : > { %p8318_p11 = pnand %p8317_p8, %p8311_p3 }
  0xe6   : > { %8321 = shalt.err (!%p8318_p11)
}
  0xe7   : > { %7788 = dma.hbm_to_vmem [thread:$0]  (!%p9104_p12), %s10060_s13, 16, %s1072_s23, [#allocation29]  }
  0xe8   : > { %s8322_s14 = scalar_lea.hbm %s10062_s5, 1024 }
  0xe9   : > { %p8323_p13 = scmp.ne.s32.totalorder %s10062_s5, %s8322_s14  ;;  %p8329_p9 = scmp.lt.u32.totalorder %s8322_s14, %s10062_s5 }
  0xeb   : > { %p8325_p6 = pnand %p8323_p13, %p9116_p0 }
  0xed   : > { %p8326_p5 = pneg %p8325_p6 }
  0xef   : > { %p8331_p10 = pnand %p8329_p9, %p8326_p5 }
  0xf1   : > { %8334 = shalt.err (!%p8331_p10)
}
  0xf2   : > { %s8335_s19 = scalar_lea.vmem %s1093_s16, 1024  ;;  %p8343_p4 = scmp.lt.s32.totalorder %s1093_s16, %s1093_s16 }
  0xf3   : > { %p8336_p1 = scmp.ne.s32.totalorder %s1093_s16, %s8335_s19  ;;  %p8344_p7 = scmp.lt.s32.totalorder %s8335_s19, %s8335_s19 }
  0xf5   : > { %p8338_p2 = pnand %p8336_p1, %p9116_p0  ;;  %p8345_p8 = por %p8344_p7, %p8343_p4 }
  0xf7   : > { %p8339_p3 = pneg %p8338_p2 }
  0xf9   : > { %p8346_p11 = pnand %p8345_p8, %p8339_p3 }
  0xfb   : > { %8349 = shalt.err (!%p8346_p11)
}
  0xfc   : > { %s8835_s23 = smov 256   ;;  %s8836_s22 = smov 16  }
  0xfd   : > { %7794 = dma.hbm_to_vmem [thread:$0]  (!%p9104_p12), %s10062_s5, 1024, %s1093_s16, [#allocation32], %s8835_s23, %s8835_s23, %s8836_s22  }
  0xfe   : > { %s8837_s8 = smov [#allocation34]   ;;  %s8350_s14 = scalar_lea.hbm %s9004_s26, 2048 }
  0xff   : > { %s1128_s20 = sshll.u32 %s8837_s8, 4  ;;  %p8351_p13 = scmp.ne.s32.totalorder %s9004_s26, %s8350_s14  ;;  %s1129_s20 = int_to_ptr.vmem [resolvable:$true] %s1128_s20 }
 0x100   : > { %p8357_p9 = scmp.lt.u32.totalorder %s8350_s14, %s9004_s26 }
 0x101   : > { %p8353_p6 = pnand %p8351_p13, %p9116_p0 }
 0x103   : > { %p8354_p5 = pneg %p8353_p6 }
 0x105   : > { %p8359_p10 = pnand %p8357_p9, %p8354_p5 }
 0x107   : > { %8362 = shalt.err (!%p8359_p10)
}
 0x108   : > { %s8363_s19 = scalar_lea.vmem %s1129_s20, 2048  ;;  %p8371_p4 = scmp.lt.s32.totalorder %s1129_s20, %s1129_s20 }
 0x109   : > { %p8364_p1 = scmp.ne.s32.totalorder %s1129_s20, %s8363_s19  ;;  %p8372_p7 = scmp.lt.s32.totalorder %s8363_s19, %s8363_s19 }
 0x10b   : > { %p8366_p2 = pnand %p8364_p1, %p9116_p0  ;;  %p8373_p8 = por %p8372_p7, %p8371_p4 }
 0x10d   : > { %p8367_p3 = pneg %p8366_p2 }
 0x10f   : > { %p8374_p11 = pnand %p8373_p8, %p8367_p3 }
 0x111   : > { %8377 = shalt.err (!%p8374_p11)
}
 0x112   : > { %s8838_s16 = smov 64   ;;  %s10069_s23 = sld [smem:[#allocation74_spill]] }
 0x113   : > { %s8839_s22 = smov 4   ;;  %s8840_s8 = smov [#allocation37]  }
 0x114   : > { %7800 = dma.hbm_to_vmem [thread:$0]  (!%p9104_p12), %s9004_s26, 2048, %s1129_s20, [#allocation35], %s8838_s16, %s8838_s16, %s8839_s22  }
 0x115   : > { %s1159_s14 = sshll.u32 %s8840_s8, 4  ;;  %s8841_s10 = smov [#allocation10]   ;;  %s1160_s14 = int_to_ptr.vmem [resolvable:$true] %s1159_s14 }
 0x116   : > { %s916_s18 = sshll.u32 %s8841_s10, 4  ;;  %s9224_s18 = int_to_ptr.vmem [resolvable:$true] %s916_s18 }
 0x118   : > { %s8378_s19 = scalar_lea.hbm %s10069_s23, 16 }
 0x119   : > { %p8379_p13 = scmp.ne.s32.totalorder %s10069_s23, %s8378_s19  ;;  %p8385_p9 = scmp.lt.u32.totalorder %s8378_s19, %s10069_s23 }
 0x11b   : > { %p8381_p6 = pnand %p8379_p13, %p9116_p0 }
 0x11d   : > { %p8382_p5 = pneg %p8381_p6 }
 0x11f   : > { %p8387_p10 = pnand %p8385_p9, %p8382_p5 }
 0x121   : > { %8390 = shalt.err (!%p8387_p10)
}
 0x122   : > { %s8391_s5 = scalar_lea.vmem %s1160_s14, 16  ;;  %s8398_s20 = scalar_lea.vmem %s1160_s14, 32 }
 0x123   : > { %p8392_p1 = scmp.ne.s32.totalorder %s1160_s14, %s8391_s5  ;;  %p8399_p4 = scmp.lt.s32.totalorder %s1160_s14, %s1160_s14 }
 0x124   : > { %p8400_p7 = scmp.lt.s32.totalorder %s8398_s20, %s8391_s5 }
 0x125   : > { %p8394_p2 = pnand %p8392_p1, %p9116_p0 }
 0x126   : > { %p8401_p8 = por %p8400_p7, %p8399_p4 }
 0x127   : > { %p8395_p3 = pneg %p8394_p2 }
 0x129   : > { %p8402_p11 = pnand %p8401_p8, %p8395_p3 }
 0x12b   : > { %8405 = shalt.err (!%p8402_p11)
}
 0x12c   : > { %s10070_s10 = sld [smem:[#allocation55_spill]] }
 0x12d   : > { %7806 = dma.hbm_to_vmem [thread:$0]  (!%p9104_p12), %s10069_s23, 16, %s1160_s14, [#allocation38]  }
 0x132   : > { %s8406_s16 = scalar_lea.hbm %s10070_s10, 16 }
 0x133   : > { %p8407_p13 = scmp.ne.s32.totalorder %s10070_s10, %s8406_s16  ;;  %p8413_p9 = scmp.lt.u32.totalorder %s8406_s16, %s10070_s10 }
 0x135   : > { %p8409_p6 = pnand %p8407_p13, %p9116_p0 }
 0x137   : > { %p8410_p5 = pneg %p8409_p6 }
 0x139   : > { %p8415_p10 = pnand %p8413_p9, %p8410_p5 }
 0x13b   : > { %8418 = shalt.err (!%p8415_p10)
}
 0x13c   : > { %s8419_s5 = scalar_lea.vmem %s9224_s18, 16  ;;  %s8426_s22 = scalar_lea.vmem %s9224_s18, 32 }
 0x13d   : > { %p8420_p1 = scmp.ne.s32.totalorder %s9224_s18, %s8419_s5  ;;  %p8427_p4 = scmp.lt.s32.totalorder %s9224_s18, %s9224_s18 }
 0x13e   : > { %p8428_p7 = scmp.lt.s32.totalorder %s8426_s22, %s8419_s5 }
 0x13f   : > { %p8422_p2 = pnand %p8420_p1, %p9116_p0 }
 0x140   : > { %p8429_p8 = por %p8428_p7, %p8427_p4 }
 0x141   : > { %p8423_p3 = pneg %p8422_p2 }
 0x143   : > { %p8430_p11 = pnand %p8429_p8, %p8423_p3 }
 0x145   : > { %8433 = shalt.err (!%p8430_p11)
}
 0x146   : > { %s10071_s8 = sld [smem:[#allocation56_spill]]  ;;  %s8842_s14 = smov [#allocation15]  }
 0x147   : > { %7755 = dma.hbm_to_vmem [thread:$0]  (!%p9104_p12), %s10070_s10, 16, %s9224_s18, [#allocation11]  }
 0x148   : > { %s943_s19 = sshll.u32 %s8842_s14, 4  ;;  %s8843_s20 = smov [#allocation18]   ;;  %s944_s19 = int_to_ptr.vmem [resolvable:$true] %s943_s19 }
 0x149   : > { %s970_s16 = sshll.u32 %s8843_s20, 4  ;;  %s9252_s16 = int_to_ptr.vmem [resolvable:$true] %s970_s16 }
 0x14c   : > { %s8434_s5 = scalar_lea.hbm %s10071_s8, 16 }
 0x14d   : > { %p8435_p13 = scmp.ne.s32.totalorder %s10071_s8, %s8434_s5  ;;  %p8441_p9 = scmp.lt.u32.totalorder %s8434_s5, %s10071_s8 }
 0x14f   : > { %p8437_p6 = pnand %p8435_p13, %p9116_p0 }
 0x151   : > { %p8438_p5 = pneg %p8437_p6 }
 0x153   : > { %p8443_p10 = pnand %p8441_p9, %p8438_p5 }
 0x155   : > { %8446 = shalt.err (!%p8443_p10)
}
 0x156   : > { %s8447_s22 = scalar_lea.vmem %s944_s19, 16  ;;  %s8454_s18 = scalar_lea.vmem %s944_s19, 32 }
 0x157   : > { %p8448_p1 = scmp.ne.s32.totalorder %s944_s19, %s8447_s22  ;;  %p8455_p4 = scmp.lt.s32.totalorder %s944_s19, %s944_s19 }
 0x158   : > { %p8456_p7 = scmp.lt.s32.totalorder %s8454_s18, %s8447_s22 }
 0x159   : > { %p8450_p2 = pnand %p8448_p1, %p9116_p0 }
 0x15a   : > { %p8457_p8 = por %p8456_p7, %p8455_p4 }
 0x15b   : > { %p8451_p3 = pneg %p8450_p2 }
 0x15d   : > { %p8458_p11 = pnand %p8457_p8, %p8451_p3 }
 0x15f   : > { %8461 = shalt.err (!%p8458_p11)
}
 0x160   : > { %s10072_s14 = sld [smem:[#allocation58_spill]] }
 0x161   : > { %7761 = dma.hbm_to_vmem [thread:$0]  (!%p9104_p12), %s10071_s8, 16, %s944_s19, [#allocation14]  }
 0x166   : > { %s8462_s20 = scalar_lea.hbm %s10072_s14, 16 }
 0x167   : > { %p8463_p13 = scmp.ne.s32.totalorder %s10072_s14, %s8462_s20  ;;  %p8469_p9 = scmp.lt.u32.totalorder %s8462_s20, %s10072_s14 }
 0x169   : > { %p8465_p6 = pnand %p8463_p13, %p9116_p0 }
 0x16b   : > { %p8466_p5 = pneg %p8465_p6 }
 0x16d   : > { %p8471_p10 = pnand %p8469_p9, %p8466_p5 }
 0x16f   : > { %8474 = shalt.err (!%p8471_p10)
}
 0x170   : > { %s8475_s5 = scalar_lea.vmem %s9252_s16, 16  ;;  %s8482_s22 = scalar_lea.vmem %s9252_s16, 32 }
 0x171   : > { %p8476_p1 = scmp.ne.s32.totalorder %s9252_s16, %s8475_s5  ;;  %p8483_p4 = scmp.lt.s32.totalorder %s9252_s16, %s9252_s16 }
 0x172   : > { %p8484_p7 = scmp.lt.s32.totalorder %s8482_s22, %s8475_s5 }
 0x173   : > { %p8478_p2 = pnand %p8476_p1, %p9116_p0 }
 0x174   : > { %p8485_p8 = por %p8484_p7, %p8483_p4 }
 0x175   : > { %p8479_p3 = pneg %p8478_p2 }
 0x177   : > { %p8486_p11 = pnand %p8485_p8, %p8479_p3 }
 0x179   : > { %8489 = shalt.err (!%p8486_p11)
}
 0x17a   : > { %s10073_s19 = sld [smem:[#allocation60_spill]]  ;;  %s8844_s18 = smov [#allocation21]  }
 0x17b   : > { %7767 = dma.hbm_to_vmem [thread:$0]  (!%p9104_p12), %s10072_s14, 16, %s9252_s16, [#allocation17]  }
 0x17c   : > { %s999_s20 = sshll.u32 %s8844_s18, 4  ;;  %s8845_s8 = smov [#allocation24]   ;;  %s1000_s20 = int_to_ptr.vmem [resolvable:$true] %s999_s20 }
 0x17d   : > { %s1025_s10 = sshll.u32 %s8845_s8, 4  ;;  %s9280_s10 = int_to_ptr.vmem [resolvable:$true] %s1025_s10 }
 0x180   : > { %s8490_s5 = scalar_lea.hbm %s10073_s19, 2048 }
 0x181   : > { %p8491_p13 = scmp.ne.s32.totalorder %s10073_s19, %s8490_s5  ;;  %p8497_p9 = scmp.lt.u32.totalorder %s8490_s5, %s10073_s19 }
 0x183   : > { %p8493_p6 = pnand %p8491_p13, %p9116_p0 }
 0x185   : > { %p8494_p5 = pneg %p8493_p6 }
 0x187   : > { %p8499_p10 = pnand %p8497_p9, %p8494_p5 }
 0x189   : > { %8502 = shalt.err (!%p8499_p10)
}
 0x18a   : > { %s8503_s22 = scalar_lea.vmem %s1000_s20, 2048  ;;  %p8511_p4 = scmp.lt.s32.totalorder %s1000_s20, %s1000_s20 }
 0x18b   : > { %p8504_p1 = scmp.ne.s32.totalorder %s1000_s20, %s8503_s22  ;;  %p8512_p7 = scmp.lt.s32.totalorder %s8503_s22, %s8503_s22 }
 0x18d   : > { %p8506_p2 = pnand %p8504_p1, %p9116_p0  ;;  %p8513_p8 = por %p8512_p7, %p8511_p4 }
 0x18f   : > { %p8507_p3 = pneg %p8506_p2 }
 0x191   : > { %p8514_p11 = pnand %p8513_p8, %p8507_p3 }
 0x193   : > { %8517 = shalt.err (!%p8514_p11)
}
 0x194   : > { %s10074_s8 = smov 8   ;;  %s10075_s16 = smov 128  }
 0x195   : > { %s10076_s18 = sld [smem:[#allocation62_spill]] }
 0x196   : > { %7773 = dma.hbm_to_vmem [thread:$0]  (!%p9104_p12), %s10073_s19, 2048, %s1000_s20, [#allocation20], %s10075_s16, %s10075_s16, %s10074_s8  }
 0x19b   : > { %s8518_s5 = scalar_lea.hbm %s10076_s18, 2048 }
 0x19c   : > { %p8519_p13 = scmp.ne.s32.totalorder %s10076_s18, %s8518_s5  ;;  %p8525_p9 = scmp.lt.u32.totalorder %s8518_s5, %s10076_s18 }
 0x19e   : > { %p8521_p6 = pnand %p8519_p13, %p9116_p0 }
 0x1a0   : > { %p8522_p5 = pneg %p8521_p6 }
 0x1a2   : > { %p8527_p10 = pnand %p8525_p9, %p8522_p5 }
 0x1a4   : > { %8530 = shalt.err (!%p8527_p10)
}
 0x1a5   : > { %s8531_s22 = scalar_lea.vmem %s9280_s10, 2048  ;;  %p8539_p4 = scmp.lt.s32.totalorder %s9280_s10, %s9280_s10 }
 0x1a6   : > { %p8532_p1 = scmp.ne.s32.totalorder %s9280_s10, %s8531_s22  ;;  %p8540_p7 = scmp.lt.s32.totalorder %s8531_s22, %s8531_s22 }
 0x1a8   : > { %p8534_p2 = pnand %p8532_p1, %p9116_p0  ;;  %p8541_p8 = por %p8540_p7, %p8539_p4 }
 0x1aa   : > { %p8535_p3 = pneg %p8534_p2 }
 0x1ac   : > { %p8542_p11 = pnand %p8541_p8, %p8535_p3 }
 0x1ae   : > { %8545 = shalt.err (!%p8542_p11)
}
 0x1af   : > { %s10077_s20 = sld [smem:[#allocation63_spill]]  ;;  %s8846_s5 = smov [#allocation27]  }
 0x1b0   : > { %7779 = dma.hbm_to_vmem [thread:$0]  (!%p9104_p12), %s10076_s18, 2048, %s9280_s10, [#allocation23], %s10075_s16, %s10075_s16, %s10074_s8  }
 0x1b1   : > { %s1051_s12 = sshll.u32 %s8846_s5, 4  ;;  %s8847_s13 = smov [#allocation30]   ;;  %s1052_s12 = int_to_ptr.vmem [resolvable:$true] %s1051_s12 }
 0x1b2   : > { %s1082_s14 = sshll.u32 %s8847_s13, 4  ;;  %s9313_s14 = int_to_ptr.vmem [resolvable:$true] %s1082_s14 }
 0x1b5   : > { %s8546_s22 = scalar_lea.hbm %s10077_s20, 256 }
 0x1b6   : > { %p8547_p13 = scmp.ne.s32.totalorder %s10077_s20, %s8546_s22  ;;  %p8553_p9 = scmp.lt.u32.totalorder %s8546_s22, %s10077_s20 }
 0x1b8   : > { %p8549_p6 = pnand %p8547_p13, %p9116_p0 }
 0x1ba   : > { %p8550_p5 = pneg %p8549_p6 }
 0x1bc   : > { %p8555_p10 = pnand %p8553_p9, %p8550_p5 }
 0x1be   : > { %8558 = shalt.err (!%p8555_p10)
}
 0x1bf   : > { %s8559_s19 = scalar_lea.vmem %s1052_s12, 256  ;;  %p8567_p4 = scmp.lt.s32.totalorder %s1052_s12, %s1052_s12 }
 0x1c0   : > { %p8560_p1 = scmp.ne.s32.totalorder %s1052_s12, %s8559_s19  ;;  %p8568_p7 = scmp.lt.s32.totalorder %s8559_s19, %s8559_s19 }
 0x1c2   : > { %p8562_p2 = pnand %p8560_p1, %p9116_p0  ;;  %p8569_p8 = por %p8568_p7, %p8567_p4 }
 0x1c4   : > { %p8563_p3 = pneg %p8562_p2 }
 0x1c6   : > { %p8570_p11 = pnand %p8569_p8, %p8563_p3 }
 0x1c8   : > { %8573 = shalt.err (!%p8570_p11)
}
 0x1c9   : > { %s10078_s13 = sld [smem:[#allocation67_spill]] }
 0x1ca   : > { %7785 = dma.hbm_to_vmem [thread:$0]  (!%p9104_p12), %s10077_s20, 256, %s1052_s12, [#allocation26], %s10075_s16, %s10075_s16, %s10074_s8  }
 0x1cf   : > { %s8574_s10 = scalar_lea.hbm %s10078_s13, 256 }
 0x1d0   : > { %p8575_p13 = scmp.ne.s32.totalorder %s10078_s13, %s8574_s10  ;;  %p8581_p9 = scmp.lt.u32.totalorder %s8574_s10, %s10078_s13 }
 0x1d2   : > { %p8577_p6 = pnand %p8575_p13, %p9116_p0 }
 0x1d4   : > { %p8578_p5 = pneg %p8577_p6 }
 0x1d6   : > { %p8583_p10 = pnand %p8581_p9, %p8578_p5 }
 0x1d8   : > { %8586 = shalt.err (!%p8583_p10)
}
 0x1d9   : > { %s8587_s19 = scalar_lea.vmem %s9313_s14, 256  ;;  %p8595_p4 = scmp.lt.s32.totalorder %s9313_s14, %s9313_s14 }
 0x1da   : > { %p8588_p1 = scmp.ne.s32.totalorder %s9313_s14, %s8587_s19  ;;  %p8596_p7 = scmp.lt.s32.totalorder %s8587_s19, %s8587_s19 }
 0x1dc   : > { %p8590_p2 = pnand %p8588_p1, %p9116_p0  ;;  %p8597_p8 = por %p8596_p7, %p8595_p4 }
 0x1de   : > { %p8591_p3 = pneg %p8590_p2 }
 0x1e0   : > { %p8598_p11 = pnand %p8597_p8, %p8591_p3 }
 0x1e2   : > { %8601 = shalt.err (!%p8598_p11)
}
 0x1e3   : > { %s10079_s12 = sld [smem:[#allocation71_spill]]  ;;  %s8848_s8 = smov [#allocation33]  }
 0x1e4   : > { %7791 = dma.hbm_to_vmem [thread:$0]  (!%p9104_p12), %s10078_s13, 256, %s9313_s14, [#allocation29]  }
 0x1e5   : > { %s1115_s16 = sshll.u32 %s8848_s8, 4  ;;  %s8849_s5 = smov [#allocation36]   ;;  %s1116_s16 = int_to_ptr.vmem [resolvable:$true] %s1115_s16 }
 0x1e6   : > { %s1142_s22 = sshll.u32 %s8849_s5, 4  ;;  %s9343_s22 = int_to_ptr.vmem [resolvable:$true] %s1142_s22 }
 0x1e9   : > { %s8602_s10 = scalar_lea.hbm %s10079_s12, 32 }
 0x1ea   : > { %p8603_p13 = scmp.ne.s32.totalorder %s10079_s12, %s8602_s10  ;;  %p8609_p9 = scmp.lt.u32.totalorder %s8602_s10, %s10079_s12 }
 0x1ec   : > { %p8605_p6 = pnand %p8603_p13, %p9116_p0 }
 0x1ee   : > { %p8606_p5 = pneg %p8605_p6 }
 0x1f0   : > { %p8611_p10 = pnand %p8609_p9, %p8606_p5 }
 0x1f2   : > { %8614 = shalt.err (!%p8611_p10)
}
 0x1f3   : > { %s8615_s19 = scalar_lea.vmem %s1116_s16, 32  ;;  %p8623_p4 = scmp.lt.s32.totalorder %s1116_s16, %s1116_s16 }
 0x1f4   : > { %p8616_p1 = scmp.ne.s32.totalorder %s1116_s16, %s8615_s19  ;;  %p8624_p7 = scmp.lt.s32.totalorder %s8615_s19, %s8615_s19 }
 0x1f6   : > { %p8618_p2 = pnand %p8616_p1, %p9116_p0  ;;  %p8625_p8 = por %p8624_p7, %p8623_p4 }
 0x1f8   : > { %p8619_p3 = pneg %p8618_p2 }
 0x1fa   : > { %p8626_p11 = pnand %p8625_p8, %p8619_p3 }
 0x1fc   : > { %8629 = shalt.err (!%p8626_p11)
}
 0x1fd   : > { %s10080_s14 = sld [smem:[#allocation72_spill]] }
 0x1fe   : > { %7797 = dma.hbm_to_vmem [thread:$0]  (!%p9104_p12), %s10079_s12, 32, %s1116_s16, [#allocation32]  }
 0x203   : > { %s8630_s8 = scalar_lea.hbm %s10080_s14, 16 }
 0x204   : > { %p8631_p13 = scmp.ne.s32.totalorder %s10080_s14, %s8630_s8  ;;  %p8637_p9 = scmp.lt.u32.totalorder %s8630_s8, %s10080_s14 }
 0x206   : > { %p8633_p6 = pnand %p8631_p13, %p9116_p0 }
 0x208   : > { %p8634_p5 = pneg %p8633_p6 }
 0x20a   : > { %p8639_p10 = pnand %p8637_p9, %p8634_p5 }
 0x20c   : > { %8642 = shalt.err (!%p8639_p10)
}
 0x20d   : > { %s8643_s5 = scalar_lea.vmem %s9343_s22, 16  ;;  %s8650_s10 = scalar_lea.vmem %s9343_s22, 32 }
 0x20e   : > { %p8644_p1 = scmp.ne.s32.totalorder %s9343_s22, %s8643_s5  ;;  %p8651_p4 = scmp.lt.s32.totalorder %s9343_s22, %s9343_s22 }
 0x20f   : > { %p8652_p7 = scmp.lt.s32.totalorder %s8650_s10, %s8643_s5 }
 0x210   : > { %p8646_p2 = pnand %p8644_p1, %p9116_p0 }
 0x211   : > { %p8653_p8 = por %p8652_p7, %p8651_p4 }
 0x212   : > { %p8647_p3 = pneg %p8646_p2 }
 0x214   : > { %p8654_p11 = pnand %p8653_p8, %p8647_p3 }
 0x216   : > { %8657 = shalt.err (!%p8654_p11)
}
 0x217   : > { %7803 = dma.hbm_to_vmem [thread:$0]  (!%p9104_p12), %s10080_s14, 16, %s9343_s22, [#allocation35]  }
 0x218   : > { %s8850_s16 = smov [#allocation39]   ;;  %s8658_s8 = scalar_lea.hbm %s10059_s6, 16 }
 0x219   : > { %s1176_s19 = sshll.u32 %s8850_s16, 4  ;;  %p8659_p13 = scmp.ne.s32.totalorder %s10059_s6, %s8658_s8  ;;  %s1177_s19 = int_to_ptr.vmem [resolvable:$true] %s1176_s19 }
 0x21a   : > { %p8665_p9 = scmp.lt.u32.totalorder %s8658_s8, %s10059_s6 }
 0x21b   : > { %p8661_p6 = pnand %p8659_p13, %p9116_p0 }
 0x21d   : > { %p8662_p5 = pneg %p8661_p6 }
 0x21f   : > { %p8667_p10 = pnand %p8665_p9, %p8662_p5 }
 0x221   : > { %8670 = shalt.err (!%p8667_p10)
}
 0x222   : > { %s8671_s5 = scalar_lea.vmem %s1177_s19, 16  ;;  %s8678_s10 = scalar_lea.vmem %s1177_s19, 32 }
 0x223   : > { %p8672_p1 = scmp.ne.s32.totalorder %s1177_s19, %s8671_s5  ;;  %p8679_p4 = scmp.lt.s32.totalorder %s1177_s19, %s1177_s19 }
 0x224   : > { %p8680_p7 = scmp.lt.s32.totalorder %s8678_s10, %s8671_s5 }
 0x225   : > { %p8674_p2 = pnand %p8672_p1, %p9116_p0 }
 0x226   : > { %p8681_p8 = por %p8680_p7, %p8679_p4 }
 0x227   : > { %p8675_p3 = pneg %p8674_p2 }
 0x229   : > { %p8682_p11 = pnand %p8681_p8, %p8675_p3 }
 0x22b   : > { %8685 = shalt.err (!%p8682_p11)
}
 0x22c   : > { %7809 = dma.hbm_to_vmem [thread:$0]  (!%p9104_p12), %s10059_s6, 16, %s1177_s19, [#allocation38]  }
 0x22d   : > { %p10081_p13 = scmp.ne.s32.totalorder %s10066_s11, 0 }
 0x22e   : > { %p10082_p6 = scmp.eq.s32.totalorder (!%p10081_p13), %s9066_s29, 0 }
 0x22f   : > { %1205 = sbr.rel (%p10081_p13) target bundleno = 4769 (0x12a1), region = 164 }
 0x236   : > { %8731 = dma.done.wait (%p10082_p6), [#allocation11], 16   ;;  %p10083_p5 = pmov %p10082_p6 }
 0x238   : > { %8733 = vsyncadd (%p10083_p5), [#allocation11], 4294967280  ;;  %p10084_p0 = pmov %p10083_p5 }
 0x23a   : > { %8735 = dma.done.wait (%p10084_p0), [#allocation14], 3088   ;;  %p10085_p9 = pmov %p10084_p0 }
 0x23b   : > { %p10086_p10 = pmov %p10084_p0 }
 0x23c   : > { %8737 = vsyncadd (%p10085_p9), [#allocation14], 4294964208 }
 0x23d   : > { %8739 = dma.done.wait (%p10086_p10), [#allocation17], 3088   ;;  %p10087_p12 = pmov %p10084_p0 }
 0x23e   : > { %p10088_p1 = pmov %p10084_p0 }
 0x23f   : > { %8741 = vsyncadd (%p10087_p12), [#allocation17], 4294964208 }
 0x240   : > { %8743 = dma.done.wait (%p10088_p1), [#allocation20], 4096   ;;  %p10089_p2 = pmov %p10084_p0 }
 0x241   : > { %p10090_p3 = pmov %p10084_p0 }
 0x242   : > { %8745 = vsyncadd (%p10089_p2), [#allocation20], 4294963200 }
 0x243   : > { %8747 = dma.done.wait (%p10090_p3), [#allocation23], 3072   ;;  %p10091_p4 = pmov %p10084_p0 }
 0x244   : > { %p10092_p7 = pmov %p10084_p0 }
 0x245   : > { %8749 = vsyncadd (%p10091_p4), [#allocation23], 4294964224 }
 0x246   : > { %8751 = dma.done.wait (%p10092_p7), [#allocation26], 768   ;;  %p10093_p8 = pmov %p10084_p0 }
 0x247   : > { %p10094_p11 = pmov %p10084_p0 }
 0x248   : > { %8753 = vsyncadd (%p10093_p8), [#allocation26], 4294966528 }
 0x249   : > { %8755 = dma.done.wait (%p10094_p11), [#allocation29], 272   ;;  %p10095_p13 = pmov %p10084_p0 }
 0x24a   : > { %p10096_p6 = pmov %p10084_p0 }
 0x24b   : > { %8757 = vsyncadd (%p10095_p13), [#allocation29], 4294967024 }
 0x24c   : > { %8759 = dma.done.wait (%p10096_p6), [#allocation32], 1056   ;;  %p10097_p5 = pmov %p10084_p0 }
 0x24e   : > { %8761 = vsyncadd (%p10097_p5), [#allocation32], 4294966240 }
 0x24f   : > { %8763 = dma.done.wait (%p10084_p0), [#allocation35], 2064   ;;  %p10098_p9 = pmov %p10084_p0 }
 0x250   : > { %p10099_p10 = pmov %p10084_p0 }
 0x251   : > { %8765 = vsyncadd (%p10098_p9), [#allocation35], 4294965232 }
 0x252   : > { %8767 = dma.done.wait (%p10099_p10), [#allocation38], 32   ;;  %p10100_p12 = pmov %p10084_p0 }
 0x253   : > { %s10101_s11 = sld [smem:[#allocation53_spill]]  ;;  %s10102_s15 = sld [smem:[#allocation54_spill]]  ;;  %vm1398_vm0 = vcmask 130048   ;;  %v1415_v29 = vlaneseq }
 0x254   : > { %8769 = vsyncadd (%p10100_p12), [#allocation38], 4294967264  ;;  %s6231_s4 = sshll.u32 %s9066_s29, 4  ;;  %s10103_s19 = sld [smem:[#allocation59_spill]] }
 0x255   : > { %p1376_p1 = scmp.lt.s32.totalorder %s6231_s4, 31  ;;  %v9488_v37 = vshrl.u32 %v1415_v29, 7  ;;  %s8851_s8 = smov 64  }
 0x256   : > { %s2818_s5 = sld [smem:[#allocation3]]  ;;  %p1371_p2 = scmp.lt.s32.totalorder %s9066_s29, 1 }
 0x257   : > { %s10135_s4 = smov (!%p1376_p1, %s6231_s4), 31  ;;  %v1436_v41 = vand.u32 15, %v9488_v37  ;;  %v9496_v42 = vadd.s32 16, %v9488_v37  ;;  %v9508_v49 = vadd.s32 32, %v9488_v37  ;;  %v9517_v55 = vadd.s32 48, %v9488_v37  ;;  %s3765_s10 = sld [smem:[#allocation4]] }
 0x258   : > { %s6232_s22 = sshll.u32 %s10135_s4, 3  ;;  %v1424_v59 = vadd.s32 64, %v9488_v37  ;;  %v1426_v60 = vadd.s32 80, %v9488_v37  ;;  %v1428_v61 = vadd.s32 96, %v9488_v37  ;;  %v1430_v62 = vadd.s32 112, %v9488_v37  ;;  %s10122_s4 = sld [smem:[#allocation65_spill]] }
 0x259   : > { %s9425_s16 = scalar_lea.vmem %s10101_s11, %s6232_s22  ;;  %v1786_v0 = vld [vmem:[%s10102_s15 + $0x10] sm:$0xff]  ;;  %v1787_v1 = vld [vmem:[%s10102_s15 + $0x18] sm:$0xff]  ;;  %v1784_v9 = vld [vmem:[%s10102_s15] sm:$0xff]  ;;  %vm9502_vm1 = vcmp.ne.s32.totalorder %v1436_v41, 0  ;;  %v1450_v48 = vand.u32 15, %v9496_v42  ;;  %v1464_v58 = vand.u32 15, %v9508_v49 }
 0x25a   : > { %v1382_v2 = vld [vmem:[%s9425_s16] sm:$0xff]  ;;  %v7322_v3 = vpack.c.bf16 %v1787_v1, %v1786_v0  ;;  %v1383_v4 = vld [vmem:[%s9425_s16 + $0x8] sm:$0xff]  ;;  %v1384_v5 = vld [vmem:[%s9425_s16 + $0x10] sm:$0xff]  ;;  %s4201_s11 = sld [smem:[#allocation5]]  ;;  %s10123_s22 = sld [smem:[#allocation64_spill]] }
 0x25b   : > { %1399 = vst.msk [vmem:[#allocation2 + $0x8] sm:$0xff] %vm1398_vm0, %v1382_v2  ;;  %6779 = vmatprep.mubr.msk.f32.mxu0 %vm1398_vm0, %v1382_v2  ;;  %v1385_v6 = vld [vmem:[%s9425_s16 + $0x18] sm:$0xff]  ;;  %1400 = vst.msk [vmem:[#allocation2 + $0x10] sm:$0xff] %vm1398_vm0, %v1383_v4  ;;  %v1386_v7 = vld [vmem:[%s9425_s16 + $0x20] sm:$0xff]  ;;  %vm9519_vm2 = vcmp.ne.s32.totalorder %v1450_v48, 0  ;;  %vm9533_vm3 = vcmp.ne.s32.totalorder %v1464_v58, 0 }
 0x25c   : > { %1401 = vst.msk [vmem:[#allocation2 + $0x18] sm:$0xff] %vm1398_vm0, %v1384_v5  ;;  %1402 = vst.msk [vmem:[#allocation2 + $0x20] sm:$0xff] %vm1398_vm0, %v1385_v6  ;;  %v1387_v8 = vld [vmem:[%s9425_s16 + $0x28] sm:$0xff]  ;;  %7323 = vmatprep.subr.bf16.mxu0 %v7322_v3  ;;  %v1388_v11 = vld [vmem:[%s9425_s16 + $0x30] sm:$0xff]  ;;  %p10128_p4 = scmp.ne.s32.totalorder %s10064_s2, 0 }
 0x25d   : > { %1403 = vst.msk [vmem:[#allocation2 + $0x28] sm:$0xff] %vm1398_vm0, %v1386_v7  ;;  %1404 = vst.msk [vmem:[#allocation2 + $0x30] sm:$0xff] %vm1398_vm0, %v1387_v8  ;;  %v1785_v10 = vld [vmem:[%s10102_s15 + $0x8] sm:$0xff]  ;;  %v1389_v12 = vld [vmem:[%s9425_s16 + $0x38] sm:$0xff]  ;;  %7325 = vmatpush3.bf16.msra.mxu0 %v7322_v3 }
 0x25e   : > { %v7326_v13 = vpack.c.bf16 %v1785_v10, %v1784_v9  ;;  %1405 = vst.msk [vmem:[#allocation2 + $0x38] sm:$0xff] %vm1398_vm0, %v1388_v11  ;;  %1406 = vst.msk [vmem:[#allocation2 + $0x40] sm:$0xff] %vm1398_vm0, %v1389_v12  ;;  %v1390_v14 = vld [vmem:[%s9425_s16 + $0x40] sm:$0xff]  ;;  %v1391_v15 = vld [vmem:[%s9425_s16 + $0x48] sm:$0xff] }
 0x25f   : > { %v1392_v16 = vld [vmem:[%s9425_s16 + $0x50] sm:$0xff]  ;;  %1407 = vst.msk [vmem:[#allocation2 + $0x48] sm:$0xff] %vm1398_vm0, %v1390_v14  ;;  %1408 = vst.msk [vmem:[#allocation2 + $0x50] sm:$0xff] %vm1398_vm0, %v1391_v15  ;;  %v1393_v17 = vld [vmem:[%s9425_s16 + $0x58] sm:$0xff] }
 0x260   : > { %1409 = vst.msk [vmem:[#allocation2 + $0x58] sm:$0xff] %vm1398_vm0, %v1392_v16  ;;  %v1394_v18 = vld [vmem:[%s9425_s16 + $0x60] sm:$0xff]  ;;  %v1395_v19 = vld [vmem:[%s9425_s16 + $0x68] sm:$0xff]  ;;  %7327 = vmatprep.subr.bf16.mxu0 %v7326_v13  ;;  %1410 = vst.msk [vmem:[#allocation2 + $0x60] sm:$0xff] %vm1398_vm0, %v1393_v17  ;;  %6780 = vmatmul.mubr.msk.f32.vlgmr.msra.gmra.mrb[0].mxu0 %vm1398_vm0, %v1383_v4  ;;  %v1478_v4 = vand.u32 15, %v9517_v55 }
 0x261   : > { %1411 = vst.msk [vmem:[#allocation2 + $0x68] sm:$0xff] %vm1398_vm0, %v1394_v18  ;;  %1412 = vst.msk [vmem:[#allocation2 + $0x70] sm:$0xff] %vm1398_vm0, %v1395_v19  ;;  %v1396_v20 = vld [vmem:[%s9425_s16 + $0x70] sm:$0xff]  ;;  %v9462_v21 = vld [vmem:[%s9425_s16 + $0x78] sm:$0xff]  ;;  %6782 = vmatprep.mubr.msk.f32.mxu0 %vm1398_vm0, %v1384_v5  ;;  %7329 = vmatpush3.bf16.msra.mxu0 %v7326_v13  ;;  %v1492_v5 = vand.u32 15, %v1424_v59  ;;  %s10124_s16 = sld [smem:[#allocation70_spill]] }
 0x262   : > { %v2174_v22 = vld [vmem:[%s10102_s15 + $0x20] sm:$0xff]  ;;  %1413 = vst.msk [vmem:[#allocation2 + $0x78] sm:$0xff] %vm1398_vm0, %v1396_v20  ;;  %1414 = vst.msk [vmem:[#allocation2 + $0x80] sm:$0xff] %vm1398_vm0, %v9462_v21  ;;  %v2175_v23 = vld [vmem:[%s10102_s15 + $0x28] sm:$0xff]  ;;  %vm9549_vm4 = vcmp.ne.s32.totalorder %v1478_v4, 0 }
 0x263   : > { %v2408_v24 = vld [vmem:[%s10103_s19] sm:$0xff]  ;;  %v9472_v25 = vpack.c.bf16 %v2175_v23, %v2174_v22  ;;  %v2409_v26 = vld [vmem:[%s10103_s19 + $0x8] sm:$0xff]  ;;  %v2410_v28 = vld [vmem:[%s10103_s19 + $0x10] sm:$0xff]  ;;  %vm9553_vm5 = vcmp.ne.s32.totalorder %v1492_v5, 0 }
 0x264   : > { %v7334_v27 = vpack.c.bf16 %v2409_v26, %v2408_v24  ;;  %6783 = vmatmul.mubr.msk.f32.gmra.mrb[2].mxu0 %vm1398_vm0, %v1385_v6  ;;  %v2411_v30 = vld [vmem:[%s10103_s19 + $0x18] sm:$0xff]  ;;  %v2412_v31 = vld [vmem:[%s10103_s19 + $0x20] sm:$0xff]  ;;  %v2413_v33 = vld [vmem:[%s10103_s19 + $0x28] sm:$0xff]  ;;  %v1506_v6 = vand.u32 15, %v1426_v60  ;;  %v9573_v24 = vadd.s32 40, %v9488_v37 }
 0x265   : > { %7331 = vmatprep.subr.bf16.mxu0 %v9472_v25  ;;  %6785 = vmatprep.mubr.msk.f32.mxu0 %vm1398_vm0, %v1386_v7  ;;  %v7338_v32 = vpack.c.bf16 %v2411_v30, %v2410_v28  ;;  %v7342_v34 = vpack.c.bf16 %v2413_v33, %v2412_v31  ;;  %v2414_v35 = vld [vmem:[%s10103_s19 + $0x30] sm:$0xff]  ;;  %v2415_v36 = vld [vmem:[%s10103_s19 + $0x38] sm:$0xff]  ;;  %v2416_v38 = vld [vmem:[%s10103_s19 + $0x40] sm:$0xff]  ;;  %v1520_v7 = vand.u32 15, %v1428_v61  ;;  %v1429_v61 = vadd.s32 104, %v9488_v37 }
 0x266   : > { %7335 = vmatprep.subr.bf16.mxu1 %v7334_v27  ;;  %v2417_v39 = vld [vmem:[%s10103_s19 + $0x48] sm:$0xff]  ;;  %v7346_v40 = vpack.c.bf16 %v2415_v36, %v2414_v35  ;;  %v2418_v43 = vld [vmem:[%s10103_s19 + $0x50] sm:$0xff]  ;;  %v2419_v44 = vld [vmem:[%s10103_s19 + $0x58] sm:$0xff]  ;;  %vm9558_vm6 = vcmp.ne.s32.totalorder %v1506_v6, 0 }
 0x267   : > { %7337 = vmatpush3.bf16.msra.mxu1 %v7334_v27  ;;  %v1640_v45 = vld [vmem:[#allocation2 + $0x7] sm:$0xff]  ;;  %v7350_v46 = vpack.c.bf16 %v2417_v39, %v2416_v38  ;;  %v1642_v50 = vld [vmem:[#allocation2 + $0x17] sm:$0xff]  ;;  %v7354_v51 = vpack.c.bf16 %v2419_v44, %v2418_v43  ;;  %v1641_v56 = vld [vmem:[#allocation2 + $0xf] sm:$0xff]  ;;  %vm9562_vm7 = vcmp.ne.s32.totalorder %v1520_v7, 0  ;;  %v1471_v43 = vand.u32 15, %v9573_v24 }
 0x268   : > { %6786 = vmatmul.mubr.msk.f32.gmra.mrb[4].mxu0 %vm1398_vm0, %v1387_v8  ;;  %7339 = vmatprep.subr.bf16.mxu1 %v7338_v32  ;;  %v2420_v52 = vld [vmem:[%s10103_s19 + $0x60] sm:$0xff]  ;;  %v2421_v53 = vld [vmem:[%s10103_s19 + $0x68] sm:$0xff]  ;;  %v1688_v54 = vsel %vm9502_vm1, %v1640_v45, 0.0  ;;  %v1690_v0 = vsel %vm9519_vm2, %v1642_v50, 0.0  ;;  %v1534_v8 = vand.u32 15, %v1430_v62  ;;  %v1646_v9 = vld [vmem:[#allocation2 + $0x37] sm:$0xff] }
 0x269   : > { %6788 = vmatprep.mubr.msk.f32.mxu0 %vm1398_vm0, %v1388_v11  ;;  %v1644_v63 = vld [vmem:[#allocation2 + $0x27] sm:$0xff]  ;;  %v7358_v1 = vpack.c.bf16 %v2421_v53, %v2420_v52  ;;  %v1643_v2 = vld [vmem:[#allocation2 + $0x1f] sm:$0xff]  ;;  %v9542_v11 = vadd.s32 8, %v9488_v37  ;;  %v1650_v13 = vld [vmem:[#allocation2 + $0x57] sm:$0xff]  ;;  %v9600_v44 = vadd.s32 56, %v9488_v37  ;;  %vm1709_vm11 = vcmp.ne.s32.totalorder %v1471_v43, 15 }
 0x26a   : > { %v1648_v10 = vld [vmem:[#allocation2 + $0x47] sm:$0xff]  ;;  %vm9566_vm8 = vcmp.ne.s32.totalorder %v1534_v8, 0  ;;  %v1647_v28 = vld [vmem:[#allocation2 + $0x3f] sm:$0xff]  ;;  %v1698_v29 = vsel %vm9558_vm6, %v1650_v13, 0.0  ;;  %v1721_v38 = vld [vmem:[#allocation2 + $0x11] sm:$0xff]  ;;  %v1425_v50 = vadd.s32 72, %v9488_v37 }
 0x26b   : > { %7341 = vmatpush3.bf16.msra.mxu1 %v7338_v32  ;;  %v1443_v23 = vand.u32 15, %v9542_v11  ;;  %v1696_v26 = vsel %vm9553_vm5, %v1648_v10, 0.0  ;;  %v1649_v32 = vld [vmem:[#allocation2 + $0x4f] sm:$0xff]  ;;  %v1651_v33 = vld [vmem:[#allocation2 + $0x5f] sm:$0xff]  ;;  %v1485_v48 = vand.u32 15, %v9600_v44 }
 0x26c   : > { %6789 = vmatmul.mubr.msk.f32.gmra.mrb[6].mxu0 %vm1398_vm0, %v1389_v12  ;;  %7343 = vmatprep.subr.bf16.mxu1 %v7342_v34  ;;  %v1692_v12 = vsel %vm9533_vm3, %v1644_v63, 0.0  ;;  %v1655_v35 = vld [vmem:[#allocation2 + $0x7f] sm:$0xff]  ;;  %v1720_v36 = vld [vmem:[#allocation2 + $0x9] sm:$0xff]  ;;  %v1725_v47 = vld [vmem:[#allocation2 + $0x31] sm:$0xff]  ;;  %vm2844_vm3 = vcmask 523264  }
 0x26d   : > { %6791 = vmatprep.mubr.msk.f32.mxu0 %vm1398_vm0, %v1390_v14  ;;  %v1652_v14 = vld [vmem:[#allocation2 + $0x67] sm:$0xff]  ;;  %vm1705_vm9 = vcmp.ne.s32.totalorder %v1443_v23, 15  ;;  %v1726_v52 = vld [vmem:[#allocation2 + $0x39] sm:$0xff]  ;;  %vm1711_vm12 = vcmp.ne.s32.totalorder %v1485_v48, 15  ;;  %v1729_v59 = vld [vmem:[#allocation2 + $0x51] sm:$0xff] }
 0x26e   : > { %v1700_v30 = vsel %vm9562_vm7, %v1652_v14, 0.0  ;;  %v1769_v39 = vsel %vm1705_vm9, %v1721_v38, 0.0  ;;  %v1723_v41 = vld [vmem:[#allocation2 + $0x21] sm:$0xff]  ;;  %v1728_v58 = vld [vmem:[#allocation2 + $0x49] sm:$0xff]  ;;  %v1730_v63 = vld [vmem:[#allocation2 + $0x59] sm:$0xff] }
 0x26f   : > { %7345 = vmatpush3.bf16.msra.mxu1 %v7342_v34  ;;  %v1653_v34 = vld [vmem:[#allocation2 + $0x6f] sm:$0xff]  ;;  %v1727_v53 = vld [vmem:[#allocation2 + $0x41] sm:$0xff]  ;;  %v1734_v8 = vld [vmem:[#allocation2 + $0x79] sm:$0xff] }
 0x270   : > { %6792 = vmatmul.mubr.msk.f32.gmra.mrb[8].mxu0 %vm1398_vm0, %v1391_v15  ;;  %7347 = vmatprep.subr.bf16.mxu1 %v7346_v40  ;;  %v1654_v15 = vld [vmem:[#allocation2 + $0x77] sm:$0xff]  ;;  %v1775_v57 = vsel %vm1711_vm12, %v1727_v53, 0.0  ;;  %v1732_v4 = vld [vmem:[#allocation2 + $0x69] sm:$0xff] }
 0x271   : > { %6794 = vmatprep.mubr.msk.f32.mxu0 %vm1398_vm0, %v1392_v16  ;;  %v9547_v16 = vadd.s32 24, %v9488_v37  ;;  %v1702_v31 = vsel %vm9566_vm8, %v1654_v15, 0.0  ;;  %v1733_v5 = vld [vmem:[#allocation2 + $0x71] sm:$0xff]  ;;  %v6281_v15 = vld [vmem:[#allocation10] ss:$0 sm:$0xff] }
 0x272   : > { %v2423_v13 = vld [vmem:[%s10103_s19 + $0x78] sm:$0xff] }
 0x273   : > { %7349 = vmatpush3.bf16.msra.mxu1 %v7346_v40  ;;  %v1457_v27 = vand.u32 15, %v9547_v16  ;;  %v1722_v40 = vld [vmem:[#allocation2 + $0x19] sm:$0xff] }
 0x274   : > { %6795 = vmatmul.mubr.msk.f32.gmra.mrb[10].mxu0 %vm1398_vm0, %v1393_v17  ;;  %7351 = vmatprep.subr.bf16.mxu1 %v7350_v46  ;;  %v1645_v17 = vld [vmem:[#allocation2 + $0x2f] sm:$0xff] }
 0x275   : > { %6797 = vmatprep.mubr.msk.f32.mxu0 %vm1398_vm0, %v1394_v18  ;;  %vm1707_vm10 = vcmp.ne.s32.totalorder %v1457_v27, 15 }
 0x276   : > { %v1771_v45 = vsel %vm1707_vm10, %v1723_v41, 0.0 }
 0x277   : > { %7353 = vmatpush3.bf16.msra.mxu1 %v7350_v46  ;;  %v1724_v46 = vld [vmem:[#allocation2 + $0x29] sm:$0xff] }
 0x278   : > { %6798 = vmatmul.mubr.msk.f32.gmra.mrb[12].mxu0 %vm1398_vm0, %v1395_v19  ;;  %7355 = vmatprep.subr.bf16.mxu1 %v7354_v51 }
 0x279   : > { %6800 = vmatprep.mubr.msk.f32.mxu0 %vm1398_vm0, %v1396_v20 }
 0x27b   : > { %7357 = vmatpush3.bf16.msra.mxu1 %v7354_v51  ;;  %v1773_v51 = vsel %vm1709_vm11, %v1725_v47, 0.0 }
 0x27c   : > { %6801 = vmatmul.mubr.msk.f32.gmra.mrb[14].mxu0 %vm1398_vm0, %v9462_v21  ;;  %7359 = vmatprep.subr.bf16.mxu1 %v7358_v1 }
 0x27d   : > { %6807 = vmatprep.mubr.msk.f32.mxu0 %vm1398_vm0, %v1688_v54  ;;  %v1499_v54 = vand.u32 15, %v1425_v50 }
 0x27f   : > { %7361 = vmatpush3.bf16.msra.mxu1 %v7358_v1  ;;  %vm1713_vm13 = vcmp.ne.s32.totalorder %v1499_v54, 15  ;;  %v1527_v1 = vand.u32 15, %v1429_v61 }
 0x280   : > { %6808 = vmatmul.mubr.msk.f32.vlgmr.msra.gmra.mrb[0].mxu0 %vm1398_vm0, %v1641_v56  ;;  %v1427_v56 = vadd.s32 88, %v9488_v37  ;;  %v1777_v62 = vsel %vm1713_vm13, %v1729_v59, 0.0 }
 0x281   : > { %6810 = vmatprep.mubr.msk.f32.mxu0 %vm1398_vm0, %v1690_v0  ;;  %7333 = vmatpush3.bf16.msra.mxu0 %v9472_v25  ;;  %v1694_v25 = vsel %vm9549_vm4, %v1646_v9, 0.0  ;;  %v1731_v0 = vld [vmem:[#allocation2 + $0x61] sm:$0xff]  ;;  %vm1717_vm15 = vcmp.ne.s32.totalorder %v1527_v1, 15 }
 0x282   : > { %v1513_v60 = vand.u32 15, %v1427_v56  ;;  %v1781_v7 = vsel %vm1717_vm15, %v1733_v5, 0.0  ;;  %v1735_v9 = vld [vmem:[#allocation2 + $0x81] sm:$0xff] }
 0x284   : > { %6811 = vmatmul.mubr.msk.f32.gmra.mrb[2].mxu0 %vm1398_vm0, %v1643_v2  ;;  %vm1715_vm14 = vcmp.ne.s32.totalorder %v1513_v60, 15  ;;  %v1431_v2 = vadd.s32 120, %v9488_v37 }
 0x285   : > { %6813 = vmatprep.mubr.msk.f32.mxu0 %vm1398_vm0, %v1692_v12  ;;  %v1779_v3 = vsel %vm1715_vm14, %v1731_v0, 0.0  ;;  %v2422_v12 = vld [vmem:[%s10103_s19 + $0x70] sm:$0xff] }
 0x286   : > { %v1541_v6 = vand.u32 15, %v1431_v2  ;;  %v7362_v14 = vpack.c.bf16 %v2423_v13, %v2422_v12  ;;  %v2649_v13 = vld [vmem:[#allocation19] sm:$0xff] }
 0x288   : > { %6814 = vmatmul.mubr.msk.f32.gmra.mrb[4].mxu0 %vm1398_vm0, %v1645_v17  ;;  %vm1719_vm1 = vcmp.ne.s32.totalorder %v1541_v6, 15  ;;  %7363 = vmatprep.subr.bf16.mxu1 %v7362_v14 }
 0x289   : > { %6816 = vmatprep.mubr.msk.f32.mxu0 %vm1398_vm0, %v1694_v25  ;;  %v1783_v10 = vsel %vm1719_vm1, %v1735_v9, 0.0  ;;  %7365 = vmatpush3.bf16.msra.mxu1 %v7362_v14 }
 0x28c   : > { %6817 = vmatmul.mubr.msk.f32.gmra.mrb[6].mxu0 %vm1398_vm0, %v1647_v28 }
 0x28d   : > { %6819 = vmatprep.mubr.msk.f32.mxu0 %vm1398_vm0, %v1696_v26 }
 0x290   : > { %6820 = vmatmul.mubr.msk.f32.gmra.mrb[8].mxu0 %vm1398_vm0, %v1649_v32 }
 0x291   : > { %6822 = vmatprep.mubr.msk.f32.mxu0 %vm1398_vm0, %v1698_v29 }
 0x294   : > { %6823 = vmatmul.mubr.msk.f32.gmra.mrb[10].mxu0 %vm1398_vm0, %v1651_v33 }
 0x295   : > { %6825 = vmatprep.mubr.msk.f32.mxu0 %vm1398_vm0, %v1700_v30 }
 0x298   : > { %6826 = vmatmul.mubr.msk.f32.gmra.mrb[12].mxu0 %vm1398_vm0, %v1653_v34 }
 0x299   : > { %6828 = vmatprep.mubr.msk.f32.mxu0 %vm1398_vm0, %v1702_v31 }
 0x29c   : > { %6829 = vmatmul.mubr.msk.f32.gmra.mrb[14].mxu0 %vm1398_vm0, %v1655_v35 }
 0x29d   : > { %6835 = vmatprep.mubr.msk.f32.mxu0 %vm1398_vm0, %v1720_v36 }
 0x2a0   : > { %6836 = vmatmul.mubr.msk.f32.vlgmr.msra.gmra.mrb[0].mxu0 %vm1398_vm0, %v1769_v39 }
 0x2a1   : > { %6838 = vmatprep.mubr.msk.f32.mxu0 %vm1398_vm0, %v1722_v40 }
 0x2a4   : > { %6839 = vmatmul.mubr.msk.f32.gmra.mrb[2].mxu0 %vm1398_vm0, %v1771_v45 }
 0x2a5   : > { %6841 = vmatprep.mubr.msk.f32.mxu0 %vm1398_vm0, %v1724_v46 }
 0x2a8   : > { %6842 = vmatmul.mubr.msk.f32.gmra.mrb[4].mxu0 %vm1398_vm0, %v1773_v51 }
 0x2a9   : > { %6844 = vmatprep.mubr.msk.f32.mxu0 %vm1398_vm0, %v1726_v52 }
 0x2ac   : > { %6845 = vmatmul.mubr.msk.f32.gmra.mrb[6].mxu0 %vm1398_vm0, %v1775_v57 }
 0x2ad   : > { %6847 = vmatprep.mubr.msk.f32.mxu0 %vm1398_vm0, %v1728_v58 }
 0x2b0   : > { %6848 = vmatmul.mubr.msk.f32.gmra.mrb[8].mxu0 %vm1398_vm0, %v1777_v62 }
 0x2b1   : > { %6850 = vmatprep.mubr.msk.f32.mxu0 %vm1398_vm0, %v1730_v63 }
 0x2b4   : > { %6851 = vmatmul.mubr.msk.f32.gmra.mrb[10].mxu0 %vm1398_vm0, %v1779_v3 }
 0x2b5   : > { %6853 = vmatprep.mubr.msk.f32.mxu0 %vm1398_vm0, %v1732_v4 }
 0x2b8   : > { %6854 = vmatmul.mubr.msk.f32.gmra.mrb[12].mxu0 %vm1398_vm0, %v1781_v7 }
 0x2b9   : > { %6856 = vmatprep.mubr.msk.f32.mxu0 %vm1398_vm0, %v1734_v8 }
 0x2bc   : > { %6857 = vmatmul.mubr.msk.f32.gmra.mrb[14].mxu0 %vm1398_vm0, %v1783_v10 }
 0x373   : > { %v6837_v17 = vpop.f32.mrb[0].mxu0 }
 0x374   : > { %v2290_v18 = vpop.f32.mrb[1].mxu0  ;;  %v2393_v20 = vadd.f32 %v6837_v17, %v6281_v15 }
 0x375   : > { %v2392_v19 = vadd.f32 %v6281_v15, %v2290_v18 }
 0x377   : > { %v6840_v21 = vpop.f32.mrb[2].mxu0  ;;  %6891 = vmatprep.mubr.f32.mxu1 %v2392_v19 }
 0x378   : > { %v2300_v22 = vpop.f32.mrb[3].mxu0  ;;  %6892 = vmatmul.mubr.f32.vlgmr.msra.gmra.mrb[0].mxu1 %v2393_v20  ;;  %v2395_v25 = vadd.f32 %v6840_v21, %v6281_v15 }
 0x379   : > { %v2394_v23 = vadd.f32 %v6281_v15, %v2300_v22 }
 0x37b   : > { %v6843_v26 = vpop.f32.mrb[4].mxu0  ;;  %6894 = vmatprep.mubr.f32.mxu1 %v2394_v23 }
 0x37c   : > { %v2310_v27 = vpop.f32.mrb[5].mxu0  ;;  %6895 = vmatmul.mubr.f32.gmra.mrb[2].mxu1 %v2395_v25  ;;  %v2397_v29 = vadd.f32 %v6843_v26, %v6281_v15 }
 0x37d   : > { %v2396_v28 = vadd.f32 %v6281_v15, %v2310_v27 }
 0x37f   : > { %v6846_v30 = vpop.f32.mrb[6].mxu0  ;;  %6897 = vmatprep.mubr.f32.mxu1 %v2396_v28 }
 0x380   : > { %v2320_v31 = vpop.f32.mrb[7].mxu0  ;;  %6898 = vmatmul.mubr.f32.gmra.mrb[4].mxu1 %v2397_v29  ;;  %v2399_v33 = vadd.f32 %v6846_v30, %v6281_v15 }
 0x381   : > { %v2398_v32 = vadd.f32 %v6281_v15, %v2320_v31 }
 0x383   : > { %v6849_v34 = vpop.f32.mrb[8].mxu0  ;;  %6900 = vmatprep.mubr.f32.mxu1 %v2398_v32 }
 0x384   : > { %v2330_v35 = vpop.f32.mrb[9].mxu0  ;;  %6901 = vmatmul.mubr.f32.gmra.mrb[6].mxu1 %v2399_v33  ;;  %v2401_v38 = vadd.f32 %v6849_v34, %v6281_v15 }
 0x385   : > { %v2400_v36 = vadd.f32 %v6281_v15, %v2330_v35 }
 0x387   : > { %v6852_v39 = vpop.f32.mrb[10].mxu0  ;;  %6903 = vmatprep.mubr.f32.mxu1 %v2400_v36 }
 0x388   : > { %v2340_v40 = vpop.f32.mrb[11].mxu0  ;;  %6904 = vmatmul.mubr.f32.gmra.mrb[8].mxu1 %v2401_v38  ;;  %v2403_v43 = vadd.f32 %v6852_v39, %v6281_v15 }
 0x389   : > { %v2402_v41 = vadd.f32 %v6281_v15, %v2340_v40 }
 0x38b   : > { %v6855_v45 = vpop.f32.mrb[12].mxu0  ;;  %6906 = vmatprep.mubr.f32.mxu1 %v2402_v41 }
 0x38c   : > { %v2350_v46 = vpop.f32.mrb[13].mxu0  ;;  %6907 = vmatmul.mubr.f32.gmra.mrb[10].mxu1 %v2403_v43  ;;  %v2405_v48 = vadd.f32 %v6855_v45, %v6281_v15 }
 0x38d   : > { %v2404_v47 = vadd.f32 %v6281_v15, %v2350_v46 }
 0x38f   : > { %v6858_v50 = vpop.f32.mrb[14].mxu0  ;;  %6909 = vmatprep.mubr.f32.mxu1 %v2404_v47 }
 0x390   : > { %v2360_v51 = vpop.f32.mrb[15].mxu0  ;;  %6910 = vmatmul.mubr.f32.gmra.mrb[12].mxu1 %v2405_v48  ;;  %v2407_v53 = vadd.f32 %v6858_v50, %v6281_v15 }
 0x391   : > { %v2406_v52 = vadd.f32 %v6281_v15, %v2360_v51 }
 0x393   : > { %6912 = vmatprep.mubr.f32.mxu1 %v2406_v52 }
 0x394   : > { %6913 = vmatmul.mubr.f32.gmra.mrb[14].mxu1 %v2407_v53 }
 0x395   : > { %6947 = vmatprep.mubr.f32.mxu1 %v2649_v13  ;;  %v2652_v13 = vld [vmem:[#allocation19 + $0x18] sm:$0xff] }
 0x44b   : > { %v6893_v54 = vpop.f32.mrb[0].mxu1 }
 0x44c   : > { %v2490_v56 = vpop.f32.mrb[1].mxu1 }
 0x44d   : > { %v7954_v57 = vpack.i.bf16 %v6893_v54, %v2490_v56 }
 0x44f   : > { %7955 = vrot.lane.b32.xlu0 %v7954_v57, %s8851_s8  ;;  %v6896_v58 = vpop.f32.mrb[2].mxu1 }
 0x450   : > { %v2500_v59 = vpop.f32.mrb[3].mxu1 }
 0x451   : > { %v7959_v60 = vpack.i.bf16 %v6896_v58, %v2500_v59 }
 0x453   : > { %7960 = vrot.lane.b32.xlu0 %v7959_v60, %s8851_s8  ;;  %v6899_v61 = vpop.f32.mrb[4].mxu1 }
 0x454   : > { %v2510_v62 = vpop.f32.mrb[5].mxu1 }
 0x455   : > { %v7964_v63 = vpack.i.bf16 %v6899_v61, %v2510_v62 }
 0x457   : > { %7965 = vrot.lane.b32.xlu1 %v7964_v63, %s8851_s8  ;;  %v6902_v0 = vpop.f32.mrb[6].mxu1 }
 0x458   : > { %v2520_v1 = vpop.f32.mrb[7].mxu1 }
 0x459   : > { %v7969_v2 = vpack.i.bf16 %v6902_v0, %v2520_v1 }
 0x45b   : > { %7970 = vrot.lane.b32.xlu1 %v7969_v2, %s8851_s8  ;;  %v6905_v3 = vpop.f32.mrb[8].mxu1 }
 0x45c   : > { %v2530_v4 = vpop.f32.mrb[9].mxu1 }
 0x45d   : > { %v7974_v5 = vpack.i.bf16 %v6905_v3, %v2530_v4 }
 0x45f   : > { %7975 = vrot.lane.b32.xlu0 %v7974_v5, %s8851_s8  ;;  %v6908_v6 = vpop.f32.mrb[10].mxu1 }
 0x460   : > { %v2540_v7 = vpop.f32.mrb[11].mxu1 }
 0x461   : > { %v7979_v8 = vpack.i.bf16 %v6908_v6, %v2540_v7 }
 0x463   : > { %7980 = vrot.lane.b32.xlu1 %v7979_v8, %s8851_s8  ;;  %v6911_v9 = vpop.f32.mrb[12].mxu1 }
 0x464   : > { %v2550_v10 = vpop.f32.mrb[13].mxu1 }
 0x465   : > { %v7984_v12 = vpack.i.bf16 %v6911_v9, %v2550_v10 }
 0x467   : > { %7985 = vrot.lane.b32.xlu0 %v7984_v12, %s8851_s8  ;;  %v6914_v14 = vpop.f32.mrb[14].mxu1  ;;  %v2651_v12 = vld [vmem:[#allocation19 + $0x10] sm:$0xff] }
 0x468   : > { %v2560_v15 = vpop.f32.mrb[15].mxu1 }
 0x469   : > { %v7989_v17 = vpack.i.bf16 %v6914_v14, %v2560_v15 }
 0x46b   : > { %7990 = vrot.lane.b32.xlu1 %v7989_v17, %s8851_s8  ;;  %v2655_v17 = vld [vmem:[#allocation19 + $0x30] sm:$0xff] }
 0x4c1   : > { %v7956_v18 = vpop.permute.xlu0 %7955 }
 0x4c2   : > { %v7958_v19 = vunpack.i.h.bf16 %v7956_v18  ;;  %v7957_v20 = vunpack.i.l.bf16 %v7956_v18  ;;  %v2656_v18 = vld [vmem:[#allocation19 + $0x38] sm:$0xff] }
 0x4c4   : > { %v2634_v21 = vmax.f32 %v6893_v54, %v7958_v19  ;;  %v2633_v22 = vmax.f32 %v2490_v56, %v7957_v20  ;;  %v2659_v19 = vld [vmem:[#allocation19 + $0x50] sm:$0xff]  ;;  %v2660_v20 = vld [vmem:[#allocation19 + $0x58] sm:$0xff] }
 0x4c5   : > { %v7961_v23 = vpop.permute.xlu0 %7960 }
 0x4c6   : > { %v7963_v25 = vunpack.i.h.bf16 %v7961_v23  ;;  %v7962_v26 = vunpack.i.l.bf16 %v7961_v23  ;;  %v7366_v27 = vpack.c.bf16 %v2634_v21, %v2633_v22  ;;  %v2661_v21 = vld [vmem:[#allocation19 + $0x60] sm:$0xff]  ;;  %v2662_v22 = vld [vmem:[#allocation19 + $0x68] sm:$0xff]  ;;  %v2663_v23 = vld [vmem:[#allocation19 + $0x70] sm:$0xff] }
 0x4c8   : > { %v2636_v28 = vmax.f32 %v6896_v58, %v7963_v25  ;;  %v2635_v29 = vmax.f32 %v2500_v59, %v7962_v26  ;;  %7367 = vmatprep.subr.bf16.mxu1 %v7366_v27  ;;  %v2664_v25 = vld [vmem:[#allocation19 + $0x78] sm:$0xff] }
 0x4c9   : > { %7369 = vmatpush3.bf16.msra.mxu1 %v7366_v27  ;;  %v7966_v30 = vpop.permute.xlu1 %7965  ;;  %v3037_v26 = vld [vmem:[#allocation13 + $0x40] sm:$0xff]  ;;  %v3038_v27 = vld [vmem:[#allocation13 + $0x48] sm:$0xff] }
 0x4ca   : > { %v7968_v31 = vunpack.i.h.bf16 %v7966_v30  ;;  %v7967_v32 = vunpack.i.l.bf16 %v7966_v30  ;;  %v7370_v33 = vpack.c.bf16 %v2636_v28, %v2635_v29  ;;  %v7398_v28 = vpack.c.bf16 %v3038_v27, %v3037_v26  ;;  %v3039_v29 = vld [vmem:[#allocation13 + $0x50] sm:$0xff]  ;;  %v3040_v30 = vld [vmem:[#allocation13 + $0x58] sm:$0xff] }
 0x4cc   : > { %v2638_v34 = vmax.f32 %v6899_v61, %v7968_v31  ;;  %v2637_v35 = vmax.f32 %v2510_v62, %v7967_v32  ;;  %7371 = vmatprep.subr.bf16.mxu1 %v7370_v33  ;;  %v7402_v31 = vpack.c.bf16 %v3040_v30, %v3039_v29  ;;  %v3041_v32 = vld [vmem:[#allocation13 + $0x60] sm:$0xff] }
 0x4cd   : > { %7373 = vmatpush3.bf16.msra.mxu1 %v7370_v33  ;;  %v7971_v36 = vpop.permute.xlu1 %7970  ;;  %v3042_v33 = vld [vmem:[#allocation13 + $0x68] sm:$0xff] }
 0x4ce   : > { %v7973_v38 = vunpack.i.h.bf16 %v7971_v36  ;;  %v7972_v39 = vunpack.i.l.bf16 %v7971_v36  ;;  %v7374_v40 = vpack.c.bf16 %v2638_v34, %v2637_v35  ;;  %v7406_v34 = vpack.c.bf16 %v3042_v33, %v3041_v32  ;;  %v3043_v35 = vld [vmem:[#allocation13 + $0x70] sm:$0xff]  ;;  %v3044_v36 = vld [vmem:[#allocation13 + $0x78] sm:$0xff]  ;;  %v3034_v32 = vld [vmem:[#allocation13 + $0x28] sm:$0xff] }
 0x4d0   : > { %v2640_v41 = vmax.f32 %v6902_v0, %v7973_v38  ;;  %v2639_v43 = vmax.f32 %v2520_v1, %v7972_v39  ;;  %7375 = vmatprep.subr.bf16.mxu1 %v7374_v40  ;;  %v7410_v38 = vpack.c.bf16 %v3044_v36, %v3043_v35  ;;  %v3029_v39 = vld [vmem:[#allocation13] sm:$0xff] }
 0x4d1   : > { %7377 = vmatpush3.bf16.msra.mxu1 %v7374_v40  ;;  %v7976_v45 = vpop.permute.xlu0 %7975  ;;  %v3030_v40 = vld [vmem:[#allocation13 + $0x8] sm:$0xff] }
 0x4d2   : > { %v7978_v46 = vunpack.i.h.bf16 %v7976_v45  ;;  %v7977_v47 = vunpack.i.l.bf16 %v7976_v45  ;;  %v7378_v48 = vpack.c.bf16 %v2640_v41, %v2639_v43  ;;  %v9632_v41 = vpack.c.bf16 %v3030_v40, %v3029_v39  ;;  %v3463_v43 = vld [vmem:[#allocation21] sm:$0xff]  ;;  %v3464_v45 = vld [vmem:[#allocation21 + $0x8] sm:$0xff] }
 0x4d4   : > { %v2642_v50 = vmax.f32 %v6905_v3, %v7978_v46  ;;  %v2641_v51 = vmax.f32 %v2530_v4, %v7977_v47  ;;  %7379 = vmatprep.subr.bf16.mxu1 %v7378_v48  ;;  %v3465_v46 = vld [vmem:[#allocation21 + $0x10] sm:$0xff]  ;;  %v7446_v47 = vpack.c.bf16 %v3464_v45, %v3463_v43 }
 0x4d5   : > { %7381 = vmatpush3.bf16.msra.mxu1 %v7378_v48  ;;  %v7981_v52 = vpop.permute.xlu1 %7980  ;;  %v3466_v48 = vld [vmem:[#allocation21 + $0x18] sm:$0xff] }
 0x4d6   : > { %v7983_v53 = vunpack.i.h.bf16 %v7981_v52  ;;  %v7982_v54 = vunpack.i.l.bf16 %v7981_v52  ;;  %v7382_v56 = vpack.c.bf16 %v2642_v50, %v2641_v51  ;;  %v7450_v50 = vpack.c.bf16 %v3466_v48, %v3465_v46  ;;  %v3467_v51 = vld [vmem:[#allocation21 + $0x20] sm:$0xff]  ;;  %v3468_v52 = vld [vmem:[#allocation21 + $0x28] sm:$0xff]  ;;  %7447 = vmatprep.subr.bf16.mxu0 %v7446_v47 }
 0x4d7   : > { %7449 = vmatpush3.bf16.msra.mxu0 %v7446_v47  ;;  %v3035_v46 = vld [vmem:[#allocation13 + $0x30] sm:$0xff]  ;;  %v3036_v47 = vld [vmem:[#allocation13 + $0x38] sm:$0xff] }
 0x4d8   : > { %v2644_v57 = vmax.f32 %v6908_v6, %v7983_v53  ;;  %v2643_v58 = vmax.f32 %v2540_v7, %v7982_v54  ;;  %7383 = vmatprep.subr.bf16.mxu1 %v7382_v56  ;;  %v2650_v7 = vld [vmem:[#allocation19 + $0x8] sm:$0xff]  ;;  %7451 = vmatprep.subr.bf16.mxu0 %v7450_v50  ;;  %v7454_v53 = vpack.c.bf16 %v3468_v52, %v3467_v51  ;;  %v3469_v54 = vld [vmem:[#allocation21 + $0x30] sm:$0xff] }
 0x4d9   : > { %7385 = vmatpush3.bf16.msra.mxu1 %v7382_v56  ;;  %v7986_v59 = vpop.permute.xlu0 %7985  ;;  %v3470_v56 = vld [vmem:[#allocation21 + $0x38] sm:$0xff] }
 0x4da   : > { %v7988_v60 = vunpack.i.h.bf16 %v7986_v59  ;;  %v7987_v61 = vunpack.i.l.bf16 %v7986_v59  ;;  %v7386_v62 = vpack.c.bf16 %v2644_v57, %v2643_v58  ;;  %v7458_v57 = vpack.c.bf16 %v3470_v56, %v3469_v54  ;;  %v3471_v58 = vld [vmem:[#allocation21 + $0x40] sm:$0xff]  ;;  %v3472_v59 = vld [vmem:[#allocation21 + $0x48] sm:$0xff] }
 0x4db   : > { %7453 = vmatpush3.bf16.msra.mxu0 %v7450_v50 }
 0x4dc   : > { %v2646_v63 = vmax.f32 %v6911_v9, %v7988_v60  ;;  %v2645_v0 = vmax.f32 %v2550_v10, %v7987_v61  ;;  %7387 = vmatprep.subr.bf16.mxu1 %v7386_v62  ;;  %v2653_v9 = vld [vmem:[#allocation19 + $0x20] sm:$0xff]  ;;  %v2654_v10 = vld [vmem:[#allocation19 + $0x28] sm:$0xff]  ;;  %7455 = vmatprep.subr.bf16.mxu0 %v7454_v53  ;;  %v7462_v60 = vpack.c.bf16 %v3472_v59, %v3471_v58  ;;  %v3473_v61 = vld [vmem:[#allocation21 + $0x50] sm:$0xff] }
 0x4dd   : > { %7389 = vmatpush3.bf16.msra.mxu1 %v7386_v62  ;;  %v7991_v1 = vpop.permute.xlu1 %7990  ;;  %v3474_v62 = vld [vmem:[#allocation21 + $0x58] sm:$0xff] }
 0x4de   : > { %v7993_v2 = vunpack.i.h.bf16 %v7991_v1  ;;  %v7992_v3 = vunpack.i.l.bf16 %v7991_v1  ;;  %v7390_v4 = vpack.c.bf16 %v2646_v63, %v2645_v0  ;;  %v7466_v63 = vpack.c.bf16 %v3474_v62, %v3473_v61  ;;  %v3475_v0 = vld [vmem:[#allocation21 + $0x60] sm:$0xff]  ;;  %v3476_v1 = vld [vmem:[#allocation21 + $0x68] sm:$0xff] }
 0x4df   : > { %7457 = vmatpush3.bf16.msra.mxu0 %v7454_v53  ;;  %v2857_v53 = vand.u32 7, %v9488_v37  ;;  %v3303_v59 = vld [vmem:[#allocation13 + $0x80] sm:$0xff]  ;;  %v2864_v62 = vand.u32 7, %v9542_v11 }
 0x4e0   : > { %v2648_v5 = vmax.f32 %v6914_v14, %v7993_v2  ;;  %v2647_v8 = vmax.f32 %v2560_v15, %v7992_v3  ;;  %7391 = vmatprep.subr.bf16.mxu1 %v7390_v4  ;;  %v2657_v14 = vld [vmem:[#allocation19 + $0x40] sm:$0xff]  ;;  %v2658_v15 = vld [vmem:[#allocation19 + $0x48] sm:$0xff]  ;;  %7459 = vmatprep.subr.bf16.mxu0 %v7458_v57  ;;  %v7470_v2 = vpack.c.bf16 %v3476_v1, %v3475_v0 }
 0x4e1   : > { %7393 = vmatpush3.bf16.msra.mxu1 %v7390_v4  ;;  %vm9662_vm11 = vcmp.ne.s32.totalorder %v2857_v53, 0  ;;  %vm2950_vm12 = vcmp.ne.s32.totalorder %v2864_v62, 0 }
 0x4e2   : > { %v7394_v6 = vpack.c.bf16 %v2648_v5, %v2647_v8 }
 0x4e3   : > { %7461 = vmatpush3.bf16.msra.mxu0 %v7458_v57  ;;  %v7426_v57 = vpack.c.bf16 %v3036_v47, %v3035_v46 }
 0x4e4   : > { %7395 = vmatprep.subr.bf16.mxu1 %v7394_v6  ;;  %7463 = vmatprep.subr.bf16.mxu0 %v7462_v60 }
 0x4e5   : > { %7397 = vmatpush3.bf16.msra.mxu1 %v7394_v6 }
 0x4e6   : > { %7399 = vmatprep.subr.bf16.mxu1 %v7398_v28 }
 0x4e7   : > { %7465 = vmatpush3.bf16.msra.mxu0 %v7462_v60  ;;  %v3304_v60 = vld [vmem:[#allocation13 + $0x88] sm:$0xff] }
 0x4e8   : > { %6948 = vmatmul.mubr.f32.vlgmr.msra.gmra.mrb[16].mxu1 %v2650_v7  ;;  %7467 = vmatprep.subr.bf16.mxu0 %v7466_v63 }
 0x4e9   : > { %6950 = vmatprep.mubr.f32.mxu1 %v2651_v12  ;;  %7401 = vmatpush3.bf16.msra.mxu1 %v7398_v28 }
 0x4ea   : > { %7403 = vmatprep.subr.bf16.mxu1 %v7402_v31 }
 0x4eb   : > { %7469 = vmatpush3.bf16.msra.mxu0 %v7466_v63 }
 0x4ec   : > { %6951 = vmatmul.mubr.f32.gmra.mrb[18].mxu1 %v2652_v13  ;;  %7471 = vmatprep.subr.bf16.mxu0 %v7470_v2 }
 0x4ed   : > { %6953 = vmatprep.mubr.f32.mxu1 %v2653_v9  ;;  %7405 = vmatpush3.bf16.msra.mxu1 %v7402_v31  ;;  %v3033_v31 = vld [vmem:[#allocation13 + $0x20] sm:$0xff] }
 0x4ee   : > { %7407 = vmatprep.subr.bf16.mxu1 %v7406_v34  ;;  %v7422_v43 = vpack.c.bf16 %v3034_v32, %v3033_v31 }
 0x4ef   : > { %7473 = vmatpush3.bf16.msra.mxu0 %v7470_v2  ;;  %v2871_v2 = vand.u32 7, %v9496_v42 }
 0x4f0   : > { %6954 = vmatmul.mubr.f32.gmra.mrb[20].mxu1 %v2654_v10  ;;  %v9635_v10 = vstv %s2818_s5  ;;  %s1372_s5 = scalar_select %p1371_p2, %s9066_s29, 1 }
 0x4f1   : > { %6956 = vmatprep.mubr.f32.mxu1 %v2655_v17  ;;  %7409 = vmatpush3.bf16.msra.mxu1 %v7406_v34  ;;  %vm2951_vm13 = vcmp.ne.s32.totalorder %v2871_v2, 0 }
 0x4f2   : > { %7411 = vmatprep.subr.bf16.mxu1 %v7410_v38 }
 0x4f4   : > { %6957 = vmatmul.mubr.f32.gmra.mrb[22].mxu1 %v2656_v18 }
 0x4f5   : > { %6959 = vmatprep.mubr.f32.mxu1 %v2657_v14  ;;  %7413 = vmatpush3.bf16.msra.mxu1 %v7410_v38 }
 0x4f6   : > { %7415 = vmatprep.subr.bf16.mxu1 %v9632_v41 }
 0x4f8   : > { %6960 = vmatmul.mubr.f32.gmra.mrb[24].mxu1 %v2658_v15 }
 0x4f9   : > { %6962 = vmatprep.mubr.f32.mxu1 %v2659_v19  ;;  %v3031_v19 = vld [vmem:[#allocation13 + $0x10] sm:$0xff] }
 0x4fc   : > { %6963 = vmatmul.mubr.f32.gmra.mrb[26].mxu1 %v2660_v20  ;;  %v3032_v20 = vld [vmem:[#allocation13 + $0x18] sm:$0xff] }
 0x4fd   : > { %6965 = vmatprep.mubr.f32.mxu1 %v2661_v21  ;;  %v7418_v29 = vpack.c.bf16 %v3032_v20, %v3031_v19  ;;  %v2892_v20 = vand.u32 7, %v9573_v24 }
 0x4ff   : > { %vm2954_vm1 = vcmp.ne.s32.totalorder %v2892_v20, 0 }
 0x500   : > { %6966 = vmatmul.mubr.f32.gmra.mrb[28].mxu1 %v2662_v22 }
 0x501   : > { %6968 = vmatprep.mubr.f32.mxu1 %v2663_v23 }
 0x504   : > { %6969 = vmatmul.mubr.f32.gmra.mrb[30].mxu1 %v2664_v25 }
 0x5bb   : > { %v6949_v3 = vpop.f32.mrb[16].mxu1 }
 0x5bc   : > { %v2731_v4 = vpop.f32.mrb[17].mxu1 }
 0x5bf   : > { %v6952_v5 = vpop.f32.mrb[18].mxu1 }
 0x5c0   : > { %v2741_v8 = vpop.f32.mrb[19].mxu1 }
 0x5c3   : > { %v6955_v6 = vpop.f32.mrb[20].mxu1 }
 0x5c4   : > { %v2751_v7 = vpop.f32.mrb[21].mxu1 }
 0x5c7   : > { %v6958_v12 = vpop.f32.mrb[22].mxu1 }
 0x5c8   : > { %v2761_v13 = vpop.f32.mrb[23].mxu1 }
 0x5cb   : > { %v6961_v9 = vpop.f32.mrb[24].mxu1 }
 0x5cc   : > { %v2811_v17 = vmax.f32 %v6949_v3, %v6961_v9  ;;  %v2771_v18 = vpop.f32.mrb[25].mxu1  ;;  %v2885_v9 = vand.u32 7, %v9508_v49 }
 0x5cd   : > { %v2810_v14 = vmax.f32 %v2731_v4, %v2771_v18  ;;  %v7430_v4 = vpack.c.bf16 %v3304_v60, %v3303_v59  ;;  %v3307_v18 = vld [vmem:[#allocation13 + $0xa0] sm:$0xff] }
 0x5ce   : > { %vm2820_vm2 = vcmp.gt.f32.partialorder %v2811_v17, 0.0  ;;  %v2829_v15 = vmul.f32 %v9635_v10, %v2811_v17  ;;  %vm2953_vm15 = vcmp.ne.s32.totalorder %v2885_v9, 0 }
 0x5cf   : > { %vm2819_vm4 = vcmp.gt.f32.partialorder %v2810_v14, 0.0  ;;  %v2828_v21 = vmul.f32 %v9635_v10, %v2810_v14  ;;  %v6964_v22 = vpop.f32.mrb[26].mxu1 }
 0x5d0   : > { %v2837_v23 = vsel %vm2820_vm2, %v2811_v17, %v2829_v15  ;;  %v2813_v25 = vmax.f32 %v6952_v5, %v6964_v22  ;;  %v2781_v26 = vpop.f32.mrb[27].mxu1  ;;  %v3305_v5 = vld [vmem:[#allocation13 + $0x90] sm:$0xff]  ;;  %v2899_v22 = vand.u32 7, %v9517_v55 }
 0x5d1   : > { %2846 = vst.msk [vmem:[#allocation2 + $0x10] sm:$0xff] %vm2844_vm3, %v2837_v23  ;;  %v2812_v27 = vmax.f32 %v2741_v8, %v2781_v26  ;;  %v2836_v28 = vsel %vm2819_vm4, %v2810_v14, %v2828_v21  ;;  %v3306_v8 = vld [vmem:[#allocation13 + $0x98] sm:$0xff]  ;;  %v3308_v14 = vld [vmem:[#allocation13 + $0xa8] sm:$0xff] }
 0x5d2   : > { %vm2822_vm5 = vcmp.gt.f32.partialorder %v2813_v25, 0.0  ;;  %v2831_v30 = vmul.f32 %v9635_v10, %v2813_v25  ;;  %2845 = vst.msk [vmem:[#allocation2 + $0x8] sm:$0xff] %vm2844_vm3, %v2836_v28  ;;  %6987 = vmatprep.mubr.msk.f32.mxu1 %vm2844_vm3, %v2836_v28  ;;  %v7438_v49 = vpack.c.bf16 %v3308_v14, %v3307_v18  ;;  %v3310_v26 = vld [vmem:[#allocation13 + $0xb8] sm:$0xff]  ;;  %vm2955_vm2 = vcmp.ne.s32.totalorder %v2899_v22, 0 }
 0x5d3   : > { %vm2821_vm6 = vcmp.gt.f32.partialorder %v2812_v27, 0.0  ;;  %v2830_v33 = vmul.f32 %v9635_v10, %v2812_v27  ;;  %v6967_v34 = vpop.f32.mrb[28].mxu1  ;;  %6988 = vmatmul.mubr.msk.f32.vlgmr.msra.gmra.mrb[32].mxu1 %vm2844_vm3, %v2837_v23 }
 0x5d4   : > { %v2815_v35 = vmax.f32 %v6955_v6, %v6967_v34  ;;  %v2791_v36 = vpop.f32.mrb[29].mxu1  ;;  %7417 = vmatpush3.bf16.msra.mxu1 %v9632_v41  ;;  %v2839_v38 = vsel %vm2822_vm5, %v2813_v25, %v2831_v30  ;;  %v3309_v25 = vld [vmem:[#allocation13 + $0xb0] sm:$0xff]  ;;  %vm2989_vm5 = vcmp.ne.s32.totalorder %v2857_v53, 7 }
 0x5d5   : > { %v2814_v39 = vmax.f32 %v2751_v7, %v2791_v36  ;;  %v2838_v40 = vsel %vm2821_vm6, %v2812_v27, %v2830_v33  ;;  %2848 = vst.msk [vmem:[#allocation2 + $0x20] sm:$0xff] %vm2844_vm3, %v2839_v38  ;;  %7419 = vmatprep.subr.bf16.mxu1 %v7418_v29  ;;  %v7442_v30 = vpack.c.bf16 %v3310_v26, %v3309_v25  ;;  %vm2990_vm6 = vcmp.ne.s32.totalorder %v2864_v62, 7  ;;  %v3477_v53 = vld [vmem:[#allocation21 + $0x70] sm:$0xff] }
 0x5d6   : > { %vm2824_vm7 = vcmp.gt.f32.partialorder %v2815_v35, 0.0  ;;  %v2833_v45 = vmul.f32 %v9635_v10, %v2815_v35  ;;  %2847 = vst.msk [vmem:[#allocation2 + $0x18] sm:$0xff] %vm2844_vm3, %v2838_v40  ;;  %6990 = vmatprep.mubr.msk.f32.mxu1 %vm2844_vm3, %v2838_v40 }
 0x5d7   : > { %vm2823_vm8 = vcmp.gt.f32.partialorder %v2814_v39, 0.0  ;;  %v2832_v48 = vmul.f32 %v9635_v10, %v2814_v39  ;;  %v6970_v41 = vpop.f32.mrb[30].mxu1  ;;  %6991 = vmatmul.mubr.msk.f32.gmra.mrb[34].mxu1 %vm2844_vm3, %v2839_v38 }
 0x5d8   : > { %v2817_v50 = vmax.f32 %v6958_v12, %v6970_v41  ;;  %v2801_v51 = vpop.f32.mrb[31].mxu1  ;;  %7421 = vmatpush3.bf16.msra.mxu1 %v7418_v29  ;;  %v2841_v52 = vsel %vm2824_vm7, %v2815_v35, %v2833_v45  ;;  %v2878_v12 = vand.u32 7, %v9547_v16  ;;  %v2906_v29 = vand.u32 7, %v9600_v44 }
 0x5d9   : > { %v2816_v54 = vmax.f32 %v2761_v13, %v2801_v51  ;;  %v2840_v56 = vsel %vm2823_vm8, %v2814_v39, %v2832_v48  ;;  %2850 = vst.msk [vmem:[#allocation2 + $0x30] sm:$0xff] %vm2844_vm3, %v2841_v52  ;;  %7423 = vmatprep.subr.bf16.mxu1 %v7422_v43  ;;  %v2957_v1 = vld [vmem:[#allocation2 + $0x7] sm:$0xff]  ;;  %v2958_v7 = vld [vmem:[#allocation2 + $0xf] sm:$0xff]  ;;  %vm2991_vm7 = vcmp.ne.s32.totalorder %v2871_v2, 7 }
 0x5da   : > { %vm2826_vm9 = vcmp.gt.f32.partialorder %v2817_v50, 0.0  ;;  %v2835_v58 = vmul.f32 %v9635_v10, %v2817_v50  ;;  %2849 = vst.msk [vmem:[#allocation2 + $0x28] sm:$0xff] %vm2844_vm3, %v2840_v56  ;;  %6993 = vmatprep.mubr.msk.f32.mxu1 %vm2844_vm3, %v2840_v56  ;;  %v2981_v6 = vsel %vm9662_vm11, %v2957_v1, 0.0  ;;  %v2982_v17 = vsel %vm2950_vm12, %v2958_v7, 0.0  ;;  %v2997_v44 = vld [vmem:[#allocation2 + $0x9] sm:$0xff] }
 0x5db   : > { %vm2825_vm10 = vcmp.gt.f32.partialorder %v2816_v54, 0.0  ;;  %v2834_v61 = vmul.f32 %v9635_v10, %v2816_v54  ;;  %6994 = vmatmul.mubr.msk.f32.gmra.mrb[36].mxu1 %vm2844_vm3, %v2841_v52  ;;  %v7434_v10 = vpack.c.bf16 %v3306_v8, %v3305_v5  ;;  %vm2952_vm14 = vcmp.ne.s32.totalorder %v2878_v12, 0 }
 0x5dc   : > { %7425 = vmatpush3.bf16.msra.mxu1 %v7422_v43  ;;  %v2843_v63 = vsel %vm2826_vm9, %v2817_v50, %v2835_v58  ;;  %vm2956_vm4 = vcmp.ne.s32.totalorder %v2906_v29, 0  ;;  %v3021_v34 = vsel %vm2989_vm5, %v2997_v44, 0.0  ;;  %vm2992_vm8 = vcmp.ne.s32.totalorder %v2878_v12, 7 }
 0x5dd   : > { %v2842_v3 = vsel %vm2825_vm10, %v2816_v54, %v2834_v61  ;;  %2852 = vst.msk [vmem:[#allocation2 + $0x40] sm:$0xff] %vm2844_vm3, %v2843_v63  ;;  %7427 = vmatprep.subr.bf16.mxu1 %v7426_v57  ;;  %v2959_v13 = vld [vmem:[#allocation2 + $0x17] sm:$0xff]  ;;  %v2960_v19 = vld [vmem:[#allocation2 + $0x1f] sm:$0xff]  ;;  %vm2993_vm9 = vcmp.ne.s32.totalorder %v2885_v9, 7  ;;  %vm2994_vm10 = vcmp.ne.s32.totalorder %v2892_v20, 7  ;;  %vm2995_vm11 = vcmp.ne.s32.totalorder %v2899_v22, 7 }
 0x5de   : > { %2851 = vst.msk [vmem:[#allocation2 + $0x38] sm:$0xff] %vm2844_vm3, %v2842_v3  ;;  %6996 = vmatprep.mubr.msk.f32.mxu1 %vm2844_vm3, %v2842_v3  ;;  %v2983_v15 = vsel %vm2951_vm13, %v2959_v13, 0.0  ;;  %v2984_v23 = vsel %vm2952_vm14, %v2960_v19, 0.0  ;;  %v2998_v35 = vld [vmem:[#allocation2 + $0x11] sm:$0xff]  ;;  %v2999_v36 = vld [vmem:[#allocation2 + $0x19] sm:$0xff]  ;;  %vm2996_vm12 = vcmp.ne.s32.totalorder %v2906_v29, 7 }
 0x5df   : > { %6997 = vmatmul.mubr.msk.f32.gmra.mrb[38].mxu1 %vm2844_vm3, %v2843_v63  ;;  %v3022_v38 = vsel %vm2990_vm6, %v2998_v35, 0.0  ;;  %v3023_v39 = vsel %vm2991_vm7, %v2999_v36, 0.0  ;;  %v3478_v54 = vld [vmem:[#allocation21 + $0x78] sm:$0xff] }
 0x5e0   : > { %7429 = vmatpush3.bf16.msra.mxu1 %v7426_v57  ;;  %7015 = vmatprep.mubr.msk.f32.mxu1 %vm2844_vm3, %v2981_v6  ;;  %v7474_v56 = vpack.c.bf16 %v3478_v54, %v3477_v53  ;;  %v6306_v57 = vld [vmem:[#allocation15] ss:$0 sm:$0xff]  ;;  %v3625_v53 = vld [vmem:[#allocation22 + $0x8] sm:$0xff]  ;;  %v3626_v54 = vld [vmem:[#allocation22 + $0x10] sm:$0xff] }
 0x5e1   : > { %7431 = vmatprep.subr.bf16.mxu1 %v7430_v4  ;;  %v2961_v21 = vld [vmem:[#allocation2 + $0x27] sm:$0xff]  ;;  %v2962_v28 = vld [vmem:[#allocation2 + $0x2f] sm:$0xff] }
 0x5e2   : > { %v2985_v27 = vsel %vm2953_vm15, %v2961_v21, 0.0  ;;  %v2986_v55 = vsel %vm2954_vm1, %v2962_v28, 0.0  ;;  %v3000_v40 = vld [vmem:[#allocation2 + $0x21] sm:$0xff]  ;;  %v3001_v43 = vld [vmem:[#allocation2 + $0x29] sm:$0xff]  ;;  %7475 = vmatprep.subr.bf16.mxu0 %v7474_v56  ;;  %v3624_v21 = vld [vmem:[#allocation22] sm:$0xff] }
 0x5e3   : > { %7016 = vmatmul.mubr.msk.f32.vlgmr.msra.gmra.mrb[32].mxu1 %vm2844_vm3, %v2982_v17  ;;  %v3024_v45 = vsel %vm2992_vm8, %v3000_v40, 0.0  ;;  %v3025_v46 = vsel %vm2993_vm9, %v3001_v43, 0.0  ;;  %7477 = vmatpush3.bf16.msra.mxu0 %v7474_v56  ;;  %v3627_v56 = vld [vmem:[#allocation22 + $0x18] sm:$0xff] }
 0x5e4   : > { %7018 = vmatprep.mubr.msk.f32.mxu1 %vm2844_vm3, %v2983_v15  ;;  %7433 = vmatpush3.bf16.msra.mxu1 %v7430_v4  ;;  %v3004_v51 = vld [vmem:[#allocation2 + $0x41] sm:$0xff] }
 0x5e5   : > { %7435 = vmatprep.subr.bf16.mxu1 %v7434_v10  ;;  %v2963_v24 = vld [vmem:[#allocation2 + $0x37] sm:$0xff]  ;;  %v2964_v32 = vld [vmem:[#allocation2 + $0x3f] sm:$0xff]  ;;  %v3028_v52 = vsel %vm2996_vm12, %v3004_v51, 0.0 }
 0x5e6   : > { %v2987_v31 = vsel %vm2955_vm2, %v2963_v24, 0.0  ;;  %v2988_v33 = vsel %vm2956_vm4, %v2964_v32, 0.0  ;;  %v3002_v47 = vld [vmem:[#allocation2 + $0x31] sm:$0xff]  ;;  %v3003_v48 = vld [vmem:[#allocation2 + $0x39] sm:$0xff] }
 0x5e7   : > { %7019 = vmatmul.mubr.msk.f32.gmra.mrb[34].mxu1 %vm2844_vm3, %v2984_v23  ;;  %v3026_v41 = vsel %vm2994_vm10, %v3002_v47, 0.0  ;;  %v3027_v50 = vsel %vm2995_vm11, %v3003_v48, 0.0  ;;  %v3879_v47 = vld [vmem:[#allocation16 + $0x40] sm:$0xff]  ;;  %v3880_v48 = vld [vmem:[#allocation16 + $0x48] sm:$0xff] }
 0x5e8   : > { %7021 = vmatprep.mubr.msk.f32.mxu1 %vm2844_vm3, %v2985_v27  ;;  %7437 = vmatpush3.bf16.msra.mxu1 %v7434_v10 }
 0x5e9   : > { %7439 = vmatprep.subr.bf16.mxu1 %v7438_v49 }
 0x5eb   : > { %7022 = vmatmul.mubr.msk.f32.gmra.mrb[36].mxu1 %vm2844_vm3, %v2986_v55 }
 0x5ec   : > { %7024 = vmatprep.mubr.msk.f32.mxu1 %vm2844_vm3, %v2987_v31  ;;  %7441 = vmatpush3.bf16.msra.mxu1 %v7438_v49 }
 0x5ed   : > { %7443 = vmatprep.subr.bf16.mxu1 %v7442_v30 }
 0x5ef   : > { %7025 = vmatmul.mubr.msk.f32.gmra.mrb[38].mxu1 %vm2844_vm3, %v2988_v33 }
 0x5f0   : > { %7445 = vmatpush3.bf16.msra.mxu1 %v7442_v30  ;;  %7043 = vmatprep.mubr.msk.f32.mxu1 %vm2844_vm3, %v3021_v34 }
 0x5f3   : > { %7044 = vmatmul.mubr.msk.f32.vlgmr.msra.gmra.mrb[32].mxu1 %vm2844_vm3, %v3022_v38 }
 0x5f4   : > { %7046 = vmatprep.mubr.msk.f32.mxu1 %vm2844_vm3, %v3023_v39 }
 0x5f7   : > { %7047 = vmatmul.mubr.msk.f32.gmra.mrb[34].mxu1 %vm2844_vm3, %v3024_v45 }
 0x5f8   : > { %7049 = vmatprep.mubr.msk.f32.mxu1 %vm2844_vm3, %v3025_v46 }
 0x5fb   : > { %7050 = vmatmul.mubr.msk.f32.gmra.mrb[36].mxu1 %vm2844_vm3, %v3026_v41 }
 0x5fc   : > { %7052 = vmatprep.mubr.msk.f32.mxu1 %vm2844_vm3, %v3027_v50 }
 0x5ff   : > { %7053 = vmatmul.mubr.msk.f32.gmra.mrb[38].mxu1 %vm2844_vm3, %v3028_v52  ;;  %v7494_v52 = vpack.c.bf16 %v3880_v48, %v3879_v47 }
 0x6c6   : > { %v7045_v58 = vpop.f32.mrb[32].mxu1 }
 0x6c7   : > { %v3401_v59 = vpop.f32.mrb[33].mxu1  ;;  %v3456_v61 = vadd.f32 %v7045_v58, %v6306_v57  ;;  %v3629_v58 = vld [vmem:[#allocation22 + $0x28] sm:$0xff] }
 0x6c8   : > { %v3455_v60 = vadd.f32 %v6306_v57, %v3401_v59  ;;  %v3630_v59 = vld [vmem:[#allocation22 + $0x30] sm:$0xff] }
 0x6ca   : > { %v7048_v62 = vpop.f32.mrb[34].mxu1  ;;  %7087 = vmatprep.mubr.f32.mxu0 %v3455_v60  ;;  %v3631_v60 = vld [vmem:[#allocation22 + $0x38] sm:$0xff] }
 0x6cb   : > { %v3411_v63 = vpop.f32.mrb[35].mxu1  ;;  %7088 = vmatmul.mubr.f32.vlgmr.msra.gmra.mrb[16].mxu0 %v3456_v61  ;;  %v3458_v1 = vadd.f32 %v7048_v62, %v6306_v57  ;;  %v3881_v61 = vld [vmem:[#allocation16 + $0x50] sm:$0xff]  ;;  %v3882_v62 = vld [vmem:[#allocation16 + $0x58] sm:$0xff] }
 0x6cc   : > { %v3457_v0 = vadd.f32 %v6306_v57, %v3411_v63  ;;  %v7498_v63 = vpack.c.bf16 %v3882_v62, %v3881_v61 }
 0x6ce   : > { %v7051_v2 = vpop.f32.mrb[36].mxu1  ;;  %7090 = vmatprep.mubr.f32.mxu0 %v3457_v0  ;;  %v3883_v0 = vld [vmem:[#allocation16 + $0x60] sm:$0xff] }
 0x6cf   : > { %v3421_v3 = vpop.f32.mrb[37].mxu1  ;;  %7091 = vmatmul.mubr.f32.gmra.mrb[18].mxu0 %v3458_v1  ;;  %v3460_v5 = vadd.f32 %v7051_v2, %v6306_v57  ;;  %v3884_v1 = vld [vmem:[#allocation16 + $0x68] sm:$0xff] }
 0x6d0   : > { %v3459_v4 = vadd.f32 %v6306_v57, %v3421_v3  ;;  %v7502_v2 = vpack.c.bf16 %v3884_v1, %v3883_v0  ;;  %v3885_v3 = vld [vmem:[#allocation16 + $0x70] sm:$0xff]  ;;  %v4081_v0 = vld [vmem:[#allocation16 + $0x80] sm:$0xff]  ;;  %v4082_v1 = vld [vmem:[#allocation16 + $0x88] sm:$0xff] }
 0x6d2   : > { %v7054_v8 = vpop.f32.mrb[38].mxu1  ;;  %7093 = vmatprep.mubr.f32.mxu0 %v3459_v4  ;;  %v3886_v4 = vld [vmem:[#allocation16 + $0x78] sm:$0xff] }
 0x6d3   : > { %v3431_v6 = vpop.f32.mrb[39].mxu1  ;;  %7094 = vmatmul.mubr.f32.gmra.mrb[20].mxu0 %v3460_v5  ;;  %v3462_v12 = vadd.f32 %v7054_v8, %v6306_v57  ;;  %v7506_v5 = vpack.c.bf16 %v3886_v4, %v3885_v3  ;;  %v3871_v8 = vld [vmem:[#allocation16] sm:$0xff]  ;;  %v3801_v3 = vand.u32 3, %v9496_v42  ;;  %v7526_v4 = vpack.c.bf16 %v4082_v1, %v4081_v0 }
 0x6d4   : > { %v3461_v7 = vadd.f32 %v6306_v57, %v3431_v6  ;;  %v3628_v57 = vld [vmem:[#allocation22 + $0x20] sm:$0xff] }
 0x6d5   : > { %v3872_v6 = vld [vmem:[#allocation16 + $0x8] sm:$0xff]  ;;  %vm3833_vm5 = vcmp.ne.s32.totalorder %v3801_v3, 0  ;;  %vm3853_vm9 = vcmp.ne.s32.totalorder %v3801_v3, 3 }
 0x6d6   : > { %7096 = vmatprep.mubr.f32.mxu0 %v3461_v7  ;;  %v9716_v7 = vpack.c.bf16 %v3872_v6, %v3871_v8  ;;  %v4084_v8 = vld [vmem:[#allocation16 + $0x98] sm:$0xff] }
 0x6d7   : > { %7097 = vmatmul.mubr.f32.gmra.mrb[22].mxu0 %v3462_v12  ;;  %v4215_v12 = vld [vmem:[#allocation24] sm:$0xff] }
 0x6d8   : > { %7115 = vmatprep.mubr.msk.f32.mxu0 %vm2844_vm3, %v3624_v21  ;;  %v4222_v21 = vld [vmem:[#allocation24 + $0x38] sm:$0xff] }
 0x79e   : > { %v7089_v13 = vpop.f32.mrb[16].mxu0 }
 0x79f   : > { %v3545_v9 = vpop.f32.mrb[17].mxu0 }
 0x7a0   : > { %v7994_v10 = vpack.i.bf16 %v7089_v13, %v3545_v9 }
 0x7a2   : > { %7995 = vrot.lane.b32.xlu0 %v7994_v10, %s8851_s8  ;;  %v7092_v17 = vpop.f32.mrb[18].mxu0 }
 0x7a3   : > { %v3555_v18 = vpop.f32.mrb[19].mxu0 }
 0x7a4   : > { %v7999_v14 = vpack.i.bf16 %v7092_v17, %v3555_v18 }
 0x7a6   : > { %8000 = vrot.lane.b32.xlu1 %v7999_v14, %s8851_s8  ;;  %v7095_v15 = vpop.f32.mrb[20].mxu0  ;;  %v4219_v14 = vld [vmem:[#allocation24 + $0x20] sm:$0xff] }
 0x7a7   : > { %v3565_v19 = vpop.f32.mrb[21].mxu0 }
 0x7a8   : > { %v8004_v20 = vpack.i.bf16 %v7095_v15, %v3565_v19 }
 0x7aa   : > { %8005 = vrot.lane.b32.xlu0 %v8004_v20, %s8851_s8  ;;  %v7098_v22 = vpop.f32.mrb[22].mxu0  ;;  %v4221_v20 = vld [vmem:[#allocation24 + $0x30] sm:$0xff] }
 0x7ab   : > { %v3575_v49 = vpop.f32.mrb[23].mxu0 }
 0x7ac   : > { %v8009_v23 = vpack.i.bf16 %v7098_v22, %v3575_v49 }
 0x7ae   : > { %8010 = vrot.lane.b32.xlu1 %v8009_v23, %s8851_s8  ;;  %v4224_v23 = vld [vmem:[#allocation24 + $0x48] sm:$0xff] }
 0x814   : > { %v7996_v25 = vpop.permute.xlu0 %7995 }
 0x815   : > { %v7998_v26 = vunpack.i.h.bf16 %v7996_v25  ;;  %v7997_v27 = vunpack.i.l.bf16 %v7996_v25 }
 0x817   : > { %v3617_v28 = vmax.f32 %v7089_v13, %v7998_v26  ;;  %v3616_v29 = vmax.f32 %v3545_v9, %v7997_v27  ;;  %v4216_v13 = vld [vmem:[#allocation24 + $0x8] sm:$0xff]  ;;  %v4217_v9 = vld [vmem:[#allocation24 + $0x10] sm:$0xff]  ;;  %v4226_v27 = vld [vmem:[#allocation24 + $0x58] sm:$0xff] }
 0x818   : > { %v8001_v24 = vpop.permute.xlu1 %8000  ;;  %v7542_v10 = vpack.c.bf16 %v4216_v13, %v4215_v12  ;;  %v4225_v26 = vld [vmem:[#allocation24 + $0x50] sm:$0xff] }
 0x819   : > { %v8003_v30 = vunpack.i.h.bf16 %v8001_v24  ;;  %v8002_v55 = vunpack.i.l.bf16 %v8001_v24  ;;  %v7478_v31 = vpack.c.bf16 %v3617_v28, %v3616_v29  ;;  %v7562_v28 = vpack.c.bf16 %v4226_v27, %v4225_v26 }
 0x81a   : > { %7543 = vmatprep.subr.bf16.mxu1 %v7542_v10 }
 0x81b   : > { %v3619_v32 = vmax.f32 %v7092_v17, %v8003_v30  ;;  %v3618_v44 = vmax.f32 %v3555_v18, %v8002_v55  ;;  %7479 = vmatprep.subr.bf16.mxu0 %v7478_v31  ;;  %v4218_v17 = vld [vmem:[#allocation24 + $0x18] sm:$0xff]  ;;  %7545 = vmatpush3.bf16.msra.mxu1 %v7542_v10 }
 0x81c   : > { %7481 = vmatpush3.bf16.msra.mxu0 %v7478_v31  ;;  %v8006_v33 = vpop.permute.xlu0 %8005  ;;  %v7546_v18 = vpack.c.bf16 %v4218_v17, %v4217_v9  ;;  %v4085_v10 = vld [vmem:[#allocation16 + $0xa0] sm:$0xff]  ;;  %v4086_v17 = vld [vmem:[#allocation16 + $0xa8] sm:$0xff] }
 0x81d   : > { %v8008_v34 = vunpack.i.h.bf16 %v8006_v33  ;;  %v8007_v35 = vunpack.i.l.bf16 %v8006_v33  ;;  %v7482_v36 = vpack.c.bf16 %v3619_v32, %v3618_v44  ;;  %v3770_v32 = vstv %s3765_s10  ;;  %s6230_s10 = sshll.u32 %s1372_s5, 3  ;;  %s9871_s5 = sld [smem:[#allocation6]] }
 0x81e   : > { %7547 = vmatprep.subr.bf16.mxu1 %v7546_v18 }
 0x81f   : > { %v3621_v38 = vmax.f32 %v7095_v15, %v8008_v34  ;;  %v3620_v39 = vmax.f32 %v3565_v19, %v8007_v35  ;;  %7483 = vmatprep.subr.bf16.mxu0 %v7482_v36  ;;  %v4220_v15 = vld [vmem:[#allocation24 + $0x28] sm:$0xff]  ;;  %7549 = vmatpush3.bf16.msra.mxu1 %v7546_v18 }
 0x820   : > { %7485 = vmatpush3.bf16.msra.mxu0 %v7482_v36  ;;  %v8011_v40 = vpop.permute.xlu1 %8010  ;;  %v7550_v19 = vpack.c.bf16 %v4220_v15, %v4219_v14  ;;  %v3873_v36 = vld [vmem:[#allocation16 + $0x10] sm:$0xff] }
 0x821   : > { %v8013_v43 = vunpack.i.h.bf16 %v8011_v40  ;;  %v8012_v45 = vunpack.i.l.bf16 %v8011_v40  ;;  %v7486_v46 = vpack.c.bf16 %v3621_v38, %v3620_v39  ;;  %v3874_v38 = vld [vmem:[#allocation16 + $0x18] sm:$0xff]  ;;  %v4087_v15 = vld [vmem:[#allocation16 + $0xb0] sm:$0xff] }
 0x822   : > { %7551 = vmatprep.subr.bf16.mxu1 %v7550_v19 }
 0x823   : > { %v3623_v41 = vmax.f32 %v7098_v22, %v8013_v43  ;;  %v3622_v50 = vmax.f32 %v3575_v49, %v8012_v45  ;;  %7487 = vmatprep.subr.bf16.mxu0 %v7486_v46  ;;  %v7554_v22 = vpack.c.bf16 %v4222_v21, %v4221_v20  ;;  %v4223_v49 = vld [vmem:[#allocation24 + $0x40] sm:$0xff]  ;;  %7553 = vmatpush3.bf16.msra.mxu1 %v7550_v19  ;;  %v4088_v19 = vld [vmem:[#allocation16 + $0xb8] sm:$0xff] }
 0x824   : > { %7489 = vmatpush3.bf16.msra.mxu0 %v7486_v46  ;;  %v7558_v25 = vpack.c.bf16 %v4224_v23, %v4223_v49  ;;  %v7538_v21 = vpack.c.bf16 %v4088_v19, %v4087_v15  ;;  %v4538_v15 = vld [vmem:[%s10122_s4 + $0x8] sm:$0xff]  ;;  %v4447_v19 = vld [vmem:[#allocation27 + $0x8] sm:$0xff] }
 0x825   : > { %v7490_v51 = vpack.c.bf16 %v3623_v41, %v3622_v50  ;;  %7555 = vmatprep.subr.bf16.mxu1 %v7554_v22  ;;  %v7514_v41 = vpack.c.bf16 %v3874_v38, %v3873_v36 }
 0x827   : > { %7491 = vmatprep.subr.bf16.mxu0 %v7490_v51  ;;  %7557 = vmatpush3.bf16.msra.mxu1 %v7554_v22 }
 0x828   : > { %7493 = vmatpush3.bf16.msra.mxu0 %v7490_v51  ;;  %7559 = vmatprep.subr.bf16.mxu1 %v7558_v25  ;;  %v3875_v51 = vld [vmem:[#allocation16 + $0x20] sm:$0xff] }
 0x829   : > { %7495 = vmatprep.subr.bf16.mxu0 %v7494_v52 }
 0x82b   : > { %7116 = vmatmul.mubr.msk.f32.vlgmr.msra.gmra.mrb[24].mxu0 %vm2844_vm3, %v3625_v53  ;;  %7561 = vmatpush3.bf16.msra.mxu1 %v7558_v25 }
 0x82c   : > { %7118 = vmatprep.mubr.msk.f32.mxu0 %vm2844_vm3, %v3626_v54  ;;  %7497 = vmatpush3.bf16.msra.mxu0 %v7494_v52  ;;  %v3876_v52 = vld [vmem:[#allocation16 + $0x28] sm:$0xff]  ;;  %v3787_v54 = vand.u32 3, %v9488_v37 }
 0x82d   : > { %7499 = vmatprep.subr.bf16.mxu0 %v7498_v63  ;;  %7563 = vmatprep.subr.bf16.mxu1 %v7562_v28 }
 0x82e   : > { %vm3831_vm2 = vcmp.ne.s32.totalorder %v3787_v54, 0  ;;  %vm3851_vm7 = vcmp.ne.s32.totalorder %v3787_v54, 3  ;;  %v4340_v54 = vld [vmem:[#allocation25] sm:$0xff] }
 0x82f   : > { %7119 = vmatmul.mubr.msk.f32.gmra.mrb[26].mxu0 %vm2844_vm3, %v3627_v56  ;;  %7565 = vmatpush3.bf16.msra.mxu1 %v7562_v28  ;;  %v4227_v28 = vld [vmem:[#allocation24 + $0x60] sm:$0xff] }
 0x830   : > { %7121 = vmatprep.mubr.msk.f32.mxu0 %vm2844_vm3, %v3628_v57  ;;  %7501 = vmatpush3.bf16.msra.mxu0 %v7498_v63 }
 0x831   : > { %7503 = vmatprep.subr.bf16.mxu0 %v7502_v2 }
 0x833   : > { %7122 = vmatmul.mubr.msk.f32.gmra.mrb[28].mxu0 %vm2844_vm3, %v3629_v58  ;;  %v7518_v58 = vpack.c.bf16 %v3876_v52, %v3875_v51 }
 0x834   : > { %7124 = vmatprep.mubr.msk.f32.mxu0 %vm2844_vm3, %v3630_v59  ;;  %7505 = vmatpush3.bf16.msra.mxu0 %v7502_v2  ;;  %v3877_v59 = vld [vmem:[#allocation16 + $0x30] sm:$0xff]  ;;  %v3794_v2 = vand.u32 3, %v9542_v11 }
 0x835   : > { %7507 = vmatprep.subr.bf16.mxu0 %v7506_v5 }
 0x836   : > { %vm3832_vm4 = vcmp.ne.s32.totalorder %v3794_v2, 0  ;;  %vm3852_vm8 = vcmp.ne.s32.totalorder %v3794_v2, 3 }
 0x837   : > { %7125 = vmatmul.mubr.msk.f32.gmra.mrb[30].mxu0 %vm2844_vm3, %v3631_v60  ;;  %v3878_v60 = vld [vmem:[#allocation16 + $0x38] sm:$0xff] }
 0x838   : > { %7509 = vmatpush3.bf16.msra.mxu0 %v7506_v5  ;;  %v7522_v62 = vpack.c.bf16 %v3878_v60, %v3877_v59  ;;  %v4083_v5 = vld [vmem:[#allocation16 + $0x90] sm:$0xff] }
 0x839   : > { %7511 = vmatprep.subr.bf16.mxu0 %v9716_v7  ;;  %v7530_v13 = vpack.c.bf16 %v4084_v8, %v4083_v5 }
 0x8fe   : > { %v7117_v29 = vpop.f32.mrb[24].mxu0 }
 0x8ff   : > { %v3722_v24 = vpop.f32.mrb[25].mxu0 }
 0x902   : > { %v7120_v30 = vpop.f32.mrb[26].mxu0 }
 0x903   : > { %v3732_v55 = vpop.f32.mrb[27].mxu0 }
 0x906   : > { %v7123_v31 = vpop.f32.mrb[28].mxu0 }
 0x907   : > { %v3762_v44 = vmax.f32 %v7117_v29, %v7123_v31  ;;  %v3742_v33 = vpop.f32.mrb[29].mxu0  ;;  %v4228_v29 = vld [vmem:[#allocation24 + $0x68] sm:$0xff] }
 0x908   : > { %v3761_v34 = vmax.f32 %v3722_v24, %v3742_v33  ;;  %v7566_v24 = vpack.c.bf16 %v4228_v29, %v4227_v28  ;;  %v4206_v33 = vstv %s4201_s11  ;;  %v4543_v28 = vld [vmem:[%s10122_s4 + $0x30] sm:$0xff]  ;;  %v4544_v29 = vld [vmem:[%s10122_s4 + $0x38] sm:$0xff] }
 0x909   : > { %vm3767_vm13 = vcmp.gt.f32.partialorder %v3762_v44, 0.0  ;;  %v3772_v35 = vmul.f32 %v3770_v32, %v3762_v44 }
 0x90a   : > { %vm3766_vm14 = vcmp.gt.f32.partialorder %v3761_v34, 0.0  ;;  %v3771_v39 = vmul.f32 %v3770_v32, %v3761_v34  ;;  %v7126_v40 = vpop.f32.mrb[30].mxu0  ;;  %7567 = vmatprep.subr.bf16.mxu1 %v7566_v24 }
 0x90b   : > { %v3776_v43 = vsel %vm3767_vm13, %v3762_v44, %v3772_v35  ;;  %v3764_v45 = vmax.f32 %v7120_v30, %v7126_v40  ;;  %v3752_v46 = vpop.f32.mrb[31].mxu0  ;;  %7569 = vmatpush3.bf16.msra.mxu1 %v7566_v24  ;;  %v4229_v30 = vld [vmem:[#allocation24 + $0x70] sm:$0xff]  ;;  %v7596_v24 = vpack.c.bf16 %v4544_v29, %v4543_v28  ;;  %v9802_v28 = vsub.s32 2, %v9488_v37 }
 0x90c   : > { %3780 = vst.msk [vmem:[#allocation2 + $0x10] sm:$0xff] %vm2844_vm3, %v3776_v43  ;;  %v3763_v47 = vmax.f32 %v3732_v55, %v3752_v46  ;;  %v3775_v48 = vsel %vm3766_vm14, %v3761_v34, %v3771_v39  ;;  %v4230_v55 = vld [vmem:[#allocation24 + $0x78] sm:$0xff] }
 0x90d   : > { %vm3769_vm15 = vcmp.gt.f32.partialorder %v3764_v45, 0.0  ;;  %v3774_v50 = vmul.f32 %v3770_v32, %v3764_v45  ;;  %3779 = vst.msk [vmem:[#allocation2 + $0x8] sm:$0xff] %vm2844_vm3, %v3775_v48  ;;  %7143 = vmatprep.mubr.msk.f32.mxu0 %vm2844_vm3, %v3775_v48  ;;  %v7570_v31 = vpack.c.bf16 %v4230_v55, %v4229_v30  ;;  %v8854_v30 = vmov 0.0   ;;  %v4529_v55 = vld [vmem:[%s10123_s22] sm:$0xff] }
 0x90e   : > { %vm3768_vm1 = vcmp.gt.f32.partialorder %v3763_v47, 0.0  ;;  %v3773_v53 = vmul.f32 %v3770_v32, %v3763_v47  ;;  %7144 = vmatmul.mubr.msk.f32.vlgmr.msra.gmra.mrb[32].mxu0 %vm2844_vm3, %v3776_v43  ;;  %v6327_v32 = vld [vmem:[#allocation18] ss:$0 sm:$0xff] }
 0x90f   : > { %7513 = vmatpush3.bf16.msra.mxu0 %v9716_v7  ;;  %v3778_v56 = vsel %vm3769_vm15, %v3764_v45, %v3774_v50  ;;  %v3808_v7 = vand.u32 3, %v9547_v16  ;;  %v7534_v16 = vpack.c.bf16 %v4086_v17, %v4085_v10  ;;  %7571 = vmatprep.subr.bf16.mxu1 %v7570_v31  ;;  %vm4344_vm15 = vcmask 261120   ;;  %v4446_v10 = vld [vmem:[#allocation27] sm:$0xff] }
 0x910   : > { %v3777_v57 = vsel %vm3768_vm1, %v3763_v47, %v3773_v53  ;;  %7515 = vmatprep.subr.bf16.mxu0 %v7514_v41  ;;  %3782 = vst.msk [vmem:[#allocation2 + $0x20] sm:$0xff] %vm2844_vm3, %v3778_v56  ;;  %7573 = vmatpush3.bf16.msra.mxu1 %v7570_v31  ;;  %v4530_v31 = vld [vmem:[%s10123_s22 + $0x8] sm:$0xff] }
 0x911   : > { %7146 = vmatprep.mubr.msk.f32.mxu0 %vm2844_vm3, %v3777_v57  ;;  %3781 = vst.msk [vmem:[#allocation2 + $0x18] sm:$0xff] %vm2844_vm3, %v3777_v57  ;;  %vm3834_vm6 = vcmp.ne.s32.totalorder %v3808_v7, 0  ;;  %vm3854_vm10 = vcmp.ne.s32.totalorder %v3808_v7, 3 }
 0x912   : > { %7147 = vmatmul.mubr.msk.f32.gmra.mrb[34].mxu0 %vm2844_vm3, %v3778_v56 }
 0x913   : > { %7517 = vmatpush3.bf16.msra.mxu0 %v7514_v41 }
 0x914   : > { %7519 = vmatprep.subr.bf16.mxu0 %v7518_v58  ;;  %v3835_v61 = vld [vmem:[#allocation2 + $0x7] sm:$0xff]  ;;  %v3836_v6 = vld [vmem:[#allocation2 + $0xf] sm:$0xff] }
 0x915   : > { %v3847_v63 = vsel %vm3831_vm2, %v3835_v61, 0.0  ;;  %v3848_v9 = vsel %vm3832_vm4, %v3836_v6, 0.0  ;;  %v3855_v18 = vld [vmem:[#allocation2 + $0x9] sm:$0xff] }
 0x916   : > { %7165 = vmatprep.mubr.msk.f32.mxu0 %vm2844_vm3, %v3847_v63  ;;  %v3867_v20 = vsel %vm3851_vm7, %v3855_v18, 0.0 }
 0x917   : > { %7521 = vmatpush3.bf16.msra.mxu0 %v7518_v58  ;;  %v3858_v26 = vld [vmem:[#allocation2 + $0x21] sm:$0xff] }
 0x918   : > { %7523 = vmatprep.subr.bf16.mxu0 %v7522_v62  ;;  %v3837_v12 = vld [vmem:[#allocation2 + $0x17] sm:$0xff]  ;;  %v3838_v42 = vld [vmem:[#allocation2 + $0x1f] sm:$0xff]  ;;  %v3870_v27 = vsel %vm3854_vm10, %v3858_v26, 0.0  ;;  %v4542_v26 = vld [vmem:[%s10122_s4 + $0x28] sm:$0xff] }
 0x919   : > { %v3849_v11 = vsel %vm3833_vm5, %v3837_v12, 0.0  ;;  %v3850_v14 = vsel %vm3834_vm6, %v3838_v42, 0.0  ;;  %v3856_v22 = vld [vmem:[#allocation2 + $0x11] sm:$0xff]  ;;  %v3857_v49 = vld [vmem:[#allocation2 + $0x19] sm:$0xff] }
 0x91a   : > { %v3868_v23 = vsel %vm3852_vm8, %v3856_v22, 0.0  ;;  %v3869_v25 = vsel %vm3853_vm9, %v3857_v49, 0.0  ;;  %v4341_v12 = vld [vmem:[#allocation25 + $0x8] sm:$0xff]  ;;  %v4539_v22 = vld [vmem:[%s10122_s4 + $0x10] sm:$0xff] }
 0x91b   : > { %7525 = vmatpush3.bf16.msra.mxu0 %v7522_v62  ;;  %v4540_v49 = vld [vmem:[%s10122_s4 + $0x18] sm:$0xff] }
 0x91c   : > { %7527 = vmatprep.subr.bf16.mxu0 %v7526_v4 }
 0x91e   : > { %7166 = vmatmul.mubr.msk.f32.vlgmr.msra.gmra.mrb[32].mxu0 %vm2844_vm3, %v3848_v9  ;;  %v4343_v9 = vld [vmem:[#allocation25 + $0x18] sm:$0xff] }
 0x91f   : > { %7168 = vmatprep.mubr.msk.f32.mxu0 %vm2844_vm3, %v3849_v11  ;;  %7529 = vmatpush3.bf16.msra.mxu0 %v7526_v4 }
 0x920   : > { %7531 = vmatprep.subr.bf16.mxu0 %v7530_v13 }
 0x922   : > { %7169 = vmatmul.mubr.msk.f32.gmra.mrb[34].mxu0 %vm2844_vm3, %v3850_v14  ;;  %v4537_v14 = vld [vmem:[%s10122_s4] sm:$0xff] }
 0x923   : > { %7533 = vmatpush3.bf16.msra.mxu0 %v7530_v13  ;;  %7187 = vmatprep.mubr.msk.f32.mxu0 %vm2844_vm3, %v3867_v20  ;;  %v4342_v13 = vld [vmem:[#allocation25 + $0x10] sm:$0xff]  ;;  %v7587_v20 = vpack.c.bf16 %v4538_v15, %v4537_v14  ;;  %v8053_v15 = vld [vmem:[%s10124_s16 + $0x74] ss:$8 sps:$4 sm:$0xff]  }
 0x924   : > { %7535 = vmatprep.subr.bf16.mxu0 %v7534_v16  ;;  %v8048_v14 = vld [vmem:[%s10124_s16 + $0x60] ss:$8 sps:$4 sm:$0xff]  }
 0x927   : > { %7537 = vmatpush3.bf16.msra.mxu0 %v7534_v16 }
 0x928   : > { %7539 = vmatprep.subr.bf16.mxu0 %v7538_v21 }
 0x92b   : > { %7541 = vmatpush3.bf16.msra.mxu0 %v7538_v21  ;;  %v8852_v21 = vmov 0.0|0.0  }
 0x92e   : > { %7188 = vmatmul.mubr.msk.f32.vlgmr.msra.gmra.mrb[32].mxu0 %vm2844_vm3, %v3868_v23  ;;  %v7590_v23 = vpack.c.bf16 %v4540_v49, %v4539_v22  ;;  %v8059_v22 = vld [vmem:[%s10124_s16 + $0x94] ss:$8 sps:$4 sm:$0xff]   ;;  %v8057_v49 = vld [vmem:[%s10124_s16 + $0x90] ss:$8 sps:$4 sm:$0xff]  }
 0x92f   : > { %7190 = vmatprep.mubr.msk.f32.mxu0 %vm2844_vm3, %v3869_v25  ;;  %v4541_v25 = vld [vmem:[%s10122_s4 + $0x20] sm:$0xff]  ;;  %s6444_s4 = sshll.u32 %s9066_s29, 7  ;;  %s8859_s29 = smov [#allocation40]  }
 0x932   : > { %7191 = vmatmul.mubr.msk.f32.gmra.mrb[34].mxu0 %vm2844_vm3, %v3870_v27  ;;  %v7593_v27 = vpack.c.bf16 %v4542_v26, %v4541_v25  ;;  %v8060_v25 = vld [vmem:[%s10124_s16 + $0xa0] ss:$8 sps:$4 sm:$0xff]   ;;  %v8065_v26 = vld [vmem:[%s10124_s16 + $0xb4] ss:$8 sps:$4 sm:$0xff]  }
 0x933   : > { %7239 = vmatprep.mubr.msk.f32.mxu0 %vm4344_vm15, %v4340_v54  ;;  %v8027_v54 = vld [vmem:[#allocation31 + $0x28] ss:$16 sps:$4 sm:$0xff]  }
 0xa01   : > { %v7189_v44 = vpop.f32.mrb[32].mxu0 }
 0xa02   : > { %v4198_v34 = vadd.f32 %v7189_v44, %v6327_v32  ;;  %v4167_v35 = vpop.f32.mrb[33].mxu0  ;;  %v4531_v44 = vld [vmem:[%s10123_s22 + $0x10] sm:$0xff] }
 0xa03   : > { %v4197_v36 = vadd.f32 %v6327_v32, %v4167_v35 }
 0xa04   : > { %v4208_v38 = vmul.f32 %v4206_v33, %v4198_v34  ;;  %vm4203_vm11 = vcmp.gt.f32.partialorder %v4198_v34, 0.0 }
 0xa05   : > { %v4207_v39 = vmul.f32 %v4206_v33, %v4197_v36  ;;  %v7192_v40 = vpop.f32.mrb[34].mxu0  ;;  %vm4202_vm12 = vcmp.gt.f32.partialorder %v4197_v36, 0.0 }
 0xa06   : > { %v4200_v43 = vadd.f32 %v7192_v40, %v6327_v32  ;;  %v4177_v45 = vpop.f32.mrb[35].mxu0  ;;  %v4212_v48 = vsel %vm4203_vm11, %v4198_v34, %v4208_v38  ;;  %v4533_v38 = vld [vmem:[%s10123_s22 + $0x20] sm:$0xff] }
 0xa07   : > { %v4199_v46 = vadd.f32 %v6327_v32, %v4177_v45  ;;  %v4211_v47 = vsel %vm4202_vm12, %v4197_v36, %v4207_v39  ;;  %v7599_v32 = vpack.c.bf16 %v4530_v31, %v4529_v55  ;;  %v4534_v39 = vld [vmem:[%s10123_s22 + $0x28] sm:$0xff]  ;;  %v4536_v45 = vld [vmem:[%s10123_s22 + $0x38] sm:$0xff] }
 0xa08   : > { %v4210_v41 = vmul.f32 %v4206_v33, %v4200_v43  ;;  %7225 = vmatprep.mubr.f32.mxu1 %v4211_v47  ;;  %vm4205_vm14 = vcmp.gt.f32.partialorder %v4200_v43, 0.0  ;;  %v7605_v40 = vpack.c.bf16 %v4534_v39, %v4533_v38  ;;  %v8018_v47 = vld [vmem:[#allocation31] ss:$16 sps:$4 sm:$0xff]   ;;  %v8068_v31 = vld [vmem:[%s10124_s16 + $0xc4] ss:$8 sps:$4 sm:$0xff]  }
 0xa09   : > { %v4209_v50 = vmul.f32 %v4206_v33, %v4199_v46  ;;  %7226 = vmatmul.mubr.f32.vlgmr.msra.gmra.mrb[40].mxu1 %v4212_v48  ;;  %vm4204_vm13 = vcmp.gt.f32.partialorder %v4199_v46, 0.0  ;;  %v4532_v33 = vld [vmem:[%s10123_s22 + $0x18] sm:$0xff] }
 0xa0a   : > { %v4214_v52 = vsel %vm4205_vm14, %v4200_v43, %v4210_v41  ;;  %v7602_v36 = vpack.c.bf16 %v4532_v33, %v4531_v44  ;;  %v4535_v43 = vld [vmem:[%s10123_s22 + $0x30] sm:$0xff]  ;;  %v8020_v48 = vld [vmem:[#allocation31 + $0x4] ss:$16 sps:$4 sm:$0xff]   ;;  %v8066_v44 = vld [vmem:[%s10124_s16 + $0xc0] ss:$8 sps:$4 sm:$0xff]  }
 0xa0b   : > { %v4213_v51 = vsel %vm4204_vm13, %v4199_v46, %v4209_v50  ;;  %v7608_v46 = vpack.c.bf16 %v4536_v45, %v4535_v43  ;;  %v8021_v41 = vld [vmem:[#allocation31 + $0x8] ss:$16 sps:$4 sm:$0xff]   ;;  %v8023_v50 = vld [vmem:[#allocation31 + $0xc] ss:$16 sps:$4 sm:$0xff]   ;;  %4773 = vmatprep.subr.bf16.mxu1 %v8020_v48 }
 0xa0c   : > { %7228 = vmatprep.mubr.f32.mxu1 %v4213_v51  ;;  %4774 = vmatpush1.bf16.msra.mxu1 %v8018_v47  ;;  %v8026_v51 = vld [vmem:[#allocation31 + $0x24] ss:$16 sps:$4 sm:$0xff]   ;;  %v8069_v39 = vld [vmem:[%s10124_s16 + $0xd0] ss:$8 sps:$4 sm:$0xff]  }
 0xa0d   : > { %7229 = vmatmul.mubr.f32.gmra.mrb[42].mxu1 %v4214_v52  ;;  %v8029_v52 = vld [vmem:[#allocation31 + $0x2c] ss:$16 sps:$4 sm:$0xff]   ;;  %4775 = vmatprep.subr.bf16.mxu1 %v8026_v51 }
 0xa0e   : > { %v8074_v48 = vld [vmem:[%s10124_s16 + $0xe4] ss:$8 sps:$4 sm:$0xff]   ;;  %v8077_v51 = vld [vmem:[%s10124_s16 + $0xf4] ss:$8 sps:$4 sm:$0xff]  }
 0xadc   : > { %v7227_v53 = vpop.f32.mrb[40].mxu1 }
 0xadd   : > { %4322 = vrot.lane.b32.xlu1 %v7227_v53, %s8851_s8  ;;  %v4297_v56 = vpop.f32.mrb[41].mxu1 }
 0xade   : > { %4320 = vrot.lane.b32.xlu0 %v4297_v56, %s8851_s8 }
 0xae0   : > { %v7230_v57 = vpop.f32.mrb[42].mxu1 }
 0xae1   : > { %4326 = vrot.lane.b32.xlu1 %v7230_v57, %s8851_s8  ;;  %v4307_v58 = vpop.f32.mrb[43].mxu1 }
 0xae2   : > { %4324 = vrot.lane.b32.xlu0 %v4307_v58, %s8851_s8  ;;  %s10125_s8 = sld [smem:[#allocation52_spill]] }
 0xae8   : > { %s1374_s11 = scalar_lea.vmem %s10125_s8, %s6230_s10  ;;  %s10126_s8 = sld [smem:[#allocation69_spill]] }
 0xae9   : > { %s5492_s10 = sld [smem:[#allocation7]] }
 0xb4f   : > { %v4323_v59 = vpop.permute.xlu1 %4322 }
 0xb50   : > { %v4333_v60 = vadd.f32 %v7227_v53, %v4323_v59  ;;  %v4321_v61 = vpop.permute.xlu0 %4320  ;;  %v8024_v53 = vld [vmem:[#allocation31 + $0x20] ss:$16 sps:$4 sm:$0xff]   ;;  %v4855_v59 = vld [vmem:[%s1374_s11] sm:$0xff]  ;;  %s10127_s11 = sld [smem:[#allocation73_spill]] }
 0xb51   : > { %v4332_v62 = vadd.f32 %v4321_v61, %v4297_v56  ;;  %4776 = vmatpush1.bf16.msra.mxu1 %v8024_v53  ;;  %v8855_v56 = vmov 0   ;;  %v8858_v61 = vmov 3   ;;  %v8126_v53 = vld [vmem:[#allocation34 + $0x40] sm:$0xff]  }
 0xb52   : > { %v4337_v63 = vmul.f32 0.5, %v4333_v60  ;;  %4805 = vmatprep.mubr.bf16.mxu1 %v8855_v56  ;;  %8014 = vset.pattern.permute.xlu0 %v8855_v56  ;;  %v8857_v60 = vmov 2  }
 0xb53   : > { %v4336_v0 = vmul.f32 0.5, %v4332_v62  ;;  %v4327_v1 = vpop.permute.xlu1 %4326  ;;  %4859 = vperm.xlu0 %8014, %v4855_v59  }
 0xb54   : > { %v4335_v2 = vadd.f32 %v7230_v57, %v4327_v1  ;;  %v4325_v3 = vpop.permute.xlu0 %4324  ;;  %v8856_v57 = vmov 1   ;;  %v6336_v1 = vld [vmem:[#allocation28] ss:$0 sm:$0xff] }
 0xb55   : > { %v7574_v4 = vpack.c.bf16 %v4337_v63, %v4336_v0  ;;  %v4334_v5 = vadd.f32 %v4325_v3, %v4307_v58  ;;  %8015 = vset.pattern.permute.xlu1 %v8856_v57  ;;  %v8032_v58 = vld [vmem:[%s10124_s16 + $0x4] ss:$8 sps:$4 sm:$0xff]  }
 0xb56   : > { %v4339_v8 = vmul.f32 0.5, %v4335_v2  ;;  %5410 = vmatprep.subr.bf16.mxu1 %v8032_v58  ;;  %4894 = vperm.xlu1 %8015, %v4855_v59   ;;  %v8129_v57 = vld [vmem:[#allocation34 + $0x8] sm:$0xff]   ;;  %v8130_v58 = vld [vmem:[#allocation34 + $0x50] sm:$0xff]  }
 0xb57   : > { %v4338_v6 = vmul.f32 0.5, %v4334_v5  ;;  %7575 = vmatprep.subr.bf16.mxu0 %v7574_v4  ;;  %8017 = vset.pattern.permute.xlu0 %v8858_v61  ;;  %v8030_v5 = vld [vmem:[%s10124_s16] ss:$8 sps:$4 sm:$0xff]   ;;  %v8133_v61 = vld [vmem:[#allocation34 + $0x18] sm:$0xff]  }
 0xb58   : > { %7577 = vmatpush3.bf16.msra.mxu0 %v7574_v4  ;;  %4964 = vperm.xlu0 %8017, %v4855_v59  }
 0xb59   : > { %v7578_v7 = vpack.c.bf16 %v4339_v8, %v4338_v6  ;;  %v8035_v6 = vld [vmem:[%s10124_s16 + $0x14] ss:$8 sps:$4 sm:$0xff]  }
 0xb5a   : > { %8016 = vset.pattern.permute.xlu1 %v8857_v60  ;;  %v8132_v60 = vld [vmem:[#allocation34 + $0x58] sm:$0xff]  }
 0xb5b   : > { %7579 = vmatprep.subr.bf16.mxu0 %v7578_v7  ;;  %4929 = vperm.xlu1 %8016, %v4855_v59   ;;  %v8131_v59 = vld [vmem:[#allocation34 + $0x10] sm:$0xff]  }
 0xb5c   : > { %7581 = vmatpush3.bf16.msra.mxu0 %v7578_v7  ;;  %v8033_v7 = vld [vmem:[%s10124_s16 + $0x10] ss:$8 sps:$4 sm:$0xff]  }
 0xb5f   : > { %7240 = vmatmul.mubr.msk.f32.vlgmr.msra.gmra.mrb[36].mxu0 %vm4344_vm15, %v4341_v12  ;;  %v8038_v12 = vld [vmem:[%s10124_s16 + $0x24] ss:$8 sps:$4 sm:$0xff]  }
 0xb60   : > { %7242 = vmatprep.mubr.msk.f32.mxu0 %vm4344_vm15, %v4342_v13  ;;  %v8036_v13 = vld [vmem:[%s10124_s16 + $0x20] ss:$8 sps:$4 sm:$0xff]  }
 0xb67   : > { %7243 = vmatmul.mubr.msk.f32.gmra.mrb[36].mxu0 %vm4344_vm15, %v4343_v9  ;;  %v8041_v9 = vld [vmem:[%s10124_s16 + $0x34] ss:$8 sps:$4 sm:$0xff]  }
 0xb68   : > { %7249 = vmatprep.mubr.msk.f32.mxu0 %vm1398_vm0, %v4446_v10  ;;  %v8039_v10 = vld [vmem:[%s10124_s16 + $0x30] ss:$8 sps:$4 sm:$0xff]  }
 0xbd5   : > { %v9804_v29 = vpop.permute.xlu1 %4894 }
 0xbda   : > { %v9822_v38 = vpop.permute.xlu1 %4929 }
 0xc3a   : > { %v7244_v17 = vpop.f32.mrb[36].mxu0 }
 0xc3b   : > { %v4445_v11 = vmul.f32 0.5, %v7244_v17  ;;  %v4433_v42 = vpop.f32.mrb[37].mxu0  ;;  %v8044_v17 = vld [vmem:[%s10124_s16 + $0x44] ss:$8 sps:$4 sm:$0xff]  }
 0xc3c   : > { %v4444_v18 = vmul.f32 0.5, %v4433_v42  ;;  %v8047_v42 = vld [vmem:[%s10124_s16 + $0x54] ss:$8 sps:$4 sm:$0xff]  }
 0xc3e   : > { %v7582_v16 = vpack.c.bf16 %v4445_v11, %v4444_v18  ;;  %v8042_v11 = vld [vmem:[%s10124_s16 + $0x40] ss:$8 sps:$4 sm:$0xff]   ;;  %v8045_v18 = vld [vmem:[%s10124_s16 + $0x50] ss:$8 sps:$4 sm:$0xff]  }
 0xc40   : > { %7583 = vmatprep.subr.bf16.mxu0 %v7582_v16 }
 0xc41   : > { %7585 = vmatpush3.bf16.msra.mxu0 %v7582_v16  ;;  %v8050_v16 = vld [vmem:[%s10124_s16 + $0x64] ss:$8 sps:$4 sm:$0xff]  }
 0xc42   : > { %7586 = vmatprep.subr.bf16.mxu0 %v8852_v21 }
 0xc44   : > { %7250 = vmatmul.mubr.msk.f32.vlgmr.msra.gmra.mrb[38].mxu0 %vm1398_vm0, %v4447_v19  ;;  %vm8853_vm0 = vmmov 0   ;;  %v8051_v19 = vld [vmem:[%s10124_s16 + $0x70] ss:$8 sps:$4 sm:$0xff]  }
 0xc45   : > { %7588 = vmatpush3.bf16.msra.mxu0 %v7587_v20  ;;  %7268 = vmatprep.mubr.msk.f32.mxu0 %vm8853_vm0, %v8854_v30  ;;  %v8056_v20 = vld [vmem:[%s10124_s16 + $0x84] ss:$8 sps:$4 sm:$0xff]  }
 0xc46   : > { %7589 = vmatprep.subr.bf16.mxu0 %v8852_v21 }
 0xc49   : > { %7591 = vmatpush3.bf16.msra.mxu0 %v7590_v23  ;;  %v8062_v23 = vld [vmem:[%s10124_s16 + $0xa4] ss:$8 sps:$4 sm:$0xff]  }
 0xc4a   : > { %7592 = vmatprep.subr.bf16.mxu0 %v8852_v21 }
 0xc4d   : > { %7594 = vmatpush3.bf16.msra.mxu0 %v7593_v27  ;;  %v8063_v27 = vld [vmem:[%s10124_s16 + $0xb0] ss:$8 sps:$4 sm:$0xff]  }
 0xc4e   : > { %7595 = vmatprep.subr.bf16.mxu0 %v8852_v21 }
 0xc51   : > { %7597 = vmatpush3.bf16.msra.mxu0 %v7596_v24  ;;  %v9806_v24 = vld [vmem:[#allocation30] ss:$4 sm:$0xf] }
 0xc52   : > { %7598 = vmatprep.subr.bf16.mxu0 %v8852_v21  ;;  %v4874_v55 = vrot.slane %v9806_v24, %v9802_v28 }
 0xd17   : > { %v7251_v34 = vpop.f32.mrb[38].mxu0 }
 0xd18   : > { %7269 = vmatmul.mubr.msk.f32.vlgmr.msra.gmra.mrb[40].mxu0 %vm2844_vm3, %v7251_v34  ;;  %v4520_v35 = vpop.f32.mrb[39].mxu0  ;;  %v9817_v34 = vld [vmem:[#allocation30 + $0x2] ss:$4 sm:$0xf] }
 0xd19   : > { %7600 = vmatpush3.bf16.msra.mxu0 %v7599_v32  ;;  %7287 = vmatprep.mubr.msk.f32.mxu0 %vm8853_vm0, %v8854_v30  ;;  %v9811_v32 = vpop.permute.xlu0 %4859 }
 0xd1a   : > { %7601 = vmatprep.subr.bf16.mxu0 %v8852_v21  ;;  %v9815_v33 = vmul.f32 %v4874_v55, %v9811_v32 }
 0xd1d   : > { %7603 = vmatpush3.bf16.msra.mxu0 %v7602_v36  ;;  %v8071_v36 = vld [vmem:[%s10124_s16 + $0xd4] ss:$8 sps:$4 sm:$0xff]  }
 0xd1e   : > { %7604 = vmatprep.subr.bf16.mxu0 %v8852_v21 }
 0xd21   : > { %7606 = vmatpush3.bf16.msra.mxu0 %v7605_v40  ;;  %v9825_v40 = vld [vmem:[#allocation30 + $0x3] ss:$4 sm:$0xf] }
 0xd22   : > { %7607 = vmatprep.subr.bf16.mxu0 %v8852_v21  ;;  %v8054_v21 = vld [vmem:[%s10124_s16 + $0x80] ss:$8 sps:$4 sm:$0xff]   ;;  %v4979_v45 = vrot.slane %v9825_v40, %v9802_v28 }
 0xd25   : > { %7609 = vmatpush3.bf16.msra.mxu0 %v7608_v46  ;;  %v9832_v46 = vpop.permute.xlu0 %4964 }
 0xd26   : > { %4814 = vmatprep.subr.bf16.mxu0 %v8023_v50  ;;  %v9835_v47 = vmul.f32 %v4979_v45, %v9832_v46  ;;  %v8075_v50 = vld [vmem:[%s10124_s16 + $0xf0] ss:$8 sps:$4 sm:$0xff]  }
 0xd28   : > { %7288 = vmatmul.mubr.msk.f32.vlgmr.msra.gmra.mrb[42].mxu0 %vm2844_vm3, %v4520_v35  ;;  %v4944_v35 = vrot.slane %v9817_v34, %v9802_v28 }
 0xd29   : > { %4815 = vmatpush1.bf16.msra.mxu0 %v8021_v41  ;;  %4846 = vmatprep.mubr.bf16.mxu0 %v8855_v56  ;;  %v8072_v41 = vld [vmem:[%s10124_s16 + $0xe0] ss:$8 sps:$4 sm:$0xff]  }
 0xd2a   : > { %4816 = vmatprep.subr.bf16.mxu0 %v8029_v52  ;;  %v9828_v43 = vmul.f32 %v4944_v35, %v9822_v38  ;;  %v8080_v52 = vld [vmem:[%s10124_s16 + $0x104] ss:$8 sps:$4 sm:$0xff]  }
 0xd2b   : > { %v8128_v56 = vld [vmem:[#allocation34 + $0x48] sm:$0xff]  }
 0xd2d   : > { %4817 = vmatpush1.bf16.msra.mxu0 %v8027_v54  ;;  %v8127_v54 = vld [vmem:[#allocation34] sm:$0xff]  }
 0xd2e   : > { %6739 = vmatprep.subr.bf16.mxu0 %v8126_v53 }
 0xdeb   : > { %v4614_v62 = vpop.f32.mrb[40].mxu0 }
 0xdec   : > { %v7270_v63 = vpop.f32.mrb[41].mxu0 }
 0xded   : > { %v8135_v63 = vld [vmem:[#allocation34 + $0x20] sm:$0xff]  }
 0xdfb   : > { %v4687_v0 = vpop.f32.mrb[42].mxu0 }
 0xdfc   : > { %v4688_v2 = vadd.f32 %v4687_v0, %v4614_v62  ;;  %v7289_v3 = vpop.f32.mrb[43].mxu0  ;;  %v8134_v62 = vld [vmem:[#allocation34 + $0x60] sm:$0xff]   ;;  %v8136_v0 = vld [vmem:[#allocation34 + $0x68] sm:$0xff]  }
 0xdfd   : > { %v9846_v3 = vsub.s32 1, %v9488_v37 }
 0xdfe   : > { %v4698_v4 = vadd.f32 %v6336_v1, %v4688_v2  ;;  %v8137_v1 = vld [vmem:[#allocation34 + $0x28] sm:$0xff]   ;;  %v9843_v2 = vsub.s32 0, %v9488_v37 }
 0xe00   : > { %v4699_v8 = vpack.c.bf16 %v4698_v4, %v4698_v4  ;;  %v4724_v4 = vsub.s32 3, %v9488_v37 }
 0xe02   : > { %6345 = vmatmul.mubr.msk.bf16.vlgmr.msra.gmra.mrb[44].mxu1 %vm4344_vm15, %v4699_v8  ;;  %6346 = vmatmul.mubr.msk.bf16.vlgmr.msra.gmra.mrb[44].mxu0 %vm4344_vm15, %v4699_v8  ;;  %v4708_v8 = vld [vmem:[%s10126_s8] sm:$0xf]  ;;  %s5677_s8 = sld [smem:[#allocation8]] }
 0xe03   : > { %5411 = vmatpush1.bf16.msra.mxu1 %v8030_v5  ;;  %6740 = vmatpush3.bf16.msra.mxu0 %v8127_v54  ;;  %v4892_v5 = vld [vmem:[#allocation30 + $0x1] ss:$4 sm:$0xf]  ;;  %v4721_v37 = vrot.slane %v4708_v8, %v9802_v28 }
 0xe04   : > { %5412 = vmatprep.subr.bf16.mxu1 %v8035_v6  ;;  %6741 = vmatprep.subr.bf16.mxu0 %v8128_v56  ;;  %v4901_v6 = vrot.slane %v4892_v5, %v9843_v2 }
 0xe07   : > { %5413 = vmatpush1.bf16.msra.mxu1 %v8033_v7  ;;  %6742 = vmatpush3.bf16.msra.mxu0 %v8129_v57  ;;  %v4905_v7 = vrot.slane %v4892_v5, %v9846_v3 }
 0xe08   : > { %5414 = vmatprep.subr.bf16.mxu1 %v8038_v12  ;;  %6743 = vmatprep.subr.bf16.mxu0 %v8130_v58  ;;  %v4866_v12 = vrot.slane %v9806_v24, %v9843_v2 }
 0xe0b   : > { %5415 = vmatpush1.bf16.msra.mxu1 %v8036_v13  ;;  %6744 = vmatpush3.bf16.msra.mxu0 %v8131_v59  ;;  %v4870_v13 = vrot.slane %v9806_v24, %v9846_v3 }
 0xe0c   : > { %5416 = vmatprep.subr.bf16.mxu1 %v8041_v9  ;;  %6745 = vmatprep.subr.bf16.mxu0 %v8132_v60  ;;  %v4878_v9 = vrot.slane %v9806_v24, %v4724_v4 }
 0xe0f   : > { %5417 = vmatpush1.bf16.msra.mxu1 %v8039_v10  ;;  %6746 = vmatpush3.bf16.msra.mxu0 %v8133_v61  ;;  %v4909_v10 = vrot.slane %v4892_v5, %v9802_v28 }
 0xe10   : > { %5418 = vmatprep.subr.bf16.mxu1 %v8044_v17  ;;  %6747 = vmatprep.subr.bf16.mxu0 %v8134_v62  ;;  %v4713_v17 = vrot.slane %v4708_v8, %v9843_v2 }
 0xe13   : > { %5419 = vmatpush1.bf16.msra.mxu1 %v8042_v11  ;;  %6748 = vmatpush3.bf16.msra.mxu0 %v8135_v63  ;;  %v4913_v11 = vrot.slane %v4892_v5, %v4724_v4 }
 0xe14   : > { %5420 = vmatprep.subr.bf16.mxu1 %v8047_v42  ;;  %6749 = vmatprep.subr.bf16.mxu0 %v8136_v0  ;;  %v4717_v42 = vrot.slane %v4708_v8, %v9846_v3 }
 0xe15   : > { %v4921_v45 = vmul.f32 %v4913_v11, %v9804_v29 }
 0xe17   : > { %5421 = vmatpush1.bf16.msra.mxu1 %v8045_v18  ;;  %6750 = vmatpush3.bf16.msra.mxu0 %v8137_v1  ;;  %v4725_v18 = vrot.slane %v4708_v8, %v4724_v4 }
 0xe18   : > { %5422 = vmatprep.subr.bf16.mxu1 %v8050_v16  ;;  %v4918_v16 = vmul.f32 %v4901_v6, %v9804_v29 }
 0xe1b   : > { %5423 = vmatpush1.bf16.msra.mxu1 %v8048_v14  ;;  %v4919_v14 = vmul.f32 %v4905_v7, %v9804_v29 }
 0xe1c   : > { %5424 = vmatprep.subr.bf16.mxu1 %v8053_v15  ;;  %v4883_v15 = vmul.f32 %v4866_v12, %v9811_v32 }
 0xe1f   : > { %5425 = vmatpush1.bf16.msra.mxu1 %v8051_v19  ;;  %v4936_v19 = vrot.slane %v9817_v34, %v9843_v2 }
 0xe20   : > { %5426 = vmatprep.subr.bf16.mxu1 %v8056_v20 }
 0xe23   : > { %5427 = vmatpush1.bf16.msra.mxu1 %v8054_v21 }
 0xe24   : > { %5428 = vmatprep.subr.bf16.mxu1 %v8059_v22  ;;  %v4884_v22 = vmul.f32 %v4870_v13, %v9811_v32 }
 0xe27   : > { %5429 = vmatpush1.bf16.msra.mxu1 %v8057_v49  ;;  %v4886_v49 = vmul.f32 %v4878_v9, %v9811_v32 }
 0xe28   : > { %5430 = vmatprep.subr.bf16.mxu1 %v8062_v23  ;;  %v4940_v23 = vrot.slane %v9817_v34, %v9846_v3 }
 0xe2a   : > { %v4954_v56 = vmul.f32 %v4940_v23, %v9822_v38  ;;  %v8093_v23 = vld [vmem:[%s10124_s16 + $0x150] ss:$8 sps:$4 sm:$0xff]  }
 0xe2b   : > { %5431 = vmatpush1.bf16.msra.mxu1 %v8060_v25  ;;  %v4948_v25 = vrot.slane %v9817_v34, %v4724_v4  ;;  %v4983_v34 = vrot.slane %v9825_v40, %v4724_v4  ;;  %v5001_v4 = vstv %s9871_s5  ;;  %s5794_s5 = sld [smem:[#allocation9]] }
 0xe2c   : > { %5432 = vmatprep.subr.bf16.mxu1 %v8065_v26  ;;  %v4920_v26 = vmul.f32 %v4909_v10, %v9804_v29 }
 0xe2d   : > { %v4956_v57 = vmul.f32 %v4948_v25, %v9822_v38  ;;  %v8098_v25 = vld [vmem:[%s10124_s16 + $0x164] ss:$8 sps:$4 sm:$0xff]  }
 0xe2f   : > { %5433 = vmatpush1.bf16.msra.mxu1 %v8063_v27 }
 0xe30   : > { %5434 = vmatprep.subr.bf16.mxu1 %v8068_v31  ;;  %v4971_v31 = vrot.slane %v9825_v40, %v9843_v2 }
 0xe33   : > { %5435 = vmatpush1.bf16.msra.mxu1 %v8066_v44 }
 0xe34   : > { %5436 = vmatprep.subr.bf16.mxu1 %v8071_v36 }
 0xe37   : > { %5437 = vmatpush1.bf16.msra.mxu1 %v8069_v39  ;;  %v4975_v39 = vrot.slane %v9825_v40, %v9846_v3  ;;  %v4988_v40 = vmul.f32 %v4971_v31, %v9832_v46  ;;  %v8107_v31 = vld [vmem:[%s10124_s16 + $0x194] ss:$8 sps:$4 sm:$0xff]  }
 0xe38   : > { %5438 = vmatprep.subr.bf16.mxu1 %v8074_v48 }
 0xe39   : > { %v4989_v61 = vmul.f32 %v4975_v39, %v9832_v46  ;;  %v8111_v39 = vld [vmem:[%s10124_s16 + $0x1b0] ss:$8 sps:$4 sm:$0xff]  }
 0xe3b   : > { %5439 = vmatpush1.bf16.msra.mxu1 %v8072_v41 }
 0xe3c   : > { %5440 = vmatprep.subr.bf16.mxu1 %v8077_v51 }
 0xe3f   : > { %5441 = vmatpush1.bf16.msra.mxu1 %v8075_v50 }
 0xe40   : > { %5451 = vmatprep.subr.bf16.mxu1 %v8080_v52  ;;  %v4953_v52 = vmul.f32 %v4936_v19, %v9822_v38  ;;  %v8089_v19 = vld [vmem:[%s10124_s16 + $0x134] ss:$8 sps:$4 sm:$0xff]  }
 0xed5   : > { %v4807_v20 = vpop.f32.mrb[44].mxu1  ;;  %v4848_v21 = vpop.f32.mrb[44].mxu0 }
 0xed6   : > { %v4808_v27 = vadd.f32 %v4807_v20, %v4713_v17  ;;  %v4849_v28 = vadd.f32 %v4848_v21, %v4721_v37  ;;  %v4809_v24 = vpop.f32.mrb[45].mxu1  ;;  %v4850_v55 = vpop.f32.mrb[45].mxu0  ;;  %v8078_v37 = vld [vmem:[%s10124_s16 + $0x100] ss:$8 sps:$4 sm:$0xff]   ;;  %v8087_v20 = vld [vmem:[%s10124_s16 + $0x130] ss:$8 sps:$4 sm:$0xff]  }
 0xed7   : > { %v4810_v44 = vadd.f32 %v4809_v24, %v4717_v42  ;;  %v4851_v35 = vadd.f32 %v4850_v55, %v4725_v18  ;;  %v4811_v36 = vpop.f32.mrb[46].mxu1  ;;  %v4852_v32 = vpop.f32.mrb[46].mxu0  ;;  %v8083_v42 = vld [vmem:[%s10124_s16 + $0x114] ss:$8 sps:$4 sm:$0xff]   ;;  %v8092_v21 = vld [vmem:[%s10124_s16 + $0x144] ss:$8 sps:$4 sm:$0xff]  }
 0xed8   : > { %v4887_v48 = vadd.f32 %v4883_v15, %v4808_v27  ;;  %v4889_v41 = vadd.f32 %v9815_v33, %v4849_v28  ;;  %v4812_v50 = vpop.f32.mrb[47].mxu1  ;;  %v4853_v51 = vpop.f32.mrb[47].mxu0  ;;  %v4991_v33 = vmul.f32 %v4983_v34, %v9832_v46  ;;  %v8084_v15 = vld [vmem:[%s10124_s16 + $0x120] ss:$8 sps:$4 sm:$0xff]   ;;  %v8101_v27 = vld [vmem:[%s10124_s16 + $0x174] ss:$8 sps:$4 sm:$0xff]  }
 0xed9   : > { %v4888_v53 = vadd.f32 %v4884_v22, %v4810_v44  ;;  %v4890_v54 = vadd.f32 %v4886_v49, %v4851_v35  ;;  %v8090_v22 = vld [vmem:[%s10124_s16 + $0x140] ss:$8 sps:$4 sm:$0xff]   ;;  %v8095_v49 = vld [vmem:[%s10124_s16 + $0x154] ss:$8 sps:$4 sm:$0xff]   ;;  %v8099_v28 = vld [vmem:[%s10124_s16 + $0x170] ss:$8 sps:$4 sm:$0xff]  }
 0xeda   : > { %v4922_v58 = vadd.f32 %v4918_v16, %v4887_v48  ;;  %v4924_v59 = vadd.f32 %v4920_v26, %v4889_v41  ;;  %v8081_v16 = vld [vmem:[%s10124_s16 + $0x110] ss:$8 sps:$4 sm:$0xff]   ;;  %v8096_v26 = vld [vmem:[%s10124_s16 + $0x160] ss:$8 sps:$4 sm:$0xff]   ;;  %v8104_v24 = vld [vmem:[%s10124_s16 + $0x184] ss:$8 sps:$4 sm:$0xff]  }
 0xedb   : > { %v4923_v60 = vadd.f32 %v4919_v14, %v4888_v53  ;;  %v4925_v29 = vadd.f32 %v4921_v45, %v4890_v54  ;;  %v8086_v14 = vld [vmem:[%s10124_s16 + $0x124] ss:$8 sps:$4 sm:$0xff]   ;;  %v8102_v55 = vld [vmem:[%s10124_s16 + $0x180] ss:$8 sps:$4 sm:$0xff]   ;;  %v8105_v44 = vld [vmem:[%s10124_s16 + $0x190] ss:$8 sps:$4 sm:$0xff]  }
 0xedc   : > { %v4957_v62 = vadd.f32 %v4953_v52, %v4922_v58  ;;  %v4959_v63 = vadd.f32 %v9828_v43, %v4924_v59  ;;  %v8110_v35 = vld [vmem:[%s10124_s16 + $0x1a4] ss:$8 sps:$4 sm:$0xff]   ;;  %v8108_v36 = vld [vmem:[%s10124_s16 + $0x1a0] ss:$8 sps:$4 sm:$0xff]   ;;  %v8113_v32 = vld [vmem:[%s10124_s16 + $0x1b4] ss:$8 sps:$4 sm:$0xff]  }
 0xedd   : > { %v4958_v0 = vadd.f32 %v4954_v56, %v4923_v60  ;;  %v4960_v1 = vadd.f32 %v4956_v57, %v4925_v29  ;;  %v8116_v34 = vld [vmem:[%s10124_s16 + $0x1c4] ss:$8 sps:$4 sm:$0xff]   ;;  %v8114_v45 = vld [vmem:[%s10124_s16 + $0x1c0] ss:$8 sps:$4 sm:$0xff]   ;;  %v8119_v48 = vld [vmem:[%s10124_s16 + $0x1d4] ss:$8 sps:$4 sm:$0xff]  }
 0xede   : > { %v4992_v5 = vadd.f32 %v4988_v40, %v4957_v62  ;;  %v4994_v8 = vadd.f32 %v9835_v47, %v4959_v63  ;;  %v8117_v41 = vld [vmem:[%s10124_s16 + $0x1d0] ss:$8 sps:$4 sm:$0xff]   ;;  %v8122_v50 = vld [vmem:[%s10124_s16 + $0x1e4] ss:$8 sps:$4 sm:$0xff]   ;;  %v8120_v51 = vld [vmem:[%s10124_s16 + $0x1e0] ss:$8 sps:$4 sm:$0xff]  }
 0xedf   : > { %v4993_v38 = vadd.f32 %v4989_v61, %v4958_v0  ;;  %v4995_v6 = vadd.f32 %v4991_v33, %v4960_v1  ;;  %v8125_v52 = vld [vmem:[%s10124_s16 + $0x1f4] ss:$8 sps:$4 sm:$0xff]   ;;  %v8123_v53 = vld [vmem:[%s10124_s16 + $0x1f0] ss:$8 sps:$4 sm:$0xff]   ;;  %v5495_v33 = vstv %s5492_s10  ;;  %s1368_s10 = sand.u32 1, %s8780_s9  }
 0xee0   : > { %v5002_v7 = vmul.f32 %v5001_v4, %v4992_v5  ;;  %v5004_v12 = vmul.f32 %v5001_v4, %v4994_v8  ;;  %vm4997_vm1 = vcmp.gt.f32.partialorder %v4992_v5, 0.0  ;;  %vm4999_vm2 = vcmp.gt.f32.partialorder %v4994_v8, 0.0  ;;  %v8138_v56 = vld [vmem:[#allocation34 + $0x70] sm:$0xff]   ;;  %v8140_v58 = vld [vmem:[#allocation34 + $0x78] sm:$0xff]   ;;  %s5884_s12 = scalar_lea.sflag [#allocation12], %s1368_s10 }
 0xee1   : > { %vm4998_vm4 = vcmp.gt.f32.partialorder %v4993_v38, 0.0  ;;  %v5003_v13 = vmul.f32 %v5001_v4, %v4993_v38  ;;  %vm5000_vm5 = vcmp.gt.f32.partialorder %v4995_v6, 0.0  ;;  %v5005_v46 = vmul.f32 %v5001_v4, %v4995_v6  ;;  %v8139_v57 = vld [vmem:[#allocation34 + $0x30] sm:$0xff]   ;;  %6751 = vmatprep.subr.bf16.mxu0 %v8138_v56  ;;  %v8141_v59 = vld [vmem:[#allocation34 + $0x38] sm:$0xff]  }
 0xee2   : > { %v5006_v43 = vsel %vm4997_vm1, %v4992_v5, %v5002_v7  ;;  %v9890_v9 = vsel %vm4999_vm2, %v4994_v8, %v5004_v12  ;;  %6752 = vmatpush3.bf16.msra.mxu0 %v8139_v57  ;;  %v5078_v40 = vld [vmem:[#allocation33] sm:$0x3]  ;;  %v8142_v7 = vld [vmem:[%s10127_s11] sm:$0xff]   ;;  %v8143_v12 = vld [vmem:[%s10127_s11 + $0x8] sm:$0xff]  }
 0xee3   : > { %v5007_v10 = vsel %vm4998_vm4, %v4993_v38, %v5003_v13  ;;  %v5009_v47 = vsel %vm5000_vm5, %v4995_v6, %v5005_v46  ;;  %v5010_v11 = vpack.c.bf16 %v5006_v43, %v5006_v43  ;;  %v5012_v54 = vpack.c.bf16 %v9890_v9, %v9890_v9  ;;  %6753 = vmatprep.subr.bf16.mxu0 %v8140_v58  ;;  %v8144_v13 = vld [vmem:[%s10127_s11 + $0x10] sm:$0xff]   ;;  %v8145_v46 = vld [vmem:[%s10127_s11 + $0x18] sm:$0xff]   ;;  %v8146_v43 = vld [vmem:[%s10127_s11 + $0x20] sm:$0xff]  }
 0xee4   : > { %v5011_v17 = vpack.c.bf16 %v5007_v10, %v5007_v10  ;;  %v5013_v18 = vpack.c.bf16 %v5009_v47, %v5009_v47  ;;  %v5083_v60 = vrot.slane %v5078_v40, %v9843_v2  ;;  %v5087_v29 = vrot.slane %v5078_v40, %v9846_v3  ;;  %v8147_v9 = vld [vmem:[%s10127_s11 + $0x28] sm:$0xff]   ;;  %v8148_v10 = vld [vmem:[%s10127_s11 + $0x30] sm:$0xff]   ;;  %v8149_v47 = vld [vmem:[%s10127_s11 + $0x38] sm:$0xff]  }
 0xee6   : > { %5442 = vmatprep.mubr.bf16.mxu1 %v5011_v17  ;;  %6754 = vmatpush3.bf16.msra.mxu0 %v8141_v59 }
 0xee7   : > { %5443 = vmatmul.mubr.bf16.vlgmr.msra.gmra.mrb[48].mxu1 %v5010_v11  ;;  %7290 = vmatprep.subr.bf16.mxu0 %v8854_v30 }
 0xee8   : > { %5452 = vmatpush1.bf16.msra.mxu1 %v8078_v37  ;;  %5483 = vmatprep.mubr.bf16.mxu1 %v5013_v18  ;;  %v6411_v37 = vld [vmem:[#allocation36] ss:$0 sm:$0xff] }
 0xee9   : > { %5453 = vmatprep.subr.bf16.mxu1 %v8083_v42 }
 0xeec   : > { %5454 = vmatpush1.bf16.msra.mxu1 %v8081_v16  ;;  %v5679_v16 = vstv %s5677_s8  ;;  %s6229_s8 = sshll.u32 %s1368_s10, 3 }
 0xeed   : > { %5455 = vmatprep.subr.bf16.mxu1 %v8086_v14  ;;  %s1370_s6 = scalar_lea.vmem [#allocation40], %s6229_s8  ;;  %s8690_s8 = sshll.u32 %s8859_s29, 4  ;;  %s8691_s8 = int_to_ptr.vmem [resolvable:$false] %s8690_s8 }
 0xeee   : > { %s5897_s11 = sshll.u32 %s1370_s6, 4  ;;  %s8692_s14 = scalar_lea.vmem %s8691_s8, 256  ;;  %s9961_s11 = int_to_ptr.vmem [resolvable:$true] %s5897_s11 }
 0xeef   : > { %s8686_s13 = scalar_lea.vmem %s9961_s11, 128  ;;  %p8693_p11 = scmp.lt.s32.totalorder %s9961_s11, %s8691_s8 }
 0xef0   : > { %5456 = vmatpush1.bf16.msra.mxu1 %v8084_v15  ;;  %p8687_p3 = scmp.ne.s32.totalorder %s9961_s11, %s8686_s13  ;;  %p8694_p13 = scmp.lt.s32.totalorder %s8692_s14, %s8686_s13 }
 0xef1   : > { %5457 = vmatprep.subr.bf16.mxu1 %v8089_v19 }
 0xef2   : > { %p8688_p7 = pnand %p8687_p3, %p10128_p4  ;;  %p8695_p6 = por %p8694_p13, %p8693_p11 }
 0xef4   : > { %5458 = vmatpush1.bf16.msra.mxu1 %v8087_v20  ;;  %p8689_p8 = pneg %p8688_p7 }
 0xef5   : > { %5459 = vmatprep.subr.bf16.mxu1 %v8092_v21  ;;  %v8150_v21 = vld [vmem:[%s9030_s17] sm:$0xff]  }
 0xef6   : > { %p8696_p5 = pnand %p8695_p6, %p8689_p8 }
 0xef8   : > { %5460 = vmatpush1.bf16.msra.mxu1 %v8090_v22 }
 0xef9   : > { %5461 = vmatprep.subr.bf16.mxu1 %v8095_v49  ;;  %v8151_v49 = vld [vmem:[%s9030_s17 + $0x8] sm:$0xff]  }
 0xefc   : > { %5462 = vmatpush1.bf16.msra.mxu1 %v8093_v23  ;;  %v8152_v23 = vld [vmem:[%s9030_s17 + $0x10] sm:$0xff]  }
 0xefd   : > { %5463 = vmatprep.subr.bf16.mxu1 %v8098_v25  ;;  %v8153_v25 = vld [vmem:[%s9030_s17 + $0x18] sm:$0xff]  }
 0xf00   : > { %5464 = vmatpush1.bf16.msra.mxu1 %v8096_v26  ;;  %v6428_v26 = vld [vmem:[#allocation37] ss:$0 sm:$0xff] }
 0xf01   : > { %5465 = vmatprep.subr.bf16.mxu1 %v8101_v27 }
 0xf04   : > { %5466 = vmatpush1.bf16.msra.mxu1 %v8099_v28  ;;  %v5796_v28 = vstv %s5794_s5  ;;  %s9959_s5 = scalar_lea.hbm %s9040_s1, %s6444_s4 }
 0xf05   : > { %5467 = vmatprep.subr.bf16.mxu1 %v8104_v24 }
 0xf08   : > { %5468 = vmatpush1.bf16.msra.mxu1 %v8102_v55 }
 0xf09   : > { %5469 = vmatprep.subr.bf16.mxu1 %v8107_v31 }
 0xf0c   : > { %5470 = vmatpush1.bf16.msra.mxu1 %v8105_v44 }
 0xf0d   : > { %5471 = vmatprep.subr.bf16.mxu1 %v8110_v35 }
 0xf10   : > { %5472 = vmatpush1.bf16.msra.mxu1 %v8108_v36 }
 0xf11   : > { %5473 = vmatprep.subr.bf16.mxu1 %v8113_v32 }
 0xf14   : > { %5474 = vmatpush1.bf16.msra.mxu1 %v8111_v39 }
 0xf15   : > { %5475 = vmatprep.subr.bf16.mxu1 %v8116_v34 }
 0xf18   : > { %5476 = vmatpush1.bf16.msra.mxu1 %v8114_v45 }
 0xf19   : > { %5477 = vmatprep.subr.bf16.mxu1 %v8119_v48 }
 0xf1c   : > { %5478 = vmatpush1.bf16.msra.mxu1 %v8117_v41 }
 0xf1d   : > { %5479 = vmatprep.subr.bf16.mxu1 %v8122_v50 }
 0xf20   : > { %5480 = vmatpush1.bf16.msra.mxu1 %v8120_v51 }
 0xf21   : > { %5481 = vmatprep.subr.bf16.mxu1 %v8125_v52 }
 0xf24   : > { %5482 = vmatpush1.bf16.msra.mxu1 %v8123_v53 }
 0xf27   : > { %5484 = vmatmul.mubr.bf16.vlgmr.msra.gmra.mrb[48].mxu1 %v5012_v54 }
 0xffa   : > { %v5485_v61 = vpop.f32.mrb[48].mxu1 }
 0xffb   : > { %v7610_v62 = vadd.f32 %v5485_v61, %v5083_v60  ;;  %v5487_v63 = vpop.f32.mrb[49].mxu1 }
 0xffc   : > { %v7611_v0 = vadd.f32 %v5487_v63, %v5087_v29  ;;  %v5489_v1 = vpop.f32.mrb[50].mxu1 }
 0xffd   : > { %vm5493_vm6 = vcmp.gt.f32.partialorder %v7610_v62, 0.0  ;;  %v5496_v4 = vmul.f32 %v7610_v62, %v5495_v33  ;;  %v5490_v5 = vpop.f32.mrb[51].mxu1 }
 0xffe   : > { %vm5494_vm7 = vcmp.gt.f32.partialorder %v7611_v0, 0.0  ;;  %v5497_v8 = vmul.f32 %v7611_v0, %v5495_v33 }
 0xfff   : > { %v5498_v38 = vsel %vm5493_vm6, %v7610_v62, %v5496_v4 }
0x1000   : > { %v5499_v6 = vsel %vm5494_vm7, %v7611_v0, %v5497_v8  ;;  %v5500_v3 = vpack.c.bf16 %v5498_v38, %v5498_v38 }
0x1001   : > { %v5501_v2 = vpack.c.bf16 %v5499_v6, %v5499_v6 }
0x1003   : > { %5669 = vmatprep.mubr.bf16.mxu0 %v5501_v2 }
0x1004   : > { %5670 = vmatmul.mubr.bf16.vlgmr.msra.gmra.mrb[48].mxu0 %v5500_v3 }
0x1005   : > { %7291 = vmatpush3.bf16.msra.mxu0 %v8142_v7  ;;  %7306 = vmatprep.mubr.msk.bf16.mxu0 %vm8853_vm0, %v8854_v30 }
0x1006   : > { %7292 = vmatprep.subr.bf16.mxu0 %v8854_v30 }
0x1009   : > { %7293 = vmatpush3.bf16.msra.mxu0 %v8143_v12 }
0x100a   : > { %7294 = vmatprep.subr.bf16.mxu0 %v8854_v30 }
0x100d   : > { %7295 = vmatpush3.bf16.msra.mxu0 %v8144_v13 }
0x100e   : > { %7296 = vmatprep.subr.bf16.mxu0 %v8854_v30 }
0x1011   : > { %7297 = vmatpush3.bf16.msra.mxu0 %v8145_v46 }
0x1012   : > { %7298 = vmatprep.subr.bf16.mxu0 %v8854_v30 }
0x1015   : > { %7299 = vmatpush3.bf16.msra.mxu0 %v8146_v43 }
0x1016   : > { %7300 = vmatprep.subr.bf16.mxu0 %v8854_v30 }
0x1019   : > { %7301 = vmatpush3.bf16.msra.mxu0 %v8147_v9 }
0x101a   : > { %7302 = vmatprep.subr.bf16.mxu0 %v8854_v30 }
0x101d   : > { %7303 = vmatpush3.bf16.msra.mxu0 %v8148_v10 }
0x101e   : > { %7304 = vmatprep.subr.bf16.mxu0 %v8854_v30 }
0x1021   : > { %7305 = vmatpush3.bf16.msra.mxu0 %v8149_v47 }
0x1022   : > { %7310 = vmatprep.subr.bf16.mxu0 %v8854_v30 }
0x10d7   : > { %v6755_v17 = vpop.f32.mrb[48].mxu0 }
0x10d8   : > { %v6756_v11 = vpop.f32.mrb[49].mxu0 }
0x10d9   : > { %v6757_v42 = vadd.f32 %v6756_v11, %v6755_v17  ;;  %v6758_v18 = vpop.f32.mrb[50].mxu0 }
0x10da   : > { %v6759_v14 = vpop.f32.mrb[51].mxu0 }
0x10db   : > { %v5672_v15 = vadd.f32 %v6757_v42, %v6411_v37 }
0x10dd   : > { %vm5678_vm8 = vcmp.gt.f32.partialorder %v5672_v15, 0.0  ;;  %v5680_v19 = vmul.f32 %v5679_v16, %v5672_v15 }
0x10df   : > { %v5681_v20 = vsel %vm5678_vm8, %v5672_v15, %v5680_v19 }
0x10e0   : > { %v5682_v22 = vpack.c.bf16 %v5681_v20, %v5681_v20 }
0x10e2   : > { %7307 = vmatmul.mubr.bf16.vlgmr.msra.gmra.mrb[52].mxu0 %v5682_v22 }
0x10e3   : > { %7311 = vmatpush3.bf16.msra.mxu0 %v8150_v21  ;;  %7318 = vmatprep.mubr.msk.bf16.mxu0 %vm8853_vm0, %v8854_v30 }
0x10e4   : > { %7312 = vmatprep.subr.bf16.mxu0 %v8854_v30 }
0x10e7   : > { %7313 = vmatpush3.bf16.msra.mxu0 %v8151_v49 }
0x10e8   : > { %7314 = vmatprep.subr.bf16.mxu0 %v8854_v30 }
0x10eb   : > { %7315 = vmatpush3.bf16.msra.mxu0 %v8152_v23 }
0x10ec   : > { %7316 = vmatprep.subr.bf16.mxu0 %v8854_v30  ;;  %v6437_v30 = vld [vmem:[#allocation39] ss:$0 sm:$0xff] }
0x10ef   : > { %7317 = vmatpush3.bf16.msra.mxu0 %v8153_v25 }
0x11b5   : > { %v5788_v27 = vpop.f32.mrb[52].mxu0 }
0x11b6   : > { %v5789_v24 = vadd.f32 %v6428_v26, %v5788_v27  ;;  %v7308_v55 = vpop.f32.mrb[53].mxu0 }
0x11b7   : > { %v5791_v31 = vpop.f32.mrb[54].mxu0 }
0x11b8   : > { %vm5795_vm9 = vcmp.gt.f32.partialorder %v5789_v24, 0.0  ;;  %v5797_v44 = vmul.f32 %v5796_v28, %v5789_v24  ;;  %v7309_v35 = vpop.f32.mrb[55].mxu0 }
0x11ba   : > { %v5798_v36 = vsel %vm5795_vm9, %v5789_v24, %v5797_v44 }
0x11bb   : > { %v5799_v32 = vpack.c.bf16 %v5798_v36, %v5798_v36 }
0x11bd   : > { %7319 = vmatmul.mubr.msk.bf16.vlgmr.msra.gmra.mrb[56].mxu0 %vm2844_vm3, %v5799_v32 }
0x1290   : > { %v5876_v39 = vpop.f32.mrb[56].mxu0 }
0x1291   : > { %v5877_v34 = vadd.f32 %v6437_v30, %v5876_v39  ;;  %v7320_v45 = vpop.f32.mrb[57].mxu0 }
0x1292   : > { %v5879_v48 = vpop.f32.mrb[58].mxu0 }
0x1293   : > { %5882 = vst [vmem:[%s1370_s6] sm:$0xff] %v5877_v34  ;;  %v7321_v41 = vpop.f32.mrb[59].mxu0 }
0x1294   : > { %8699 = shalt.err (!%p8696_p5)
}
0x1295   : > { %s8700_s6 = scalar_lea.hbm %s9959_s5, 128  ;;  %s8704_s4 = scalar_lea.hbm %s9040_s1, 256 }
0x1296   : > { %p8701_p0 = scmp.ne.s32.totalorder %s9959_s5, %s8700_s6  ;;  %p8705_p12 = scmp.lt.u32.totalorder %s9959_s5, %s9040_s1 }
0x1297   : > { %p8706_p1 = scmp.lt.u32.totalorder %s8704_s4, %s8700_s6  ;;  %p8708_p3 = scmp.lt.u32.totalorder %s8700_s6, %s9959_s5 }
0x1298   : > { %p8702_p9 = pnand %p8701_p0, %p10128_p4 }
0x1299   : > { %p8707_p2 = por %p8706_p1, %p8705_p12 }
0x129a   : > { %p8703_p10 = pneg %p8702_p9 }
0x129b   : > { %p8709_p7 = por %p8708_p3, %p8707_p2 }
0x129d   : > { %p8710_p8 = pnand %p8709_p7, %p8703_p10 }
0x129f   : > { %8713 = shalt.err (!%p8710_p8)
}
0x12a0   : > { %7750 = dma.vmem_to_hbm [thread:$0]  (%p10128_p4), %s9961_s11, 128, %s9959_s5, %s5884_s12  }
0x12a1 PF: > { %p7852_p11 = scmp.ge.s32.totalorder %s8788_s3, 2  ;;  %s5909_s13 = sand.u32 1, %s8776_s0  }
0x12a2   : > { %p10129_p13 = scmp.ne.s32.totalorder %s10065_s7, 0  ;;  %s5910_s14 = scalar_lea.sflag [#allocation12], %s5909_s13 }
0x12a4   : > { %p7811_p6 = pnand %p7852_p11, %p10129_p13 }
0x12a6   : > { %8771 = dma.done.wait (!%p7811_p6), %s5910_s14, 128  }
0x12a7   : > { %8773 = vsyncadd (!%p7811_p6), %s5910_s14, 4294967168  ;;  %p100_p5 = scmp.ge.s32.totalorder %s9070_s24, 4   ;;  %s10130_s0 = smov %s8780_s9 }
0x12a8   : > { %s10131_s9 = smov %s8784_s21  ;;  %s10132_s21 = smov %s9081_s28 }
0x12a9   : > { %s10133_s3 = smov %s9070_s24  ;;  %102 = sbr.rel (!%p100_p5) target bundleno = 82 (0x52), region = 318 }
0x12b0   :  { %5915 = vsyncpa [#allocation11], 1 }
0x12b1   :  { %5917 = vsyncpa [#allocation11 + $0x1], 1 }
0x12b2   :  { %5918 = vsyncpa [#allocation14], 1 }
0x12b3   :  { %5919 = vsyncpa [#allocation17], 1 }
0x12b4   :  { %5920 = vsyncpa [#allocation20], 1 }
0x12b5   :  { %5921 = vsyncpa [#allocation23], 1 }
0x12b6   :  { %5922 = vsyncpa [#allocation26], 1 }
0x12b7   :  { %5923 = vsyncpa [#allocation29], 1 }
0x12b8   :  { %5924 = vsyncpa [#allocation32], 1 }
0x12b9   :  { %5925 = vsyncpa [#allocation35], 1 }
0x12ba   :  { %5926 = vsyncpa [#allocation38], 1 }
0x12bb   :  { %5927 = vsyncpa [#allocation12], 1 }
0x12bc   :  { %5929 = vsyncpa [#allocation12 + $0x1], 1 }

</bundles_post_ra>
